<compile_context>
chip_gen: v7x
topology: tpu7x:2x2x1
jax: 0.10.0
libtpu: 0.0.40
codegen_flags: <defaults>
</compile_context>

<pallas_src>
import functools

import jax
import jax.numpy as jnp
from jax import lax
from jax.experimental import pallas as pl
from jax.experimental.pallas import tpu as pltpu


def _gru_kernel(x_ref, h0_ref, wih_ref, whh_ref, wcomb_ref,
                bx0_ref, bxc_ref, bhn_ref,
                out_ref, hfin_ref, gx0_ref,
                *, n_layers, seq_len, batch, hid_pad):
    """Single invocation: full sequence recurrence inside the kernel.

    Refs (full arrays, VMEM):
      x_ref    : (seq_len*B, in_dim)   f32
      h0_ref   : (n_layers, B, HP)     f32   (lane-padded hidden, pad lanes == 0)
      wih_ref  : (in_dim, 3*HP)        matmul dtype   GRUCell weight_ih^T, gate-grouped cols
      whh_ref  : (HP, 3*HP)            matmul dtype   GRUCell weight_hh^T, gate-grouped
      wcomb_ref: (HP, 3*HP)            matmul dtype   W_fc^T @ W_ih^T (fc folded), gate-grouped
      bx0_ref  : (1, 3*HP)  f32        b_ih + [b_hh_r, b_hh_z, 0]           (layer 0)
      bxc_ref  : (1, 3*HP)  f32        b_fc @ W_ih^T + b_ih + [b_hh_r, b_hh_z, 0]  (layers>=1)
      bhn_ref  : (1, HP)    f32        b_hh_n (scaled by r inside the n gate)
      out_ref  : (seq_len, B, HP)      f32
      hfin_ref : (n_layers, B, HP)     f32
      gx0_ref  : (seq_len*B, 3*HP)     f32 scratch — hoisted layer-0 input projection
    """
    B = batch
    HP = hid_pad

    # Load weights / biases once (hoisted out of the recurrence).
    wih = wih_ref[...]
    whh = whh_ref[...]
    wcomb = wcomb_ref[...]
    bx0 = bx0_ref[...]
    mx_dtype = wih.dtype

    # Hoisted bias broadcasts (JAX does not CSE broadcast_in_dim inside the unrolled loop).
    bxc_b = jnp.broadcast_to(bxc_ref[...], (B, 3 * HP))
    bhn_b = jnp.broadcast_to(bhn_ref[...], (B, HP))

    # --- time-invariant layer-0 input projection, hoisted out of the recurrence ---
    # One wide (seq*B, in_dim) @ (in_dim, 3*HP) matmul instead of seq_len tiny ones.
    gx0_ref[...] = (
        jnp.dot(x_ref[...].astype(mx_dtype), wih, preferred_element_type=jnp.float32)
        + bx0)

    def gates(gx, gh, hi):
        # Lane-aligned slices: each gate sits in its own 128-lane group (offsets 0/HP/2HP).
        r = jax.nn.sigmoid(gx[:, 0:HP] + gh[:, 0:HP])
        z = jax.nn.sigmoid(gx[:, HP:2 * HP] + gh[:, HP:2 * HP])
        n = jnp.tanh(gx[:, 2 * HP:3 * HP] + r * (gh[:, 2 * HP:3 * HP] + bhn_b))
        return (1.0 - z) * n + z * hi

    def step(t, hs):
        # All recurrent hidden projections depend only on the previous step's states:
        # push them to the MXU up front so they overlap the serial gate math.
        ghs = [jnp.dot(hs[i].astype(mx_dtype), whh,
                       preferred_element_type=jnp.float32)
               for i in range(n_layers)]
        row = pl.multiple_of(t * B, B)
        gx = gx0_ref[pl.ds(row, B), :]          # hoisted layer-0 projection (incl. biases)
        new_hs = []
        for i in range(n_layers):
            if i > 0:
                # fc(h_{i-1}) folded into the GRU input projection (exact; dropout = identity).
                gx = jnp.dot(new_hs[-1].astype(mx_dtype), wcomb,
                             preferred_element_type=jnp.float32) + bxc_b
            new_hs.append(gates(gx, ghs[i], hs[i]))
        out_ref[t] = new_hs[-1]                 # out[t] = last layer's new hidden (no fc)
        return tuple(new_hs)

    hs0 = tuple(h0_ref[i] for i in range(n_layers))
    hs_final = lax.fori_loop(0, seq_len, step, hs0,
                             unroll=True if seq_len <= 16 else 4)

    # Final-hidden writeback exactly once, after the recurrence.
    for i in range(n_layers):
        hfin_ref[i] = hs_final[i]


def my_gru_forward(x, h0, params, *, n_layers, matmul_dtype=jnp.float32):
    """x: (seq, B, in_dim) f32;  h0: (n_layers, B, H) f32.

    matmul_dtype: dtype of the MXU operands (jnp.bfloat16 recommended on v6e/v7x).
    All folds are computed in f32 before casting; state/gate math stays f32.
    """
    seq_len, B, in_dim = x.shape
    H = h0.shape[-1]
    HP = ((H + 127) // 128) * 128   # each gate in its own 128-lane group

    f32 = jnp.float32
    wih_t = params["weight_ih"].T.astype(f32)   # (in_dim, 3H)
    whh_t = params["weight_hh"].T.astype(f32)   # (H, 3H)
    bih = params["bias_ih"].astype(f32)         # (3H,)
    bhh = params["bias_hh"].astype(f32)         # (3H,)
    wfc_t = params["fc_weight"].T.astype(f32)   # (H, in_dim)
    bfc = params["fc_bias"].astype(f32)         # (in_dim,)

    # Exact f32 algebraic folds (Dropout is identity at inference, Linear is affine):
    #   fc(h) @ W_ih^T + b_ih = h @ (W_fc^T @ W_ih^T) + (b_fc @ W_ih^T + b_ih)
    w_comb = wfc_t @ wih_t                                     # (H, 3H)
    # r/z hidden-side biases commute with the gate sum -> fold into the input-side bias;
    # the n-gate hidden bias stays separate (it is scaled by r).
    b_hh_rz = jnp.concatenate([bhh[:2 * H], jnp.zeros((H,), f32)])
    b_x0 = bih + b_hh_rz                                       # (3H,)   layer 0
    b_xc = bfc @ wih_t + bih + b_hh_rz                         # (3H,)   layers >= 1
    b_hn = bhh[2 * H:]                                         # (H,)

    def pad_gate_cols(w):   # (rows, 3H) -> (rows, 3*HP): gate g at cols [g*HP, g*HP+H)
        wp = jnp.zeros((w.shape[0], 3 * HP), f32)
        for g in range(3):
            wp = wp.at[:, g * HP:g * HP + H].set(w[:, g * H:(g + 1) * H])
        return wp

    def pad_rows(w):        # (H, C) -> (HP, C), zero rows beyond H
        return jnp.pad(w, ((0, HP - H), (0, 0)))

    def pad_gate_vec(b):    # (3H,) -> (1, 3*HP)
        bp = jnp.zeros((1, 3 * HP), f32)
        for g in range(3):
            bp = bp.at[0, g * HP:g * HP + H].set(b[g * H:(g + 1) * H])
        return bp

    wih_p = pad_gate_cols(wih_t).astype(matmul_dtype)              # (in_dim, 3HP)
    whh_p = pad_rows(pad_gate_cols(whh_t)).astype(matmul_dtype)    # (HP, 3HP)
    wcomb_p = pad_rows(pad_gate_cols(w_comb)).astype(matmul_dtype)  # (HP, 3HP)
    bx0_p = pad_gate_vec(b_x0)                                     # (1, 3HP) f32
    bxc_p = pad_gate_vec(b_xc)                                     # (1, 3HP) f32
    bhn_p = jnp.zeros((1, HP), f32).at[0, :H].set(b_hn)            # (1, HP)  f32

    x2d = x.reshape(seq_len * B, in_dim).astype(f32)               # x[t] == x2d[t*B:(t+1)*B]
    h0_p = jnp.pad(h0.astype(f32), ((0, 0), (0, 0), (0, HP - H)))  # pad lanes exactly 0

    vmem = pltpu.MemorySpace.VMEM
    kernel = functools.partial(_gru_kernel, n_layers=n_layers, seq_len=seq_len,
                               batch=B, hid_pad=HP)

    out_p, hfin_p = pl.pallas_call(
        kernel,
        out_shape=(
            jax.ShapeDtypeStruct((seq_len, B, HP), f32),
            jax.ShapeDtypeStruct((n_layers, B, HP), f32),
        ),
        # Gridless single invocation: full slabs resident in VMEM, no pipelining machinery.
        in_specs=[pl.BlockSpec(memory_space=vmem) for _ in range(8)],
        out_specs=(pl.BlockSpec(memory_space=vmem),
                   pl.BlockSpec(memory_space=vmem)),
        scratch_shapes=[pltpu.VMEM((seq_len * B, 3 * HP), f32)],   # hoisted layer-0 proj.
        input_output_aliases={1: 1},                               # h0 buffer -> h_final
    )(x2d, h0_p, wih_p, whh_p, wcomb_p, bx0_p, bxc_p, bhn_p)

    out = out_p[:, :, :H]
    h_final = hfin_p[:, :, :H]
    # shift_func is None -> shift_out is just out (matches the torch path).
    shift_out = out
    return out, h_final, shift_out


# ----------------------- pure-JAX reference (unfused, mirrors PyTorch) -----------------------
def _ref_forward(x, h0, params, n_layers):
    wih, whh = params["weight_ih"], params["weight_hh"]
    bih, bhh = params["bias_ih"], params["bias_hh"]
    wfc, bfc = params["fc_weight"], params["fc_bias"]
    H = h0.shape[-1]

    def cell(d, h):
        gx = d @ wih.T + bih
        gh = h @ whh.T + bhh
        r = jax.nn.sigmoid(gx[:, 0:H] + gh[:, 0:H])
        z = jax.nn.sigmoid(gx[:, H:2 * H] + gh[:, H:2 * H])
        n = jnp.tanh(gx[:, 2 * H:3 * H] + r * gh[:, 2 * H:3 * H])
        return (1.0 - z) * n + z * h

    h = [h0[i] for i in range(n_layers)]
    outs = []
    for t in range(x.shape[0]):
        d = x[t]
        for i in range(n_layers):
            h[i] = cell(d, h[i])
            d = h[i] @ wfc.T + bfc if i < n_layers - 1 else h[i]
        outs.append(d)
    return jnp.stack(outs), jnp.stack(h)


# ------------------------------------ main ------------------------------------
if __name__ == "__main__":
    seq_len, batch, in_dim, hid_dim, n_layers = 8, 8, 16, 32, 2

    key = jax.random.PRNGKey(0)
    ks = jax.random.split(key, 8)
    k = 1.0 / jnp.sqrt(jnp.float32(hid_dim))

    params = {
        "weight_ih": jax.random.uniform(ks[0], (3 * hid_dim, in_dim), jnp.float32, -k, k),
        "weight_hh": jax.random.uniform(ks[1], (3 * hid_dim, hid_dim), jnp.float32, -k, k),
        "bias_ih":   jax.random.uniform(ks[2], (3 * hid_dim,), jnp.float32, -k, k),
        "bias_hh":   jax.random.uniform(ks[3], (3 * hid_dim,), jnp.float32, -k, k),
        "fc_weight": jax.random.uniform(ks[4], (in_dim, hid_dim), jnp.float32, -k, k),
        "fc_bias":   jax.random.uniform(ks[5], (in_dim,), jnp.float32, -k, k),
    }
    # TODO(synk): self.bn (BatchNorm1d) is never used in forward(); not implemented.

    x = jax.random.normal(ks[6], (seq_len, batch, in_dim), jnp.float32)
    h0 = jnp.zeros((n_layers, batch, hid_dim), jnp.float32)  # init_hidden()

    ref_out, ref_h = _ref_forward(x, h0, params, n_layers)

    # f32 MXU operand path (default; tight check — folds only reassociate FP sums).
    out, h_final, shift_out = my_gru_forward(x, h0, params, n_layers=n_layers)
    jax.block_until_ready((out, h_final, shift_out))
    assert jnp.allclose(out, ref_out, atol=1e-4, rtol=1e-4)
    assert jnp.allclose(h_final, ref_h, atol=1e-4, rtol=1e-4)
    assert jnp.allclose(shift_out, ref_out, atol=1e-4, rtol=1e-4)

    # bf16 MXU operand path (perf path for v6e/v7x; f32 accumulation + f32 gate math).
    out_bf, h_bf, _ = my_gru_forward(x, h0, params, n_layers=n_layers,
                                     matmul_dtype=jnp.bfloat16)
    jax.block_until_ready((out_bf, h_bf))
    assert jnp.allclose(out_bf, ref_out, atol=5e-2, rtol=5e-2)
    assert jnp.allclose(h_bf, ref_h, atol=5e-2, rtol=5e-2)

    print("KERNEL_OK")
</pallas_src>

<mosaic_0001>
module attributes {stable_mosaic.version = 11 : i64} {
  func.func @_gru_kernel(%arg0: memref<64x16xf32, #tpu.memory_space<vmem>>, %arg1: memref<2x8x128xf32, #tpu.memory_space<vmem>>, %arg2: memref<16x384xf32, #tpu.memory_space<vmem>>, %arg3: memref<128x384xf32, #tpu.memory_space<vmem>>, %arg4: memref<128x384xf32, #tpu.memory_space<vmem>>, %arg5: memref<1x384xf32, #tpu.memory_space<vmem>>, %arg6: memref<1x384xf32, #tpu.memory_space<vmem>>, %arg7: memref<1x128xf32, #tpu.memory_space<vmem>>, %arg8: memref<8x8x128xf32, #tpu.memory_space<vmem>>, %arg9: memref<2x8x128xf32, #tpu.memory_space<vmem>>, %arg10: memref<64x384xf32, #tpu.memory_space<vmem>>) attributes {dimension_semantics = [], scalar_prefetch = 0 : i64, scratch_operands = 1 : i64, tpu.core_type = #tpu.core_type<tc>} {
    %c0 = arith.constant 0 : index
    %c0_0 = arith.constant 0 : index
    %0 = vector.load %arg2[%c0, %c0_0] : memref<16x384xf32, #tpu.memory_space<vmem>>, vector<16x384xf32>
    %c0_1 = arith.constant 0 : index
    %c0_2 = arith.constant 0 : index
    %1 = vector.load %arg3[%c0_1, %c0_2] : memref<128x384xf32, #tpu.memory_space<vmem>>, vector<128x384xf32>
    %c0_3 = arith.constant 0 : index
    %c0_4 = arith.constant 0 : index
    %2 = vector.load %arg4[%c0_3, %c0_4] : memref<128x384xf32, #tpu.memory_space<vmem>>, vector<128x384xf32>
    %c0_5 = arith.constant 0 : index
    %c0_6 = arith.constant 0 : index
    %3 = vector.load %arg5[%c0_5, %c0_6] : memref<1x384xf32, #tpu.memory_space<vmem>>, vector<1x384xf32>
    %c0_7 = arith.constant 0 : index
    %c0_8 = arith.constant 0 : index
    %4 = vector.load %arg6[%c0_7, %c0_8] : memref<1x384xf32, #tpu.memory_space<vmem>>, vector<1x384xf32>
    %5 = vector.shape_cast %4 : vector<1x384xf32> to vector<1x384xf32>
    %6 = vector.broadcast %5 : vector<1x384xf32> to vector<8x384xf32>
    %c0_9 = arith.constant 0 : index
    %c0_10 = arith.constant 0 : index
    %7 = vector.load %arg7[%c0_9, %c0_10] : memref<1x128xf32, #tpu.memory_space<vmem>>, vector<1x128xf32>
    %8 = vector.shape_cast %7 : vector<1x128xf32> to vector<1x128xf32>
    %9 = vector.broadcast %8 : vector<1x128xf32> to vector<8x128xf32>
    %c0_11 = arith.constant 0 : index
    %c0_12 = arith.constant 0 : index
    %10 = vector.load %arg0[%c0_11, %c0_12] : memref<64x16xf32, #tpu.memory_space<vmem>>, vector<64x16xf32>
    %cst = arith.constant dense<0.000000e+00> : vector<64x384xf32>
    %11 = tpu.matmul %10, %0, %cst {dimension_numbers = #tpu.dot_dimension_numbers<[1], [0], [0], [1], [0, 0, 1, 1], [], []>} : vector<64x16xf32>, vector<16x384xf32>, vector<64x384xf32> -> vector<64x384xf32>
    %12 = vector.broadcast %3 : vector<1x384xf32> to vector<64x384xf32>
    %13 = arith.addf %11, %12 : vector<64x384xf32>
    %c0_13 = arith.constant 0 : index
    %c0_14 = arith.constant 0 : index
    %14 = vector.load %arg10[%c0_13, %c0_14] : memref<64x384xf32, #tpu.memory_space<vmem>>, vector<64x384xf32>
    tpu.vector_store %arg10[%c0_13, %c0_14], %13 {strides = array<i32>} : memref<64x384xf32, #tpu.memory_space<vmem>>, vector<64x384xf32>,
    %c0_15 = arith.constant 0 : index
    %c0_16 = arith.constant 0 : index
    %c0_17 = arith.constant 0 : index
    %15 = vector.load %arg1[%c0_15, %c0_16, %c0_17] : memref<2x8x128xf32, #tpu.memory_space<vmem>>, vector<1x8x128xf32>
    %16 = vector.shape_cast %15 : vector<1x8x128xf32> to vector<8x128xf32>
    %c1 = arith.constant 1 : index
    %c0_18 = arith.constant 0 : index
    %c0_19 = arith.constant 0 : index
    %17 = vector.load %arg1[%c1, %c0_18, %c0_19] : memref<2x8x128xf32, #tpu.memory_space<vmem>>, vector<1x8x128xf32>
    %18 = vector.shape_cast %17 : vector<1x8x128xf32> to vector<8x128xf32>
    %c0_i32 = arith.constant 0 : i32
    %cst_20 = arith.constant dense<0.000000e+00> : vector<8x384xf32>
    %19 = tpu.matmul %16, %1, %cst_20 {dimension_numbers = #tpu.dot_dimension_numbers<[1], [0], [0], [1], [0, 0, 1, 1], [], []>} : vector<8x128xf32>, vector<128x384xf32>, vector<8x384xf32> -> vector<8x384xf32>
    %cst_21 = arith.constant dense<0.000000e+00> : vector<8x384xf32>
    %20 = tpu.matmul %18, %1, %cst_21 {dimension_numbers = #tpu.dot_dimension_numbers<[1], [0], [0], [1], [0, 0, 1, 1], [], []>} : vector<8x128xf32>, vector<128x384xf32>, vector<8x384xf32> -> vector<8x384xf32>
    %c8_i32 = arith.constant 8 : i32
    %21 = arith.muli %c0_i32, %c8_i32 : i32
    %22 = tpu.assume_multiple %21, 8 : i32
    %23 = arith.index_cast %22 : i32 to index
    %c0_22 = arith.constant 0 : index
    %24 = vector.load %arg10[%23, %c0_22] : memref<64x384xf32, #tpu.memory_space<vmem>>, vector<8x384xf32>
    %25 = vector.extract_strided_slice %24 {offsets = [0, 0], sizes = [8, 128], strides = [1, 1]} : vector<8x384xf32> to vector<8x128xf32>
    %26 = vector.extract_strided_slice %19 {offsets = [0, 0], sizes = [8, 128], strides = [1, 1]} : vector<8x384xf32> to vector<8x128xf32>
    %27 = arith.addf %25, %26 : vector<8x128xf32>
    %28 = arith.negf %27 : vector<8x128xf32>
    %29 = math.exp %28 : vector<8x128xf32>
    %cst_23 = arith.constant 1.000000e+00 : f32
    %30 = vector.broadcast %cst_23 : f32 to vector<8x128xf32>
    %31 = arith.addf %30, %29 : vector<8x128xf32>
    %32 = arith.divf %30, %31 : vector<8x128xf32>
    %33 = vector.extract_strided_slice %24 {offsets = [0, 128], sizes = [8, 128], strides = [1, 1]} : vector<8x384xf32> to vector<8x128xf32>
    %34 = vector.extract_strided_slice %19 {offsets = [0, 128], sizes = [8, 128], strides = [1, 1]} : vector<8x384xf32> to vector<8x128xf32>
    %35 = arith.addf %33, %34 : vector<8x128xf32>
    %36 = arith.negf %35 : vector<8x128xf32>
    %37 = math.exp %36 : vector<8x128xf32>
    %cst_24 = arith.constant 1.000000e+00 : f32
    %38 = vector.broadcast %cst_24 : f32 to vector<8x128xf32>
    %39 = arith.addf %38, %37 : vector<8x128xf32>
    %40 = arith.divf %38, %39 : vector<8x128xf32>
    %41 = vector.extract_strided_slice %24 {offsets = [0, 256], sizes = [8, 128], strides = [1, 1]} : vector<8x384xf32> to vector<8x128xf32>
    %42 = vector.extract_strided_slice %19 {offsets = [0, 256], sizes = [8, 128], strides = [1, 1]} : vector<8x384xf32> to vector<8x128xf32>
    %43 = arith.addf %42, %9 : vector<8x128xf32>
    %44 = arith.mulf %32, %43 : vector<8x128xf32>
    %45 = arith.addf %41, %44 : vector<8x128xf32>
    %46 = math.tanh %45 : vector<8x128xf32>
    %cst_25 = arith.constant 1.000000e+00 : f32
    %47 = vector.broadcast %cst_25 : f32 to vector<8x128xf32>
    %48 = arith.subf %47, %40 : vector<8x128xf32>
    %49 = arith.mulf %48, %46 : vector<8x128xf32>
    %50 = arith.mulf %40, %16 : vector<8x128xf32>
    %51 = arith.addf %49, %50 : vector<8x128xf32>
    %cst_26 = arith.constant dense<0.000000e+00> : vector<8x384xf32>
    %52 = tpu.matmul %51, %2, %cst_26 {dimension_numbers = #tpu.dot_dimension_numbers<[1], [0], [0], [1], [0, 0, 1, 1], [], []>} : vector<8x128xf32>, vector<128x384xf32>, vector<8x384xf32> -> vector<8x384xf32>
    %53 = arith.addf %52, %6 : vector<8x384xf32>
    %54 = vector.extract_strided_slice %53 {offsets = [0, 0], sizes = [8, 128], strides = [1, 1]} : vector<8x384xf32> to vector<8x128xf32>
    %55 = vector.extract_strided_slice %20 {offsets = [0, 0], sizes = [8, 128], strides = [1, 1]} : vector<8x384xf32> to vector<8x128xf32>
    %56 = arith.addf %54, %55 : vector<8x128xf32>
    %57 = arith.negf %56 : vector<8x128xf32>
    %58 = math.exp %57 : vector<8x128xf32>
    %cst_27 = arith.constant 1.000000e+00 : f32
    %59 = vector.broadcast %cst_27 : f32 to vector<8x128xf32>
    %60 = arith.addf %59, %58 : vector<8x128xf32>
    %61 = arith.divf %59, %60 : vector<8x128xf32>
    %62 = vector.extract_strided_slice %53 {offsets = [0, 128], sizes = [8, 128], strides = [1, 1]} : vector<8x384xf32> to vector<8x128xf32>
    %63 = vector.extract_strided_slice %20 {offsets = [0, 128], sizes = [8, 128], strides = [1, 1]} : vector<8x384xf32> to vector<8x128xf32>
    %64 = arith.addf %62, %63 : vector<8x128xf32>
    %65 = arith.negf %64 : vector<8x128xf32>
    %66 = math.exp %65 : vector<8x128xf32>
    %cst_28 = arith.constant 1.000000e+00 : f32
    %67 = vector.broadcast %cst_28 : f32 to vector<8x128xf32>
    %68 = arith.addf %67, %66 : vector<8x128xf32>
    %69 = arith.divf %67, %68 : vector<8x128xf32>
    %70 = vector.extract_strided_slice %53 {offsets = [0, 256], sizes = [8, 128], strides = [1, 1]} : vector<8x384xf32> to vector<8x128xf32>
    %71 = vector.extract_strided_slice %20 {offsets = [0, 256], sizes = [8, 128], strides = [1, 1]} : vector<8x384xf32> to vector<8x128xf32>
    %72 = arith.addf %71, %9 : vector<8x128xf32>
    %73 = arith.mulf %61, %72 : vector<8x128xf32>
    %74 = arith.addf %70, %73 : vector<8x128xf32>
    %75 = math.tanh %74 : vector<8x128xf32>
    %cst_29 = arith.constant 1.000000e+00 : f32
    %76 = vector.broadcast %cst_29 : f32 to vector<8x128xf32>
    %77 = arith.subf %76, %69 : vector<8x128xf32>
    %78 = arith.mulf %77, %75 : vector<8x128xf32>
    %79 = arith.mulf %69, %18 : vector<8x128xf32>
    %80 = arith.addf %78, %79 : vector<8x128xf32>
    %81 = arith.index_cast %c0_i32 : i32 to index
    %c0_30 = arith.constant 0 : index
    %c0_31 = arith.constant 0 : index
    %82 = vector.load %arg8[%81, %c0_30, %c0_31] : memref<8x8x128xf32, #tpu.memory_space<vmem>>, vector<1x8x128xf32>
    %83 = vector.shape_cast %82 : vector<1x8x128xf32> to vector<8x128xf32>
    %84 = vector.shape_cast %80 : vector<8x128xf32> to vector<1x8x128xf32>
    tpu.vector_store %arg8[%81, %c0_30, %c0_31], %84 {strides = array<i32>} : memref<8x8x128xf32, #tpu.memory_space<vmem>>, vector<1x8x128xf32>,
    %c1_i32 = arith.constant 1 : i32
    %cst_32 = arith.constant dense<0.000000e+00> : vector<8x384xf32>
    %85 = tpu.matmul %51, %1, %cst_32 {dimension_numbers = #tpu.dot_dimension_numbers<[1], [0], [0], [1], [0, 0, 1, 1], [], []>} : vector<8x128xf32>, vector<128x384xf32>, vector<8x384xf32> -> vector<8x384xf32>
    %cst_33 = arith.constant dense<0.000000e+00> : vector<8x384xf32>
    %86 = tpu.matmul %80, %1, %cst_33 {dimension_numbers = #tpu.dot_dimension_numbers<[1], [0], [0], [1], [0, 0, 1, 1], [], []>} : vector<8x128xf32>, vector<128x384xf32>, vector<8x384xf32> -> vector<8x384xf32>
    %c8_i32_34 = arith.constant 8 : i32
    %87 = arith.muli %c1_i32, %c8_i32_34 : i32
    %88 = tpu.assume_multiple %87, 8 : i32
    %89 = arith.index_cast %88 : i32 to index
    %c0_35 = arith.constant 0 : index
    %90 = vector.load %arg10[%89, %c0_35] : memref<64x384xf32, #tpu.memory_space<vmem>>, vector<8x384xf32>
    %91 = vector.extract_strided_slice %90 {offsets = [0, 0], sizes = [8, 128], strides = [1, 1]} : vector<8x384xf32> to vector<8x128xf32>
    %92 = vector.extract_strided_slice %85 {offsets = [0, 0], sizes = [8, 128], strides = [1, 1]} : vector<8x384xf32> to vector<8x128xf32>
    %93 = arith.addf %91, %92 : vector<8x128xf32>
    %94 = arith.negf %93 : vector<8x128xf32>
    %95 = math.exp %94 : vector<8x128xf32>
    %cst_36 = arith.constant 1.000000e+00 : f32
    %96 = vector.broadcast %cst_36 : f32 to vector<8x128xf32>
    %97 = arith.addf %96, %95 : vector<8x128xf32>
    %98 = arith.divf %96, %97 : vector<8x128xf32>
    %99 = vector.extract_strided_slice %90 {offsets = [0, 128], sizes = [8, 128], strides = [1, 1]} : vector<8x384xf32> to vector<8x128xf32>
    %100 = vector.extract_strided_slice %85 {offsets = [0, 128], sizes = [8, 128], strides = [1, 1]} : vector<8x384xf32> to vector<8x128xf32>
    %101 = arith.addf %99, %100 : vector<8x128xf32>
    %102 = arith.negf %101 : vector<8x128xf32>
    %103 = math.exp %102 : vector<8x128xf32>
    %cst_37 = arith.constant 1.000000e+00 : f32
    %104 = vector.broadcast %cst_37 : f32 to vector<8x128xf32>
    %105 = arith.addf %104, %103 : vector<8x128xf32>
    %106 = arith.divf %104, %105 : vector<8x128xf32>
    %107 = vector.extract_strided_slice %90 {offsets = [0, 256], sizes = [8, 128], strides = [1, 1]} : vector<8x384xf32> to vector<8x128xf32>
    %108 = vector.extract_strided_slice %85 {offsets = [0, 256], sizes = [8, 128], strides = [1, 1]} : vector<8x384xf32> to vector<8x128xf32>
    %109 = arith.addf %108, %9 : vector<8x128xf32>
    %110 = arith.mulf %98, %109 : vector<8x128xf32>
    %111 = arith.addf %107, %110 : vector<8x128xf32>
    %112 = math.tanh %111 : vector<8x128xf32>
    %cst_38 = arith.constant 1.000000e+00 : f32
    %113 = vector.broadcast %cst_38 : f32 to vector<8x128xf32>
    %114 = arith.subf %113, %106 : vector<8x128xf32>
    %115 = arith.mulf %114, %112 : vector<8x128xf32>
    %116 = arith.mulf %106, %51 : vector<8x128xf32>
    %117 = arith.addf %115, %116 : vector<8x128xf32>
    %cst_39 = arith.constant dense<0.000000e+00> : vector<8x384xf32>
    %118 = tpu.matmul %117, %2, %cst_39 {dimension_numbers = #tpu.dot_dimension_numbers<[1], [0], [0], [1], [0, 0, 1, 1], [], []>} : vector<8x128xf32>, vector<128x384xf32>, vector<8x384xf32> -> vector<8x384xf32>
    %119 = arith.addf %118, %6 : vector<8x384xf32>
    %120 = vector.extract_strided_slice %119 {offsets = [0, 0], sizes = [8, 128], strides = [1, 1]} : vector<8x384xf32> to vector<8x128xf32>
    %121 = vector.extract_strided_slice %86 {offsets = [0, 0], sizes = [8, 128], strides = [1, 1]} : vector<8x384xf32> to vector<8x128xf32>
    %122 = arith.addf %120, %121 : vector<8x128xf32>
    %123 = arith.negf %122 : vector<8x128xf32>
    %124 = math.exp %123 : vector<8x128xf32>
    %cst_40 = arith.constant 1.000000e+00 : f32
    %125 = vector.broadcast %cst_40 : f32 to vector<8x128xf32>
    %126 = arith.addf %125, %124 : vector<8x128xf32>
    %127 = arith.divf %125, %126 : vector<8x128xf32>
    %128 = vector.extract_strided_slice %119 {offsets = [0, 128], sizes = [8, 128], strides = [1, 1]} : vector<8x384xf32> to vector<8x128xf32>
    %129 = vector.extract_strided_slice %86 {offsets = [0, 128], sizes = [8, 128], strides = [1, 1]} : vector<8x384xf32> to vector<8x128xf32>
    %130 = arith.addf %128, %129 : vector<8x128xf32>
    %131 = arith.negf %130 : vector<8x128xf32>
    %132 = math.exp %131 : vector<8x128xf32>
    %cst_41 = arith.constant 1.000000e+00 : f32
    %133 = vector.broadcast %cst_41 : f32 to vector<8x128xf32>
    %134 = arith.addf %133, %132 : vector<8x128xf32>
    %135 = arith.divf %133, %134 : vector<8x128xf32>
    %136 = vector.extract_strided_slice %119 {offsets = [0, 256], sizes = [8, 128], strides = [1, 1]} : vector<8x384xf32> to vector<8x128xf32>
    %137 = vector.extract_strided_slice %86 {offsets = [0, 256], sizes = [8, 128], strides = [1, 1]} : vector<8x384xf32> to vector<8x128xf32>
    %138 = arith.addf %137, %9 : vector<8x128xf32>
    %139 = arith.mulf %127, %138 : vector<8x128xf32>
    %140 = arith.addf %136, %139 : vector<8x128xf32>
    %141 = math.tanh %140 : vector<8x128xf32>
    %cst_42 = arith.constant 1.000000e+00 : f32
    %142 = vector.broadcast %cst_42 : f32 to vector<8x128xf32>
    %143 = arith.subf %142, %135 : vector<8x128xf32>
    %144 = arith.mulf %143, %141 : vector<8x128xf32>
    %145 = arith.mulf %135, %80 : vector<8x128xf32>
    %146 = arith.addf %144, %145 : vector<8x128xf32>
    %147 = arith.index_cast %c1_i32 : i32 to index
    %c0_43 = arith.constant 0 : index
    %c0_44 = arith.constant 0 : index
    %148 = vector.load %arg8[%147, %c0_43, %c0_44] : memref<8x8x128xf32, #tpu.memory_space<vmem>>, vector<1x8x128xf32>
    %149 = vector.shape_cast %148 : vector<1x8x128xf32> to vector<8x128xf32>
    %150 = vector.shape_cast %146 : vector<8x128xf32> to vector<1x8x128xf32>
    tpu.vector_store %arg8[%147, %c0_43, %c0_44], %150 {strides = array<i32>} : memref<8x8x128xf32, #tpu.memory_space<vmem>>, vector<1x8x128xf32>,
    %c2_i32 = arith.constant 2 : i32
    %cst_45 = arith.constant dense<0.000000e+00> : vector<8x384xf32>
    %151 = tpu.matmul %117, %1, %cst_45 {dimension_numbers = #tpu.dot_dimension_numbers<[1], [0], [0], [1], [0, 0, 1, 1], [], []>} : vector<8x128xf32>, vector<128x384xf32>, vector<8x384xf32> -> vector<8x384xf32>
    %cst_46 = arith.constant dense<0.000000e+00> : vector<8x384xf32>
    %152 = tpu.matmul %146, %1, %cst_46 {dimension_numbers = #tpu.dot_dimension_numbers<[1], [0], [0], [1], [0, 0, 1, 1], [], []>} : vector<8x128xf32>, vector<128x384xf32>, vector<8x384xf32> -> vector<8x384xf32>
    %c8_i32_47 = arith.constant 8 : i32
    %153 = arith.muli %c2_i32, %c8_i32_47 : i32
    %154 = tpu.assume_multiple %153, 8 : i32
    %155 = arith.index_cast %154 : i32 to index
    %c0_48 = arith.constant 0 : index
    %156 = vector.load %arg10[%155, %c0_48] : memref<64x384xf32, #tpu.memory_space<vmem>>, vector<8x384xf32>
    %157 = vector.extract_strided_slice %156 {offsets = [0, 0], sizes = [8, 128], strides = [1, 1]} : vector<8x384xf32> to vector<8x128xf32>
    %158 = vector.extract_strided_slice %151 {offsets = [0, 0], sizes = [8, 128], strides = [1, 1]} : vector<8x384xf32> to vector<8x128xf32>
    %159 = arith.addf %157, %158 : vector<8x128xf32>
    %160 = arith.negf %159 : vector<8x128xf32>
    %161 = math.exp %160 : vector<8x128xf32>
    %cst_49 = arith.constant 1.000000e+00 : f32
    %162 = vector.broadcast %cst_49 : f32 to vector<8x128xf32>
    %163 = arith.addf %162, %161 : vector<8x128xf32>
    %164 = arith.divf %162, %163 : vector<8x128xf32>
    %165 = vector.extract_strided_slice %156 {offsets = [0, 128], sizes = [8, 128], strides = [1, 1]} : vector<8x384xf32> to vector<8x128xf32>
    %166 = vector.extract_strided_slice %151 {offsets = [0, 128], sizes = [8, 128], strides = [1, 1]} : vector<8x384xf32> to vector<8x128xf32>
    %167 = arith.addf %165, %166 : vector<8x128xf32>
    %168 = arith.negf %167 : vector<8x128xf32>
    %169 = math.exp %168 : vector<8x128xf32>
    %cst_50 = arith.constant 1.000000e+00 : f32
    %170 = vector.broadcast %cst_50 : f32 to vector<8x128xf32>
    %171 = arith.addf %170, %169 : vector<8x128xf32>
    %172 = arith.divf %170, %171 : vector<8x128xf32>
    %173 = vector.extract_strided_slice %156 {offsets = [0, 256], sizes = [8, 128], strides = [1, 1]} : vector<8x384xf32> to vector<8x128xf32>
    %174 = vector.extract_strided_slice %151 {offsets = [0, 256], sizes = [8, 128], strides = [1, 1]} : vector<8x384xf32> to vector<8x128xf32>
    %175 = arith.addf %174, %9 : vector<8x128xf32>
    %176 = arith.mulf %164, %175 : vector<8x128xf32>
    %177 = arith.addf %173, %176 : vector<8x128xf32>
    %178 = math.tanh %177 : vector<8x128xf32>
    %cst_51 = arith.constant 1.000000e+00 : f32
    %179 = vector.broadcast %cst_51 : f32 to vector<8x128xf32>
    %180 = arith.subf %179, %172 : vector<8x128xf32>
    %181 = arith.mulf %180, %178 : vector<8x128xf32>
    %182 = arith.mulf %172, %117 : vector<8x128xf32>
    %183 = arith.addf %181, %182 : vector<8x128xf32>
    %cst_52 = arith.constant dense<0.000000e+00> : vector<8x384xf32>
    %184 = tpu.matmul %183, %2, %cst_52 {dimension_numbers = #tpu.dot_dimension_numbers<[1], [0], [0], [1], [0, 0, 1, 1], [], []>} : vector<8x128xf32>, vector<128x384xf32>, vector<8x384xf32> -> vector<8x384xf32>
    %185 = arith.addf %184, %6 : vector<8x384xf32>
    %186 = vector.extract_strided_slice %185 {offsets = [0, 0], sizes = [8, 128], strides = [1, 1]} : vector<8x384xf32> to vector<8x128xf32>
    %187 = vector.extract_strided_slice %152 {offsets = [0, 0], sizes = [8, 128], strides = [1, 1]} : vector<8x384xf32> to vector<8x128xf32>
    %188 = arith.addf %186, %187 : vector<8x128xf32>
    %189 = arith.negf %188 : vector<8x128xf32>
    %190 = math.exp %189 : vector<8x128xf32>
    %cst_53 = arith.constant 1.000000e+00 : f32
    %191 = vector.broadcast %cst_53 : f32 to vector<8x128xf32>
    %192 = arith.addf %191, %190 : vector<8x128xf32>
    %193 = arith.divf %191, %192 : vector<8x128xf32>
    %194 = vector.extract_strided_slice %185 {offsets = [0, 128], sizes = [8, 128], strides = [1, 1]} : vector<8x384xf32> to vector<8x128xf32>
    %195 = vector.extract_strided_slice %152 {offsets = [0, 128], sizes = [8, 128], strides = [1, 1]} : vector<8x384xf32> to vector<8x128xf32>
    %196 = arith.addf %194, %195 : vector<8x128xf32>
    %197 = arith.negf %196 : vector<8x128xf32>
    %198 = math.exp %197 : vector<8x128xf32>
    %cst_54 = arith.constant 1.000000e+00 : f32
    %199 = vector.broadcast %cst_54 : f32 to vector<8x128xf32>
    %200 = arith.addf %199, %198 : vector<8x128xf32>
    %201 = arith.divf %199, %200 : vector<8x128xf32>
    %202 = vector.extract_strided_slice %185 {offsets = [0, 256], sizes = [8, 128], strides = [1, 1]} : vector<8x384xf32> to vector<8x128xf32>
    %203 = vector.extract_strided_slice %152 {offsets = [0, 256], sizes = [8, 128], strides = [1, 1]} : vector<8x384xf32> to vector<8x128xf32>
    %204 = arith.addf %203, %9 : vector<8x128xf32>
    %205 = arith.mulf %193, %204 : vector<8x128xf32>
    %206 = arith.addf %202, %205 : vector<8x128xf32>
    %207 = math.tanh %206 : vector<8x128xf32>
    %cst_55 = arith.constant 1.000000e+00 : f32
    %208 = vector.broadcast %cst_55 : f32 to vector<8x128xf32>
    %209 = arith.subf %208, %201 : vector<8x128xf32>
    %210 = arith.mulf %209, %207 : vector<8x128xf32>
    %211 = arith.mulf %201, %146 : vector<8x128xf32>
    %212 = arith.addf %210, %211 : vector<8x128xf32>
    %213 = arith.index_cast %c2_i32 : i32 to index
    %c0_56 = arith.constant 0 : index
    %c0_57 = arith.constant 0 : index
    %214 = vector.load %arg8[%213, %c0_56, %c0_57] : memref<8x8x128xf32, #tpu.memory_space<vmem>>, vector<1x8x128xf32>
    %215 = vector.shape_cast %214 : vector<1x8x128xf32> to vector<8x128xf32>
    %216 = vector.shape_cast %212 : vector<8x128xf32> to vector<1x8x128xf32>
    tpu.vector_store %arg8[%213, %c0_56, %c0_57], %216 {strides = array<i32>} : memref<8x8x128xf32, #tpu.memory_space<vmem>>, vector<1x8x128xf32>,
    %c3_i32 = arith.constant 3 : i32
    %cst_58 = arith.constant dense<0.000000e+00> : vector<8x384xf32>
    %217 = tpu.matmul %183, %1, %cst_58 {dimension_numbers = #tpu.dot_dimension_numbers<[1], [0], [0], [1], [0, 0, 1, 1], [], []>} : vector<8x128xf32>, vector<128x384xf32>, vector<8x384xf32> -> vector<8x384xf32>
    %cst_59 = arith.constant dense<0.000000e+00> : vector<8x384xf32>
    %218 = tpu.matmul %212, %1, %cst_59 {dimension_numbers = #tpu.dot_dimension_numbers<[1], [0], [0], [1], [0, 0, 1, 1], [], []>} : vector<8x128xf32>, vector<128x384xf32>, vector<8x384xf32> -> vector<8x384xf32>
    %c8_i32_60 = arith.constant 8 : i32
    %219 = arith.muli %c3_i32, %c8_i32_60 : i32
    %220 = tpu.assume_multiple %219, 8 : i32
    %221 = arith.index_cast %220 : i32 to index
    %c0_61 = arith.constant 0 : index
    %222 = vector.load %arg10[%221, %c0_61] : memref<64x384xf32, #tpu.memory_space<vmem>>, vector<8x384xf32>
    %223 = vector.extract_strided_slice %222 {offsets = [0, 0], sizes = [8, 128], strides = [1, 1]} : vector<8x384xf32> to vector<8x128xf32>
    %224 = vector.extract_strided_slice %217 {offsets = [0, 0], sizes = [8, 128], strides = [1, 1]} : vector<8x384xf32> to vector<8x128xf32>
    %225 = arith.addf %223, %224 : vector<8x128xf32>
    %226 = arith.negf %225 : vector<8x128xf32>
    %227 = math.exp %226 : vector<8x128xf32>
    %cst_62 = arith.constant 1.000000e+00 : f32
    %228 = vector.broadcast %cst_62 : f32 to vector<8x128xf32>
    %229 = arith.addf %228, %227 : vector<8x128xf32>
    %230 = arith.divf %228, %229 : vector<8x128xf32>
    %231 = vector.extract_strided_slice %222 {offsets = [0, 128], sizes = [8, 128], strides = [1, 1]} : vector<8x384xf32> to vector<8x128xf32>
    %232 = vector.extract_strided_slice %217 {offsets = [0, 128], sizes = [8, 128], strides = [1, 1]} : vector<8x384xf32> to vector<8x128xf32>
    %233 = arith.addf %231, %232 : vector<8x128xf32>
    %234 = arith.negf %233 : vector<8x128xf32>
    %235 = math.exp %234 : vector<8x128xf32>
    %cst_63 = arith.constant 1.000000e+00 : f32
    %236 = vector.broadcast %cst_63 : f32 to vector<8x128xf32>
    %237 = arith.addf %236, %235 : vector<8x128xf32>
    %238 = arith.divf %236, %237 : vector<8x128xf32>
    %239 = vector.extract_strided_slice %222 {offsets = [0, 256], sizes = [8, 128], strides = [1, 1]} : vector<8x384xf32> to vector<8x128xf32>
    %240 = vector.extract_strided_slice %217 {offsets = [0, 256], sizes = [8, 128], strides = [1, 1]} : vector<8x384xf32> to vector<8x128xf32>
    %241 = arith.addf %240, %9 : vector<8x128xf32>
    %242 = arith.mulf %230, %241 : vector<8x128xf32>
    %243 = arith.addf %239, %242 : vector<8x128xf32>
    %244 = math.tanh %243 : vector<8x128xf32>
    %cst_64 = arith.constant 1.000000e+00 : f32
    %245 = vector.broadcast %cst_64 : f32 to vector<8x128xf32>
    %246 = arith.subf %245, %238 : vector<8x128xf32>
    %247 = arith.mulf %246, %244 : vector<8x128xf32>
    %248 = arith.mulf %238, %183 : vector<8x128xf32>
    %249 = arith.addf %247, %248 : vector<8x128xf32>
    %cst_65 = arith.constant dense<0.000000e+00> : vector<8x384xf32>
    %250 = tpu.matmul %249, %2, %cst_65 {dimension_numbers = #tpu.dot_dimension_numbers<[1], [0], [0], [1], [0, 0, 1, 1], [], []>} : vector<8x128xf32>, vector<128x384xf32>, vector<8x384xf32> -> vector<8x384xf32>
    %251 = arith.addf %250, %6 : vector<8x384xf32>
    %252 = vector.extract_strided_slice %251 {offsets = [0, 0], sizes = [8, 128], strides = [1, 1]} : vector<8x384xf32> to vector<8x128xf32>
    %253 = vector.extract_strided_slice %218 {offsets = [0, 0], sizes = [8, 128], strides = [1, 1]} : vector<8x384xf32> to vector<8x128xf32>
    %254 = arith.addf %252, %253 : vector<8x128xf32>
    %255 = arith.negf %254 : vector<8x128xf32>
    %256 = math.exp %255 : vector<8x128xf32>
    %cst_66 = arith.constant 1.000000e+00 : f32
    %257 = vector.broadcast %cst_66 : f32 to vector<8x128xf32>
    %258 = arith.addf %257, %256 : vector<8x128xf32>
    %259 = arith.divf %257, %258 : vector<8x128xf32>
    %260 = vector.extract_strided_slice %251 {offsets = [0, 128], sizes = [8, 128], strides = [1, 1]} : vector<8x384xf32> to vector<8x128xf32>
    %261 = vector.extract_strided_slice %218 {offsets = [0, 128], sizes = [8, 128], strides = [1, 1]} : vector<8x384xf32> to vector<8x128xf32>
    %262 = arith.addf %260, %261 : vector<8x128xf32>
    %263 = arith.negf %262 : vector<8x128xf32>
    %264 = math.exp %263 : vector<8x128xf32>
    %cst_67 = arith.constant 1.000000e+00 : f32
    %265 = vector.broadcast %cst_67 : f32 to vector<8x128xf32>
    %266 = arith.addf %265, %264 : vector<8x128xf32>
    %267 = arith.divf %265, %266 : vector<8x128xf32>
    %268 = vector.extract_strided_slice %251 {offsets = [0, 256], sizes = [8, 128], strides = [1, 1]} : vector<8x384xf32> to vector<8x128xf32>
    %269 = vector.extract_strided_slice %218 {offsets = [0, 256], sizes = [8, 128], strides = [1, 1]} : vector<8x384xf32> to vector<8x128xf32>
    %270 = arith.addf %269, %9 : vector<8x128xf32>
    %271 = arith.mulf %259, %270 : vector<8x128xf32>
    %272 = arith.addf %268, %271 : vector<8x128xf32>
    %273 = math.tanh %272 : vector<8x128xf32>
    %cst_68 = arith.constant 1.000000e+00 : f32
    %274 = vector.broadcast %cst_68 : f32 to vector<8x128xf32>
    %275 = arith.subf %274, %267 : vector<8x128xf32>
    %276 = arith.mulf %275, %273 : vector<8x128xf32>
    %277 = arith.mulf %267, %212 : vector<8x128xf32>
    %278 = arith.addf %276, %277 : vector<8x128xf32>
    %279 = arith.index_cast %c3_i32 : i32 to index
    %c0_69 = arith.constant 0 : index
    %c0_70 = arith.constant 0 : index
    %280 = vector.load %arg8[%279, %c0_69, %c0_70] : memref<8x8x128xf32, #tpu.memory_space<vmem>>, vector<1x8x128xf32>
    %281 = vector.shape_cast %280 : vector<1x8x128xf32> to vector<8x128xf32>
    %282 = vector.shape_cast %278 : vector<8x128xf32> to vector<1x8x128xf32>
    tpu.vector_store %arg8[%279, %c0_69, %c0_70], %282 {strides = array<i32>} : memref<8x8x128xf32, #tpu.memory_space<vmem>>, vector<1x8x128xf32>,
    %c4_i32 = arith.constant 4 : i32
    %cst_71 = arith.constant dense<0.000000e+00> : vector<8x384xf32>
    %283 = tpu.matmul %249, %1, %cst_71 {dimension_numbers = #tpu.dot_dimension_numbers<[1], [0], [0], [1], [0, 0, 1, 1], [], []>} : vector<8x128xf32>, vector<128x384xf32>, vector<8x384xf32> -> vector<8x384xf32>
    %cst_72 = arith.constant dense<0.000000e+00> : vector<8x384xf32>
    %284 = tpu.matmul %278, %1, %cst_72 {dimension_numbers = #tpu.dot_dimension_numbers<[1], [0], [0], [1], [0, 0, 1, 1], [], []>} : vector<8x128xf32>, vector<128x384xf32>, vector<8x384xf32> -> vector<8x384xf32>
    %c8_i32_73 = arith.constant 8 : i32
    %285 = arith.muli %c4_i32, %c8_i32_73 : i32
    %286 = tpu.assume_multiple %285, 8 : i32
    %287 = arith.index_cast %286 : i32 to index
    %c0_74 = arith.constant 0 : index
    %288 = vector.load %arg10[%287, %c0_74] : memref<64x384xf32, #tpu.memory_space<vmem>>, vector<8x384xf32>
    %289 = vector.extract_strided_slice %288 {offsets = [0, 0], sizes = [8, 128], strides = [1, 1]} : vector<8x384xf32> to vector<8x128xf32>
    %290 = vector.extract_strided_slice %283 {offsets = [0, 0], sizes = [8, 128], strides = [1, 1]} : vector<8x384xf32> to vector<8x128xf32>
    %291 = arith.addf %289, %290 : vector<8x128xf32>
    %292 = arith.negf %291 : vector<8x128xf32>
    %293 = math.exp %292 : vector<8x128xf32>
    %cst_75 = arith.constant 1.000000e+00 : f32
    %294 = vector.broadcast %cst_75 : f32 to vector<8x128xf32>
    %295 = arith.addf %294, %293 : vector<8x128xf32>
    %296 = arith.divf %294, %295 : vector<8x128xf32>
    %297 = vector.extract_strided_slice %288 {offsets = [0, 128], sizes = [8, 128], strides = [1, 1]} : vector<8x384xf32> to vector<8x128xf32>
    %298 = vector.extract_strided_slice %283 {offsets = [0, 128], sizes = [8, 128], strides = [1, 1]} : vector<8x384xf32> to vector<8x128xf32>
    %299 = arith.addf %297, %298 : vector<8x128xf32>
    %300 = arith.negf %299 : vector<8x128xf32>
    %301 = math.exp %300 : vector<8x128xf32>
    %cst_76 = arith.constant 1.000000e+00 : f32
    %302 = vector.broadcast %cst_76 : f32 to vector<8x128xf32>
    %303 = arith.addf %302, %301 : vector<8x128xf32>
    %304 = arith.divf %302, %303 : vector<8x128xf32>
    %305 = vector.extract_strided_slice %288 {offsets = [0, 256], sizes = [8, 128], strides = [1, 1]} : vector<8x384xf32> to vector<8x128xf32>
    %306 = vector.extract_strided_slice %283 {offsets = [0, 256], sizes = [8, 128], strides = [1, 1]} : vector<8x384xf32> to vector<8x128xf32>
    %307 = arith.addf %306, %9 : vector<8x128xf32>
    %308 = arith.mulf %296, %307 : vector<8x128xf32>
    %309 = arith.addf %305, %308 : vector<8x128xf32>
    %310 = math.tanh %309 : vector<8x128xf32>
    %cst_77 = arith.constant 1.000000e+00 : f32
    %311 = vector.broadcast %cst_77 : f32 to vector<8x128xf32>
    %312 = arith.subf %311, %304 : vector<8x128xf32>
    %313 = arith.mulf %312, %310 : vector<8x128xf32>
    %314 = arith.mulf %304, %249 : vector<8x128xf32>
    %315 = arith.addf %313, %314 : vector<8x128xf32>
    %cst_78 = arith.constant dense<0.000000e+00> : vector<8x384xf32>
    %316 = tpu.matmul %315, %2, %cst_78 {dimension_numbers = #tpu.dot_dimension_numbers<[1], [0], [0], [1], [0, 0, 1, 1], [], []>} : vector<8x128xf32>, vector<128x384xf32>, vector<8x384xf32> -> vector<8x384xf32>
    %317 = arith.addf %316, %6 : vector<8x384xf32>
    %318 = vector.extract_strided_slice %317 {offsets = [0, 0], sizes = [8, 128], strides = [1, 1]} : vector<8x384xf32> to vector<8x128xf32>
    %319 = vector.extract_strided_slice %284 {offsets = [0, 0], sizes = [8, 128], strides = [1, 1]} : vector<8x384xf32> to vector<8x128xf32>
    %320 = arith.addf %318, %319 : vector<8x128xf32>
    %321 = arith.negf %320 : vector<8x128xf32>
    %322 = math.exp %321 : vector<8x128xf32>
    %cst_79 = arith.constant 1.000000e+00 : f32
    %323 = vector.broadcast %cst_79 : f32 to vector<8x128xf32>
    %324 = arith.addf %323, %322 : vector<8x128xf32>
    %325 = arith.divf %323, %324 : vector<8x128xf32>
    %326 = vector.extract_strided_slice %317 {offsets = [0, 128], sizes = [8, 128], strides = [1, 1]} : vector<8x384xf32> to vector<8x128xf32>
    %327 = vector.extract_strided_slice %284 {offsets = [0, 128], sizes = [8, 128], strides = [1, 1]} : vector<8x384xf32> to vector<8x128xf32>
    %328 = arith.addf %326, %327 : vector<8x128xf32>
    %329 = arith.negf %328 : vector<8x128xf32>
    %330 = math.exp %329 : vector<8x128xf32>
    %cst_80 = arith.constant 1.000000e+00 : f32
    %331 = vector.broadcast %cst_80 : f32 to vector<8x128xf32>
    %332 = arith.addf %331, %330 : vector<8x128xf32>
    %333 = arith.divf %331, %332 : vector<8x128xf32>
    %334 = vector.extract_strided_slice %317 {offsets = [0, 256], sizes = [8, 128], strides = [1, 1]} : vector<8x384xf32> to vector<8x128xf32>
    %335 = vector.extract_strided_slice %284 {offsets = [0, 256], sizes = [8, 128], strides = [1, 1]} : vector<8x384xf32> to vector<8x128xf32>
    %336 = arith.addf %335, %9 : vector<8x128xf32>
    %337 = arith.mulf %325, %336 : vector<8x128xf32>
    %338 = arith.addf %334, %337 : vector<8x128xf32>
    %339 = math.tanh %338 : vector<8x128xf32>
    %cst_81 = arith.constant 1.000000e+00 : f32
    %340 = vector.broadcast %cst_81 : f32 to vector<8x128xf32>
    %341 = arith.subf %340, %333 : vector<8x128xf32>
    %342 = arith.mulf %341, %339 : vector<8x128xf32>
    %343 = arith.mulf %333, %278 : vector<8x128xf32>
    %344 = arith.addf %342, %343 : vector<8x128xf32>
    %345 = arith.index_cast %c4_i32 : i32 to index
    %c0_82 = arith.constant 0 : index
    %c0_83 = arith.constant 0 : index
    %346 = vector.load %arg8[%345, %c0_82, %c0_83] : memref<8x8x128xf32, #tpu.memory_space<vmem>>, vector<1x8x128xf32>
    %347 = vector.shape_cast %346 : vector<1x8x128xf32> to vector<8x128xf32>
    %348 = vector.shape_cast %344 : vector<8x128xf32> to vector<1x8x128xf32>
    tpu.vector_store %arg8[%345, %c0_82, %c0_83], %348 {strides = array<i32>} : memref<8x8x128xf32, #tpu.memory_space<vmem>>, vector<1x8x128xf32>,
    %c5_i32 = arith.constant 5 : i32
    %cst_84 = arith.constant dense<0.000000e+00> : vector<8x384xf32>
    %349 = tpu.matmul %315, %1, %cst_84 {dimension_numbers = #tpu.dot_dimension_numbers<[1], [0], [0], [1], [0, 0, 1, 1], [], []>} : vector<8x128xf32>, vector<128x384xf32>, vector<8x384xf32> -> vector<8x384xf32>
    %cst_85 = arith.constant dense<0.000000e+00> : vector<8x384xf32>
    %350 = tpu.matmul %344, %1, %cst_85 {dimension_numbers = #tpu.dot_dimension_numbers<[1], [0], [0], [1], [0, 0, 1, 1], [], []>} : vector<8x128xf32>, vector<128x384xf32>, vector<8x384xf32> -> vector<8x384xf32>
    %c8_i32_86 = arith.constant 8 : i32
    %351 = arith.muli %c5_i32, %c8_i32_86 : i32
    %352 = tpu.assume_multiple %351, 8 : i32
    %353 = arith.index_cast %352 : i32 to index
    %c0_87 = arith.constant 0 : index
    %354 = vector.load %arg10[%353, %c0_87] : memref<64x384xf32, #tpu.memory_space<vmem>>, vector<8x384xf32>
    %355 = vector.extract_strided_slice %354 {offsets = [0, 0], sizes = [8, 128], strides = [1, 1]} : vector<8x384xf32> to vector<8x128xf32>
    %356 = vector.extract_strided_slice %349 {offsets = [0, 0], sizes = [8, 128], strides = [1, 1]} : vector<8x384xf32> to vector<8x128xf32>
    %357 = arith.addf %355, %356 : vector<8x128xf32>
    %358 = arith.negf %357 : vector<8x128xf32>
    %359 = math.exp %358 : vector<8x128xf32>
    %cst_88 = arith.constant 1.000000e+00 : f32
    %360 = vector.broadcast %cst_88 : f32 to vector<8x128xf32>
    %361 = arith.addf %360, %359 : vector<8x128xf32>
    %362 = arith.divf %360, %361 : vector<8x128xf32>
    %363 = vector.extract_strided_slice %354 {offsets = [0, 128], sizes = [8, 128], strides = [1, 1]} : vector<8x384xf32> to vector<8x128xf32>
    %364 = vector.extract_strided_slice %349 {offsets = [0, 128], sizes = [8, 128], strides = [1, 1]} : vector<8x384xf32> to vector<8x128xf32>
    %365 = arith.addf %363, %364 : vector<8x128xf32>
    %366 = arith.negf %365 : vector<8x128xf32>
    %367 = math.exp %366 : vector<8x128xf32>
    %cst_89 = arith.constant 1.000000e+00 : f32
    %368 = vector.broadcast %cst_89 : f32 to vector<8x128xf32>
    %369 = arith.addf %368, %367 : vector<8x128xf32>
    %370 = arith.divf %368, %369 : vector<8x128xf32>
    %371 = vector.extract_strided_slice %354 {offsets = [0, 256], sizes = [8, 128], strides = [1, 1]} : vector<8x384xf32> to vector<8x128xf32>
    %372 = vector.extract_strided_slice %349 {offsets = [0, 256], sizes = [8, 128], strides = [1, 1]} : vector<8x384xf32> to vector<8x128xf32>
    %373 = arith.addf %372, %9 : vector<8x128xf32>
    %374 = arith.mulf %362, %373 : vector<8x128xf32>
    %375 = arith.addf %371, %374 : vector<8x128xf32>
    %376 = math.tanh %375 : vector<8x128xf32>
    %cst_90 = arith.constant 1.000000e+00 : f32
    %377 = vector.broadcast %cst_90 : f32 to vector<8x128xf32>
    %378 = arith.subf %377, %370 : vector<8x128xf32>
    %379 = arith.mulf %378, %376 : vector<8x128xf32>
    %380 = arith.mulf %370, %315 : vector<8x128xf32>
    %381 = arith.addf %379, %380 : vector<8x128xf32>
    %cst_91 = arith.constant dense<0.000000e+00> : vector<8x384xf32>
    %382 = tpu.matmul %381, %2, %cst_91 {dimension_numbers = #tpu.dot_dimension_numbers<[1], [0], [0], [1], [0, 0, 1, 1], [], []>} : vector<8x128xf32>, vector<128x384xf32>, vector<8x384xf32> -> vector<8x384xf32>
    %383 = arith.addf %382, %6 : vector<8x384xf32>
    %384 = vector.extract_strided_slice %383 {offsets = [0, 0], sizes = [8, 128], strides = [1, 1]} : vector<8x384xf32> to vector<8x128xf32>
    %385 = vector.extract_strided_slice %350 {offsets = [0, 0], sizes = [8, 128], strides = [1, 1]} : vector<8x384xf32> to vector<8x128xf32>
    %386 = arith.addf %384, %385 : vector<8x128xf32>
    %387 = arith.negf %386 : vector<8x128xf32>
    %388 = math.exp %387 : vector<8x128xf32>
    %cst_92 = arith.constant 1.000000e+00 : f32
    %389 = vector.broadcast %cst_92 : f32 to vector<8x128xf32>
    %390 = arith.addf %389, %388 : vector<8x128xf32>
    %391 = arith.divf %389, %390 : vector<8x128xf32>
    %392 = vector.extract_strided_slice %383 {offsets = [0, 128], sizes = [8, 128], strides = [1, 1]} : vector<8x384xf32> to vector<8x128xf32>
    %393 = vector.extract_strided_slice %350 {offsets = [0, 128], sizes = [8, 128], strides = [1, 1]} : vector<8x384xf32> to vector<8x128xf32>
    %394 = arith.addf %392, %393 : vector<8x128xf32>
    %395 = arith.negf %394 : vector<8x128xf32>
    %396 = math.exp %395 : vector<8x128xf32>
    %cst_93 = arith.constant 1.000000e+00 : f32
    %397 = vector.broadcast %cst_93 : f32 to vector<8x128xf32>
    %398 = arith.addf %397, %396 : vector<8x128xf32>
    %399 = arith.divf %397, %398 : vector<8x128xf32>
    %400 = vector.extract_strided_slice %383 {offsets = [0, 256], sizes = [8, 128], strides = [1, 1]} : vector<8x384xf32> to vector<8x128xf32>
    %401 = vector.extract_strided_slice %350 {offsets = [0, 256], sizes = [8, 128], strides = [1, 1]} : vector<8x384xf32> to vector<8x128xf32>
    %402 = arith.addf %401, %9 : vector<8x128xf32>
    %403 = arith.mulf %391, %402 : vector<8x128xf32>
    %404 = arith.addf %400, %403 : vector<8x128xf32>
    %405 = math.tanh %404 : vector<8x128xf32>
    %cst_94 = arith.constant 1.000000e+00 : f32
    %406 = vector.broadcast %cst_94 : f32 to vector<8x128xf32>
    %407 = arith.subf %406, %399 : vector<8x128xf32>
    %408 = arith.mulf %407, %405 : vector<8x128xf32>
    %409 = arith.mulf %399, %344 : vector<8x128xf32>
    %410 = arith.addf %408, %409 : vector<8x128xf32>
    %411 = arith.index_cast %c5_i32 : i32 to index
    %c0_95 = arith.constant 0 : index
    %c0_96 = arith.constant 0 : index
    %412 = vector.load %arg8[%411, %c0_95, %c0_96] : memref<8x8x128xf32, #tpu.memory_space<vmem>>, vector<1x8x128xf32>
    %413 = vector.shape_cast %412 : vector<1x8x128xf32> to vector<8x128xf32>
    %414 = vector.shape_cast %410 : vector<8x128xf32> to vector<1x8x128xf32>
    tpu.vector_store %arg8[%411, %c0_95, %c0_96], %414 {strides = array<i32>} : memref<8x8x128xf32, #tpu.memory_space<vmem>>, vector<1x8x128xf32>,
    %c6_i32 = arith.constant 6 : i32
    %cst_97 = arith.constant dense<0.000000e+00> : vector<8x384xf32>
    %415 = tpu.matmul %381, %1, %cst_97 {dimension_numbers = #tpu.dot_dimension_numbers<[1], [0], [0], [1], [0, 0, 1, 1], [], []>} : vector<8x128xf32>, vector<128x384xf32>, vector<8x384xf32> -> vector<8x384xf32>
    %cst_98 = arith.constant dense<0.000000e+00> : vector<8x384xf32>
    %416 = tpu.matmul %410, %1, %cst_98 {dimension_numbers = #tpu.dot_dimension_numbers<[1], [0], [0], [1], [0, 0, 1, 1], [], []>} : vector<8x128xf32>, vector<128x384xf32>, vector<8x384xf32> -> vector<8x384xf32>
    %c8_i32_99 = arith.constant 8 : i32
    %417 = arith.muli %c6_i32, %c8_i32_99 : i32
    %418 = tpu.assume_multiple %417, 8 : i32
    %419 = arith.index_cast %418 : i32 to index
    %c0_100 = arith.constant 0 : index
    %420 = vector.load %arg10[%419, %c0_100] : memref<64x384xf32, #tpu.memory_space<vmem>>, vector<8x384xf32>
    %421 = vector.extract_strided_slice %420 {offsets = [0, 0], sizes = [8, 128], strides = [1, 1]} : vector<8x384xf32> to vector<8x128xf32>
    %422 = vector.extract_strided_slice %415 {offsets = [0, 0], sizes = [8, 128], strides = [1, 1]} : vector<8x384xf32> to vector<8x128xf32>
    %423 = arith.addf %421, %422 : vector<8x128xf32>
    %424 = arith.negf %423 : vector<8x128xf32>
    %425 = math.exp %424 : vector<8x128xf32>
    %cst_101 = arith.constant 1.000000e+00 : f32
    %426 = vector.broadcast %cst_101 : f32 to vector<8x128xf32>
    %427 = arith.addf %426, %425 : vector<8x128xf32>
    %428 = arith.divf %426, %427 : vector<8x128xf32>
    %429 = vector.extract_strided_slice %420 {offsets = [0, 128], sizes = [8, 128], strides = [1, 1]} : vector<8x384xf32> to vector<8x128xf32>
    %430 = vector.extract_strided_slice %415 {offsets = [0, 128], sizes = [8, 128], strides = [1, 1]} : vector<8x384xf32> to vector<8x128xf32>
    %431 = arith.addf %429, %430 : vector<8x128xf32>
    %432 = arith.negf %431 : vector<8x128xf32>
    %433 = math.exp %432 : vector<8x128xf32>
    %cst_102 = arith.constant 1.000000e+00 : f32
    %434 = vector.broadcast %cst_102 : f32 to vector<8x128xf32>
    %435 = arith.addf %434, %433 : vector<8x128xf32>
    %436 = arith.divf %434, %435 : vector<8x128xf32>
    %437 = vector.extract_strided_slice %420 {offsets = [0, 256], sizes = [8, 128], strides = [1, 1]} : vector<8x384xf32> to vector<8x128xf32>
    %438 = vector.extract_strided_slice %415 {offsets = [0, 256], sizes = [8, 128], strides = [1, 1]} : vector<8x384xf32> to vector<8x128xf32>
    %439 = arith.addf %438, %9 : vector<8x128xf32>
    %440 = arith.mulf %428, %439 : vector<8x128xf32>
    %441 = arith.addf %437, %440 : vector<8x128xf32>
    %442 = math.tanh %441 : vector<8x128xf32>
    %cst_103 = arith.constant 1.000000e+00 : f32
    %443 = vector.broadcast %cst_103 : f32 to vector<8x128xf32>
    %444 = arith.subf %443, %436 : vector<8x128xf32>
    %445 = arith.mulf %444, %442 : vector<8x128xf32>
    %446 = arith.mulf %436, %381 : vector<8x128xf32>
    %447 = arith.addf %445, %446 : vector<8x128xf32>
    %cst_104 = arith.constant dense<0.000000e+00> : vector<8x384xf32>
    %448 = tpu.matmul %447, %2, %cst_104 {dimension_numbers = #tpu.dot_dimension_numbers<[1], [0], [0], [1], [0, 0, 1, 1], [], []>} : vector<8x128xf32>, vector<128x384xf32>, vector<8x384xf32> -> vector<8x384xf32>
    %449 = arith.addf %448, %6 : vector<8x384xf32>
    %450 = vector.extract_strided_slice %449 {offsets = [0, 0], sizes = [8, 128], strides = [1, 1]} : vector<8x384xf32> to vector<8x128xf32>
    %451 = vector.extract_strided_slice %416 {offsets = [0, 0], sizes = [8, 128], strides = [1, 1]} : vector<8x384xf32> to vector<8x128xf32>
    %452 = arith.addf %450, %451 : vector<8x128xf32>
    %453 = arith.negf %452 : vector<8x128xf32>
    %454 = math.exp %453 : vector<8x128xf32>
    %cst_105 = arith.constant 1.000000e+00 : f32
    %455 = vector.broadcast %cst_105 : f32 to vector<8x128xf32>
    %456 = arith.addf %455, %454 : vector<8x128xf32>
    %457 = arith.divf %455, %456 : vector<8x128xf32>
    %458 = vector.extract_strided_slice %449 {offsets = [0, 128], sizes = [8, 128], strides = [1, 1]} : vector<8x384xf32> to vector<8x128xf32>
    %459 = vector.extract_strided_slice %416 {offsets = [0, 128], sizes = [8, 128], strides = [1, 1]} : vector<8x384xf32> to vector<8x128xf32>
    %460 = arith.addf %458, %459 : vector<8x128xf32>
    %461 = arith.negf %460 : vector<8x128xf32>
    %462 = math.exp %461 : vector<8x128xf32>
    %cst_106 = arith.constant 1.000000e+00 : f32
    %463 = vector.broadcast %cst_106 : f32 to vector<8x128xf32>
    %464 = arith.addf %463, %462 : vector<8x128xf32>
    %465 = arith.divf %463, %464 : vector<8x128xf32>
    %466 = vector.extract_strided_slice %449 {offsets = [0, 256], sizes = [8, 128], strides = [1, 1]} : vector<8x384xf32> to vector<8x128xf32>
    %467 = vector.extract_strided_slice %416 {offsets = [0, 256], sizes = [8, 128], strides = [1, 1]} : vector<8x384xf32> to vector<8x128xf32>
    %468 = arith.addf %467, %9 : vector<8x128xf32>
    %469 = arith.mulf %457, %468 : vector<8x128xf32>
    %470 = arith.addf %466, %469 : vector<8x128xf32>
    %471 = math.tanh %470 : vector<8x128xf32>
    %cst_107 = arith.constant 1.000000e+00 : f32
    %472 = vector.broadcast %cst_107 : f32 to vector<8x128xf32>
    %473 = arith.subf %472, %465 : vector<8x128xf32>
    %474 = arith.mulf %473, %471 : vector<8x128xf32>
    %475 = arith.mulf %465, %410 : vector<8x128xf32>
    %476 = arith.addf %474, %475 : vector<8x128xf32>
    %477 = arith.index_cast %c6_i32 : i32 to index
    %c0_108 = arith.constant 0 : index
    %c0_109 = arith.constant 0 : index
    %478 = vector.load %arg8[%477, %c0_108, %c0_109] : memref<8x8x128xf32, #tpu.memory_space<vmem>>, vector<1x8x128xf32>
    %479 = vector.shape_cast %478 : vector<1x8x128xf32> to vector<8x128xf32>
    %480 = vector.shape_cast %476 : vector<8x128xf32> to vector<1x8x128xf32>
    tpu.vector_store %arg8[%477, %c0_108, %c0_109], %480 {strides = array<i32>} : memref<8x8x128xf32, #tpu.memory_space<vmem>>, vector<1x8x128xf32>,
    %c7_i32 = arith.constant 7 : i32
    %cst_110 = arith.constant dense<0.000000e+00> : vector<8x384xf32>
    %481 = tpu.matmul %447, %1, %cst_110 {dimension_numbers = #tpu.dot_dimension_numbers<[1], [0], [0], [1], [0, 0, 1, 1], [], []>} : vector<8x128xf32>, vector<128x384xf32>, vector<8x384xf32> -> vector<8x384xf32>
    %cst_111 = arith.constant dense<0.000000e+00> : vector<8x384xf32>
    %482 = tpu.matmul %476, %1, %cst_111 {dimension_numbers = #tpu.dot_dimension_numbers<[1], [0], [0], [1], [0, 0, 1, 1], [], []>} : vector<8x128xf32>, vector<128x384xf32>, vector<8x384xf32> -> vector<8x384xf32>
    %c8_i32_112 = arith.constant 8 : i32
    %483 = arith.muli %c7_i32, %c8_i32_112 : i32
    %484 = tpu.assume_multiple %483, 8 : i32
    %485 = arith.index_cast %484 : i32 to index
    %c0_113 = arith.constant 0 : index
    %486 = vector.load %arg10[%485, %c0_113] : memref<64x384xf32, #tpu.memory_space<vmem>>, vector<8x384xf32>
    %487 = vector.extract_strided_slice %486 {offsets = [0, 0], sizes = [8, 128], strides = [1, 1]} : vector<8x384xf32> to vector<8x128xf32>
    %488 = vector.extract_strided_slice %481 {offsets = [0, 0], sizes = [8, 128], strides = [1, 1]} : vector<8x384xf32> to vector<8x128xf32>
    %489 = arith.addf %487, %488 : vector<8x128xf32>
    %490 = arith.negf %489 : vector<8x128xf32>
    %491 = math.exp %490 : vector<8x128xf32>
    %cst_114 = arith.constant 1.000000e+00 : f32
    %492 = vector.broadcast %cst_114 : f32 to vector<8x128xf32>
    %493 = arith.addf %492, %491 : vector<8x128xf32>
    %494 = arith.divf %492, %493 : vector<8x128xf32>
    %495 = vector.extract_strided_slice %486 {offsets = [0, 128], sizes = [8, 128], strides = [1, 1]} : vector<8x384xf32> to vector<8x128xf32>
    %496 = vector.extract_strided_slice %481 {offsets = [0, 128], sizes = [8, 128], strides = [1, 1]} : vector<8x384xf32> to vector<8x128xf32>
    %497 = arith.addf %495, %496 : vector<8x128xf32>
    %498 = arith.negf %497 : vector<8x128xf32>
    %499 = math.exp %498 : vector<8x128xf32>
    %cst_115 = arith.constant 1.000000e+00 : f32
    %500 = vector.broadcast %cst_115 : f32 to vector<8x128xf32>
    %501 = arith.addf %500, %499 : vector<8x128xf32>
    %502 = arith.divf %500, %501 : vector<8x128xf32>
    %503 = vector.extract_strided_slice %486 {offsets = [0, 256], sizes = [8, 128], strides = [1, 1]} : vector<8x384xf32> to vector<8x128xf32>
    %504 = vector.extract_strided_slice %481 {offsets = [0, 256], sizes = [8, 128], strides = [1, 1]} : vector<8x384xf32> to vector<8x128xf32>
    %505 = arith.addf %504, %9 : vector<8x128xf32>
    %506 = arith.mulf %494, %505 : vector<8x128xf32>
    %507 = arith.addf %503, %506 : vector<8x128xf32>
    %508 = math.tanh %507 : vector<8x128xf32>
    %cst_116 = arith.constant 1.000000e+00 : f32
    %509 = vector.broadcast %cst_116 : f32 to vector<8x128xf32>
    %510 = arith.subf %509, %502 : vector<8x128xf32>
    %511 = arith.mulf %510, %508 : vector<8x128xf32>
    %512 = arith.mulf %502, %447 : vector<8x128xf32>
    %513 = arith.addf %511, %512 : vector<8x128xf32>
    %cst_117 = arith.constant dense<0.000000e+00> : vector<8x384xf32>
    %514 = tpu.matmul %513, %2, %cst_117 {dimension_numbers = #tpu.dot_dimension_numbers<[1], [0], [0], [1], [0, 0, 1, 1], [], []>} : vector<8x128xf32>, vector<128x384xf32>, vector<8x384xf32> -> vector<8x384xf32>
    %515 = arith.addf %514, %6 : vector<8x384xf32>
    %516 = vector.extract_strided_slice %515 {offsets = [0, 0], sizes = [8, 128], strides = [1, 1]} : vector<8x384xf32> to vector<8x128xf32>
    %517 = vector.extract_strided_slice %482 {offsets = [0, 0], sizes = [8, 128], strides = [1, 1]} : vector<8x384xf32> to vector<8x128xf32>
    %518 = arith.addf %516, %517 : vector<8x128xf32>
    %519 = arith.negf %518 : vector<8x128xf32>
    %520 = math.exp %519 : vector<8x128xf32>
    %cst_118 = arith.constant 1.000000e+00 : f32
    %521 = vector.broadcast %cst_118 : f32 to vector<8x128xf32>
    %522 = arith.addf %521, %520 : vector<8x128xf32>
    %523 = arith.divf %521, %522 : vector<8x128xf32>
    %524 = vector.extract_strided_slice %515 {offsets = [0, 128], sizes = [8, 128], strides = [1, 1]} : vector<8x384xf32> to vector<8x128xf32>
    %525 = vector.extract_strided_slice %482 {offsets = [0, 128], sizes = [8, 128], strides = [1, 1]} : vector<8x384xf32> to vector<8x128xf32>
    %526 = arith.addf %524, %525 : vector<8x128xf32>
    %527 = arith.negf %526 : vector<8x128xf32>
    %528 = math.exp %527 : vector<8x128xf32>
    %cst_119 = arith.constant 1.000000e+00 : f32
    %529 = vector.broadcast %cst_119 : f32 to vector<8x128xf32>
    %530 = arith.addf %529, %528 : vector<8x128xf32>
    %531 = arith.divf %529, %530 : vector<8x128xf32>
    %532 = vector.extract_strided_slice %515 {offsets = [0, 256], sizes = [8, 128], strides = [1, 1]} : vector<8x384xf32> to vector<8x128xf32>
    %533 = vector.extract_strided_slice %482 {offsets = [0, 256], sizes = [8, 128], strides = [1, 1]} : vector<8x384xf32> to vector<8x128xf32>
    %534 = arith.addf %533, %9 : vector<8x128xf32>
    %535 = arith.mulf %523, %534 : vector<8x128xf32>
    %536 = arith.addf %532, %535 : vector<8x128xf32>
    %537 = math.tanh %536 : vector<8x128xf32>
    %cst_120 = arith.constant 1.000000e+00 : f32
    %538 = vector.broadcast %cst_120 : f32 to vector<8x128xf32>
    %539 = arith.subf %538, %531 : vector<8x128xf32>
    %540 = arith.mulf %539, %537 : vector<8x128xf32>
    %541 = arith.mulf %531, %476 : vector<8x128xf32>
    %542 = arith.addf %540, %541 : vector<8x128xf32>
    %543 = arith.index_cast %c7_i32 : i32 to index
    %c0_121 = arith.constant 0 : index
    %c0_122 = arith.constant 0 : index
    %544 = vector.load %arg8[%543, %c0_121, %c0_122] : memref<8x8x128xf32, #tpu.memory_space<vmem>>, vector<1x8x128xf32>
    %545 = vector.shape_cast %544 : vector<1x8x128xf32> to vector<8x128xf32>
    %546 = vector.shape_cast %542 : vector<8x128xf32> to vector<1x8x128xf32>
    tpu.vector_store %arg8[%543, %c0_121, %c0_122], %546 {strides = array<i32>} : memref<8x8x128xf32, #tpu.memory_space<vmem>>, vector<1x8x128xf32>,
    %c8_i32_123 = arith.constant 8 : i32
    %c0_124 = arith.constant 0 : index
    %c0_125 = arith.constant 0 : index
    %c0_126 = arith.constant 0 : index
    %547 = vector.load %arg9[%c0_124, %c0_125, %c0_126] : memref<2x8x128xf32, #tpu.memory_space<vmem>>, vector<1x8x128xf32>
    %548 = vector.shape_cast %547 : vector<1x8x128xf32> to vector<8x128xf32>
    %549 = vector.shape_cast %513 : vector<8x128xf32> to vector<1x8x128xf32>
    tpu.vector_store %arg9[%c0_124, %c0_125, %c0_126], %549 {strides = array<i32>} : memref<2x8x128xf32, #tpu.memory_space<vmem>>, vector<1x8x128xf32>,
    %c1_127 = arith.constant 1 : index
    %c0_128 = arith.constant 0 : index
    %c0_129 = arith.constant 0 : index
    %550 = vector.load %arg9[%c1_127, %c0_128, %c0_129] : memref<2x8x128xf32, #tpu.memory_space<vmem>>, vector<1x8x128xf32>
    %551 = vector.shape_cast %550 : vector<1x8x128xf32> to vector<8x128xf32>
    %552 = vector.shape_cast %542 : vector<8x128xf32> to vector<1x8x128xf32>
    tpu.vector_store %arg9[%c1_127, %c0_128, %c0_129], %552 {strides = array<i32>} : memref<2x8x128xf32, #tpu.memory_space<vmem>>, vector<1x8x128xf32>,
    return
  }
}

</mosaic_0001>

<bundles_post_ra>
// kernel: tpu_custom_call.1
= control target key start
LH: loop header
LB: loop body
LE: loop exit
PB: predicated region body
PF: predicated region fallthrough
CT: control target
= control target key end

     0   :  { %15 = vsyncpa [#allocation4], 0  ;;  %s8737_s0 = inlined_call_operand.vmem [shape: f32[64,16], index: 0, kind: input, shape index: {}]   ;;  %s8738_s1 = inlined_call_operand.hbm [shape: f32[2,8,128], index: 1, kind: input, shape index: {}, may-alias: {1,9}]   ;;  %s8739_s2 = inlined_call_operand.vmem [shape: f32[16,384], index: 2, kind: input, shape index: {}]   ;;  %s8740_s3 = inlined_call_operand.hbm [shape: f32[128,384], index: 3, kind: input, shape index: {}]   ;;  %s8741_s4 = inlined_call_operand.hbm [shape: f32[128,384], index: 4, kind: input, shape index: {}]   ;;  %s8742_s5 = inlined_call_operand.vmem [shape: f32[1,384], index: 5, kind: input, shape index: {}]   ;;  %s8743_s6 = inlined_call_operand.vmem [shape: f32[1,384], index: 6, kind: input, shape index: {}]   ;;  %s8744_s7 = inlined_call_operand.vmem [shape: f32[1,128], index: 7, kind: input, shape index: {}]   ;;  %s8745_s8 = inlined_call_operand.hbm [shape: f32[8,8,128], index: 8, kind: output, shape index: {0}]   ;;  %s8746_s9 = inlined_call_operand.hbm [shape: f32[2,8,128], index: 9, kind: output, shape index: {1}, may-alias: {1,9}]  }
   0x1   :  { %16 = vsyncpa [#allocation7], 0 }
   0x2   :  { %17 = vsyncpa [#allocation5], 0 }
   0x3   :  { %18 = vsyncpa [#allocation11], 0  ;;  %s7369_s30 = smov [#allocation6]   ;;  %s7251_s13 = scalar_lea.hbm %s8740_s3, 6144 }
   0x4   :  { %s40_s10 = sshll.u32 %s7369_s30, 4  ;;  %p7252_p0 = scmp.ne.s32.totalorder %s8740_s3, %s7251_s13  ;;  %s41_s10 = int_to_ptr.vmem [resolvable:$true] %s40_s10 }
   0x5   :  { %p7255_p1 = scmp.lt.u32.totalorder %s7251_s13, %s8740_s3 }
   0x7   :  { %p7257_p2 = pnand %p7255_p1, %p7252_p0 }
   0x9   :  { %7260 = shalt.err (!%p7257_p2)
}
   0xa   :  { %s7261_s18 = scalar_lea.vmem %s41_s10, 6144  ;;  %p7266_p4 = scmp.lt.s32.totalorder %s41_s10, %s41_s10 }
   0xb   :  { %p7262_p3 = scmp.ne.s32.totalorder %s41_s10, %s7261_s18  ;;  %p7267_p5 = scmp.lt.s32.totalorder %s7261_s18, %s7261_s18 }
   0xd   :  { %p7268_p6 = por %p7267_p5, %p7266_p4 }
   0xf   :  { %p7269_p7 = pnand %p7268_p6, %p7262_p3 }
  0x11   :  { %7272 = shalt.err (!%p7269_p7)
}
  0x12   :  { %s7370_s19 = smov 384   ;;  %s7371_s20 = smov 24  }
  0x13   :  { %46 = dma.hbm_to_vmem [thread:$0]  %s8740_s3, 6144, %s41_s10, [#allocation7], %s7370_s19, %s7370_s19, %s7371_s20  }
  0x14   :  { %s7372_s23 = smov [#allocation3]   ;;  %s7273_s27 = scalar_lea.hbm %s8738_s1, 256 }
  0x15   :  { %s26_s24 = sshll.u32 %s7372_s23, 4  ;;  %p7274_p8 = scmp.ne.s32.totalorder %s8738_s1, %s7273_s27  ;;  %s27_s24 = int_to_ptr.vmem [resolvable:$true] %s26_s24 }
  0x16   :  { %p7277_p9 = scmp.lt.u32.totalorder %s7273_s27, %s8738_s1 }
  0x18   :  { %p7279_p10 = pnand %p7277_p9, %p7274_p8 }
  0x1a   :  { %7282 = shalt.err (!%p7279_p10)
}
  0x1b   :  { %s7283_s12 = scalar_lea.vmem %s27_s24, 256  ;;  %p7288_p12 = scmp.lt.s32.totalorder %s27_s24, %s27_s24 }
  0x1c   :  { %p7284_p11 = scmp.ne.s32.totalorder %s27_s24, %s7283_s12  ;;  %p7289_p13 = scmp.lt.s32.totalorder %s7283_s12, %s7283_s12 }
  0x1e   :  { %p7290_p0 = por %p7289_p13, %p7288_p12 }
  0x20   :  { %p7291_p1 = pnand %p7290_p0, %p7284_p11 }
  0x22   :  { %7294 = shalt.err (!%p7291_p1)
}
  0x23   :  { %s7373_s3 = smov 128   ;;  %s7374_s10 = smov 8  }
  0x24   :  { %32 = dma.hbm_to_vmem [thread:$0]  %s8738_s1, 256, %s27_s24, [#allocation4], %s7373_s3, %s7373_s3, %s7374_s10  }
  0x25   :  { %s7375_s15 = smov [#allocation8]   ;;  %s7295_s21 = scalar_lea.hbm %s8741_s4, 6144 }
  0x26   :  { %s52_s16 = sshll.u32 %s7375_s15, 4  ;;  %p7296_p2 = scmp.ne.s32.totalorder %s8741_s4, %s7295_s21  ;;  %s53_s16 = int_to_ptr.vmem [resolvable:$true] %s52_s16 }
  0x27   :  { %p7299_p3 = scmp.lt.u32.totalorder %s7295_s21, %s8741_s4 }
  0x29   :  { %p7301_p4 = pnand %p7299_p3, %p7296_p2 }
  0x2b   :  { %7304 = shalt.err (!%p7301_p4)
}
  0x2c   :  { %s7305_s27 = scalar_lea.vmem %s53_s16, 6144  ;;  %p7310_p6 = scmp.lt.s32.totalorder %s53_s16, %s53_s16 }
  0x2d   :  { %p7306_p5 = scmp.ne.s32.totalorder %s53_s16, %s7305_s27  ;;  %p7311_p7 = scmp.lt.s32.totalorder %s7305_s27, %s7305_s27 }
  0x2f   :  { %p7312_p8 = por %p7311_p7, %p7310_p6 }
  0x31   :  { %p7313_p9 = pnand %p7312_p8, %p7306_p5 }
  0x33   :  { %7316 = shalt.err (!%p7313_p9)
}
  0x34   :  { %58 = dma.hbm_to_vmem [thread:$0]  %s8741_s4, 6144, %s53_s16, [#allocation7], %s7370_s19, %s7370_s19, %s7371_s20  }
  0x35   :  { %7361 = dma.done.wait [#allocation4], 256  }
  0x36   :  { %7362 = vsyncadd [#allocation4], 4294967040 }
  0x37   :  { %7363 = dma.done.wait [#allocation7], 12288  }
  0x38   :  { %7364 = vsyncadd [#allocation7], 4294955008  ;;  %v8747_v0 = vmov 0.0   ;;  %v75_v1 = vld [vmem:[%s8739_s2 + $0x8] sm:$0xff]  ;;  %v78_v2 = vld [vmem:[%s8739_s2 + $0x20] sm:$0xff]  ;;  %vm225_vm0 = vcmask 130048  }
  0x39   :  { %314 = vmatprep.mubr.f32.mxu0 %v8747_v0  ;;  %v74_v3 = vld [vmem:[%s8739_s2] sm:$0xff]  ;;  %v5661_v4 = vpack.c.bf16 %v78_v2, %v75_v1  ;;  %v77_v5 = vld [vmem:[%s8739_s2 + $0x18] sm:$0xff]  ;;  %v84_v9 = vld [vmem:[#allocation6 + $0x20] sm:$0xff]  ;;  %v8749_v48 = vmov 0.0|0.0   ;;  %vm7378_vm1 = vmmov 0   ;;  %s7380_s18 = smov [#allocation10]  }
  0x3a   :  { %v201_v6 = vld [vmem:[%s8737_s0] sm:$0xff]  ;;  %v81_v7 = vld [vmem:[#allocation6 + $0x8] sm:$0xff]  ;;  %v5663_v8 = vpack.c.bf16 %v77_v5, %v74_v3  ;;  %v80_v10 = vld [vmem:[#allocation6] sm:$0xff]  ;;  %s4314_s21 = sshll.u32 %s7380_s18, 4  ;;  %s8700_s21 = int_to_ptr.vmem [resolvable:$true] %s4314_s21 }
  0x3b   :  { %v83_v11 = vld [vmem:[#allocation6 + $0x18] sm:$0xff]  ;;  %4809 = vmatprep.mubr.msk.f32.mxu1 %vm225_vm0, %v201_v6  ;;  %5662 = vmatprep.subr.bf16.mxu0 %v5661_v4  ;;  %v7493_v12 = vpack.c.bf16 %v84_v9, %v81_v7  ;;  %v90_v14 = vld [vmem:[#allocation6 + $0x50] sm:$0xff]  ;;  %v89_v18 = vld [vmem:[#allocation6 + $0x48] sm:$0xff] }
  0x3c   :  { %v87_v13 = vld [vmem:[#allocation6 + $0x38] sm:$0xff]  ;;  %5664 = vmatpush1.bf16.msra.mxu0 %v5663_v8  ;;  %v7495_v15 = vpack.c.bf16 %v83_v11, %v80_v10  ;;  %v86_v17 = vld [vmem:[#allocation6 + $0x30] sm:$0xff]  ;;  %v93_v19 = vld [vmem:[#allocation6 + $0x68] sm:$0xff] }
  0x3d   :  { %5670 = vmatprep.subr.bf16.mxu0 %v7493_v12  ;;  %v7498_v16 = vpack.c.bf16 %v90_v14, %v87_v13  ;;  %v96_v20 = vld [vmem:[#allocation6 + $0x80] sm:$0xff]  ;;  %v202_v21 = vld [vmem:[%s8737_s0 + $0x8] sm:$0xff]  ;;  %v7506_v22 = vpack.c.bf16 %v89_v18, %v86_v17  ;;  %v102_v27 = vld [vmem:[#allocation6 + $0xb0] sm:$0xff] }
  0x3e   :  { %v7509_v23 = vpack.c.bf16 %v96_v20, %v93_v19  ;;  %v92_v24 = vld [vmem:[#allocation6 + $0x60] sm:$0xff]  ;;  %v95_v25 = vld [vmem:[#allocation6 + $0x78] sm:$0xff]  ;;  %v98_v34 = vld [vmem:[#allocation6 + $0x90] sm:$0xff] }
  0x3f   :  { %4339 = vmatmul.mubr.msk.f32.vlgmr.msra.gmra.mrb[0].mxu0 %vm225_vm0, %v201_v6  ;;  %v99_v26 = vld [vmem:[#allocation6 + $0x98] sm:$0xff]  ;;  %v76_v28 = vld [vmem:[%s8739_s2 + $0x10] sm:$0xff]  ;;  %v7523_v31 = vpack.c.bf16 %v95_v25, %v92_v24  ;;  %v101_v35 = vld [vmem:[#allocation6 + $0xa8] sm:$0xff] }
  0x40   :  { %5672 = vmatpush1.bf16.msra.mxu0 %v7495_v15  ;;  %320 = vmatprep.mubr.f32.mxu0 %v8747_v0  ;;  %v79_v29 = vld [vmem:[%s8739_s2 + $0x28] sm:$0xff]  ;;  %v203_v30 = vld [vmem:[%s8737_s0 + $0x10] sm:$0xff]  ;;  %v7526_v33 = vpack.c.bf16 %v102_v27, %v99_v26  ;;  %v82_v36 = vld [vmem:[#allocation6 + $0x10] sm:$0xff]  ;;  %v7536_v42 = vpack.c.bf16 %v101_v35, %v98_v34 }
  0x41   :  { %5674 = vmatprep.subr.bf16.mxu0 %v7498_v16  ;;  %v5665_v32 = vpack.c.bf16 %v79_v29, %v76_v28  ;;  %v105_v37 = vld [vmem:[#allocation6 + $0xc8] sm:$0xff]  ;;  %v108_v38 = vld [vmem:[#allocation6 + $0xe0] sm:$0xff]  ;;  %v91_v44 = vld [vmem:[#allocation6 + $0x58] sm:$0xff] }
  0x42   :  { %v85_v39 = vld [vmem:[#allocation6 + $0x28] sm:$0xff]  ;;  %v88_v43 = vld [vmem:[#allocation6 + $0x40] sm:$0xff]  ;;  %v7539_v45 = vpack.c.bf16 %v108_v38, %v105_v37  ;;  %v107_v47 = vld [vmem:[#allocation6 + $0xd8] sm:$0xff] }
  0x43   :  { %4340 = vmatmul.mubr.msk.f32.gmra.mrb[2].mxu0 %vm225_vm0, %v202_v21  ;;  %5666 = vmatprep.subr.bf16.mxu1 %v5665_v32  ;;  %v7529_v40 = vpack.c.bf16 %v85_v39, %v82_v36  ;;  %v204_v41 = vld [vmem:[%s8737_s0 + $0x18] sm:$0xff]  ;;  %v104_v46 = vld [vmem:[#allocation6 + $0xc0] sm:$0xff]  ;;  %v111_v49 = vld [vmem:[#allocation6 + $0xf8] sm:$0xff]  ;;  %v7545_v51 = vpack.c.bf16 %v91_v44, %v88_v43 }
  0x44   :  { %5676 = vmatpush1.bf16.msra.mxu0 %v7506_v22  ;;  %326 = vmatprep.mubr.f32.mxu0 %v8747_v0  ;;  %v114_v50 = vld [vmem:[#allocation6 + $0x110] sm:$0xff]  ;;  %v7552_v53 = vpack.c.bf16 %v107_v47, %v104_v46  ;;  %v97_v55 = vld [vmem:[#allocation6 + $0x88] sm:$0xff]  ;;  %v120_v60 = vld [vmem:[#allocation6 + $0x140] sm:$0xff] }
  0x45   :  { %5678 = vmatprep.subr.bf16.mxu0 %v7509_v23  ;;  %5668 = vmatpush3.bf16.msra.mxu1 %v5665_v32  ;;  %v205_v52 = vld [vmem:[%s8737_s0 + $0x20] sm:$0xff]  ;;  %v7555_v56 = vpack.c.bf16 %v114_v50, %v111_v49  ;;  %v113_v58 = vld [vmem:[#allocation6 + $0x108] sm:$0xff]  ;;  %v206_v62 = vld [vmem:[%s8737_s0 + $0x28] sm:$0xff] }
  0x46   :  { %5701 = vmatprep.subr.bf16.mxu1 %v8749_v48  ;;  %v94_v54 = vld [vmem:[#allocation6 + $0x70] sm:$0xff]  ;;  %v117_v59 = vld [vmem:[#allocation6 + $0x128] sm:$0xff]  ;;  %v100_v1 = vld [vmem:[#allocation6 + $0xa0] sm:$0xff] }
  0x47   :  { %4341 = vmatmul.mubr.msk.f32.gmra.mrb[4].mxu0 %vm225_vm0, %v203_v30  ;;  %8838 = vst [vmem:[#allocation16_spill] sm:$0xff] %v7555_v56  ;;  %v110_v57 = vld [vmem:[#allocation6 + $0xf0] sm:$0xff]  ;;  %v7561_v61 = vpack.c.bf16 %v97_v55, %v94_v54  ;;  %v103_v2 = vld [vmem:[#allocation6 + $0xb8] sm:$0xff]  ;;  %v7571_v3 = vpack.c.bf16 %v120_v60, %v117_v59  ;;  %v116_v4 = vld [vmem:[#allocation6 + $0x120] sm:$0xff] }
  0x48   :  { %5680 = vmatpush1.bf16.msra.mxu0 %v7523_v31  ;;  %332 = vmatprep.mubr.f32.mxu0 %v8747_v0  ;;  %v7568_v63 = vpack.c.bf16 %v113_v58, %v110_v57  ;;  %v119_v5 = vld [vmem:[#allocation6 + $0x138] sm:$0xff]  ;;  %v126_v7 = vld [vmem:[#allocation6 + $0x170] sm:$0xff]  ;;  %v7577_v8 = vpack.c.bf16 %v103_v2, %v100_v1  ;;  %v207_v9 = vld [vmem:[%s8737_s0 + $0x30] sm:$0xff] }
  0x49   :  { %5682 = vmatprep.subr.bf16.mxu0 %v7526_v33  ;;  %4810 = vmatmul.mubr.msk.f32.vlgmr.msra.gmra.mrb[0].mxu1 %vm225_vm0, %v202_v21  ;;  %8840 = vst [vmem:[#allocation18_spill] sm:$0xff] %v7571_v3  ;;  %v123_v6 = vld [vmem:[#allocation6 + $0x158] sm:$0xff]  ;;  %v7584_v10 = vpack.c.bf16 %v119_v5, %v116_v4  ;;  %v106_v11 = vld [vmem:[#allocation6 + $0xd0] sm:$0xff]  ;;  %v109_v13 = vld [vmem:[#allocation6 + $0xe8] sm:$0xff] }
  0x4a   :  { %5703 = vmatpush3.bf16.msra.mxu1 %v7529_v40  ;;  %4812 = vmatprep.mubr.msk.f32.mxu1 %vm225_vm0, %v203_v30  ;;  %8839 = vst [vmem:[#allocation17_spill] sm:$0xff] %v7568_v63  ;;  %v7587_v14 = vpack.c.bf16 %v126_v7, %v123_v6  ;;  %v122_v17 = vld [vmem:[#allocation6 + $0x150] sm:$0xff]  ;;  %v125_v18 = vld [vmem:[#allocation6 + $0x168] sm:$0xff]  ;;  %v7593_v19 = vpack.c.bf16 %v109_v13, %v106_v11  ;;  %v112_v24 = vld [vmem:[#allocation6 + $0x100] sm:$0xff] }
  0x4b   :  { %4342 = vmatmul.mubr.msk.f32.gmra.mrb[6].mxu0 %vm225_vm0, %v204_v41  ;;  %5704 = vmatprep.subr.bf16.mxu1 %v8749_v48  ;;  %8841 = vst [vmem:[#allocation19_spill] sm:$0xff] %v7584_v10  ;;  %v208_v20 = vld [vmem:[%s8737_s0 + $0x38] sm:$0xff]  ;;  %v7600_v21 = vpack.c.bf16 %v125_v18, %v122_v17  ;;  %v115_v25 = vld [vmem:[#allocation6 + $0x118] sm:$0xff]  ;;  %v7611_v27 = vld [vmem:[#allocation3] sm:$0xff] }
  0x4c   :  { %5684 = vmatpush1.bf16.msra.mxu0 %v7536_v42  ;;  %338 = vmatprep.mubr.f32.mxu0 %v8747_v0  ;;  %8842 = vst [vmem:[#allocation20_spill] sm:$0xff] %v7587_v14  ;;  %8843 = vst [vmem:[#allocation21_spill] sm:$0xff] %v7593_v19  ;;  %v7607_v26 = vpack.c.bf16 %v115_v25, %v112_v24  ;;  %v118_v28 = vld [vmem:[#allocation6 + $0x130] sm:$0xff]  ;;  %v121_v29 = vld [vmem:[#allocation6 + $0x148] sm:$0xff] }
  0x4d   :  { %5686 = vmatprep.subr.bf16.mxu0 %v7539_v45  ;;  %4813 = vmatmul.mubr.msk.f32.gmra.mrb[2].mxu1 %vm225_vm0, %v204_v41  ;;  %8844 = vst [vmem:[#allocation22_spill] sm:$0xff] %v7600_v21  ;;  %v7619_v30 = vpack.c.bf16 %v121_v29, %v118_v28  ;;  %v124_v32 = vld [vmem:[#allocation6 + $0x160] sm:$0xff]  ;;  %v127_v34 = vld [vmem:[#allocation6 + $0x178] sm:$0xff]  ;;  %v129_v36 = vld [vmem:[#allocation8 + $0x8] sm:$0xff] }
  0x4e   :  { %5706 = vmatpush3.bf16.msra.mxu1 %v7545_v51  ;;  %4815 = vmatprep.mubr.msk.f32.mxu1 %vm225_vm0, %v205_v52  ;;  %8845 = vst [vmem:[#allocation23_spill] sm:$0xff] %v7607_v26  ;;  %v7628_v35 = vpack.c.bf16 %v127_v34, %v124_v32  ;;  %v132_v37 = vld [vmem:[#allocation8 + $0x20] sm:$0xff]  ;;  %v131_v41 = vld [vmem:[#allocation8 + $0x18] sm:$0xff]  ;;  %v130_v43 = vld [vmem:[#allocation8 + $0x10] sm:$0xff] }
  0x4f   :  { %4343 = vmatmul.mubr.msk.f32.gmra.mrb[8].mxu0 %vm225_vm0, %v205_v52  ;;  %5707 = vmatprep.subr.bf16.mxu1 %v8749_v48  ;;  %8846 = vst [vmem:[#allocation24_spill] sm:$0xff] %v7619_v30  ;;  %v7665_v38 = vpack.c.bf16 %v132_v37, %v129_v36  ;;  %v128_v39 = vld [vmem:[#allocation8] sm:$0xff]  ;;  %v133_v46 = vld [vmem:[#allocation8 + $0x28] sm:$0xff]  ;;  %v7670_v47 = vld [vmem:[#allocation3 + $0x8] sm:$0xff] }
  0x50   :  { %5688 = vmatpush1.bf16.msra.mxu0 %v7552_v53  ;;  %344 = vmatprep.mubr.f32.mxu0 %v8747_v0  ;;  %8847 = vst [vmem:[#allocation25_spill] sm:$0xff] %v7628_v35  ;;  %v7667_v44 = vpack.c.bf16 %v131_v41, %v128_v39  ;;  %v7672_v49 = vpack.c.bf16 %v133_v46, %v130_v43  ;;  %v135_v50 = vld [vmem:[#allocation8 + $0x38] sm:$0xff]  ;;  %v138_v52 = vld [vmem:[#allocation8 + $0x50] sm:$0xff]  ;;  %v137_v57 = vld [vmem:[#allocation8 + $0x48] sm:$0xff] }
  0x51   :  { %5690 = vmatprep.subr.bf16.mxu0 %v7555_v56  ;;  %4816 = vmatmul.mubr.msk.f32.gmra.mrb[4].mxu1 %vm225_vm0, %v206_v62  ;;  %8848 = vst [vmem:[#allocation26_spill] sm:$0xff] %v7665_v38  ;;  %v7678_v54 = vpack.c.bf16 %v138_v52, %v135_v50  ;;  %v134_v55 = vld [vmem:[#allocation8 + $0x30] sm:$0xff]  ;;  %v136_v58 = vld [vmem:[#allocation8 + $0x40] sm:$0xff]  ;;  %v139_v60 = vld [vmem:[#allocation8 + $0x58] sm:$0xff] }
  0x52   :  { %5709 = vmatpush3.bf16.msra.mxu1 %v7561_v61  ;;  %4818 = vmatprep.mubr.msk.f32.mxu1 %vm225_vm0, %v207_v9  ;;  %v7681_v59 = vpack.c.bf16 %v137_v57, %v134_v55  ;;  %v141_v1 = vld [vmem:[#allocation8 + $0x68] sm:$0xff]  ;;  %v144_v2 = vld [vmem:[#allocation8 + $0x80] sm:$0xff]  ;;  %v143_v6 = vld [vmem:[#allocation8 + $0x78] sm:$0xff] }
  0x53   :  { %4344 = vmatmul.mubr.msk.f32.gmra.mrb[10].mxu0 %vm225_vm0, %v206_v62  ;;  %5710 = vmatprep.subr.bf16.mxu1 %v8749_v48  ;;  %v7685_v62 = vpack.c.bf16 %v139_v60, %v136_v58  ;;  %v7691_v4 = vpack.c.bf16 %v144_v2, %v141_v1  ;;  %v140_v5 = vld [vmem:[#allocation8 + $0x60] sm:$0xff]  ;;  %v142_v7 = vld [vmem:[#allocation8 + $0x70] sm:$0xff]  ;;  %v145_v11 = vld [vmem:[#allocation8 + $0x88] sm:$0xff] }
  0x54   :  { %5692 = vmatpush1.bf16.msra.mxu0 %v7568_v63  ;;  %350 = vmatprep.mubr.f32.mxu0 %v8747_v0  ;;  %v7697_v13 = vpack.c.bf16 %v145_v11, %v142_v7  ;;  %v147_v17 = vld [vmem:[#allocation8 + $0x98] sm:$0xff]  ;;  %v150_v18 = vld [vmem:[#allocation8 + $0xb0] sm:$0xff]  ;;  %v149_v25 = vld [vmem:[#allocation8 + $0xa8] sm:$0xff] }
  0x55   :  { %5694 = vmatprep.subr.bf16.mxu0 %v7571_v3  ;;  %4819 = vmatmul.mubr.msk.f32.gmra.mrb[6].mxu1 %vm225_vm0, %v208_v20  ;;  %v146_v24 = vld [vmem:[#allocation8 + $0x90] sm:$0xff]  ;;  %v148_v28 = vld [vmem:[#allocation8 + $0xa0] sm:$0xff]  ;;  %v151_v32 = vld [vmem:[#allocation8 + $0xb8] sm:$0xff] }
  0x56   :  { %5712 = vmatpush3.bf16.msra.mxu1 %v7577_v8  ;;  %4853 = vmatprep.mubr.msk.f32.mxu1 %vm7378_vm1, %v8747_v0  ;;  %v7704_v29 = vpack.c.bf16 %v149_v25, %v146_v24  ;;  %v7707_v34 = vpack.c.bf16 %v151_v32, %v148_v28  ;;  %v153_v36 = vld [vmem:[#allocation8 + $0xc8] sm:$0xff]  ;;  %v156_v37 = vld [vmem:[#allocation8 + $0xe0] sm:$0xff]  ;;  %v155_v43 = vld [vmem:[#allocation8 + $0xd8] sm:$0xff] }
  0x57   :  { %4345 = vmatmul.mubr.msk.f32.gmra.mrb[12].mxu0 %vm225_vm0, %v207_v9  ;;  %5713 = vmatprep.subr.bf16.mxu1 %v8749_v48  ;;  %v7694_v9 = vpack.c.bf16 %v143_v6, %v140_v5  ;;  %v7711_v39 = vpack.c.bf16 %v156_v37, %v153_v36  ;;  %v152_v41 = vld [vmem:[#allocation8 + $0xc0] sm:$0xff]  ;;  %v154_v46 = vld [vmem:[#allocation8 + $0xd0] sm:$0xff]  ;;  %v157_v52 = vld [vmem:[#allocation8 + $0xe8] sm:$0xff] }
  0x58   :  { %5696 = vmatpush1.bf16.msra.mxu0 %v7584_v10  ;;  %356 = vmatprep.mubr.f32.mxu0 %v8747_v0  ;;  %v7714_v50 = vpack.c.bf16 %v155_v43, %v152_v41  ;;  %v7717_v55 = vpack.c.bf16 %v157_v52, %v154_v46  ;;  %v159_v57 = vld [vmem:[#allocation8 + $0xf8] sm:$0xff]  ;;  %v162_v58 = vld [vmem:[#allocation8 + $0x110] sm:$0xff]  ;;  %v161_v2 = vld [vmem:[#allocation8 + $0x108] sm:$0xff] }
  0x59   :  { %5698 = vmatprep.subr.bf16.mxu0 %v7587_v14  ;;  %v7721_v60 = vpack.c.bf16 %v162_v58, %v159_v57  ;;  %v158_v1 = vld [vmem:[#allocation8 + $0xf0] sm:$0xff]  ;;  %v160_v5 = vld [vmem:[#allocation8 + $0x100] sm:$0xff]  ;;  %v163_v7 = vld [vmem:[#allocation8 + $0x118] sm:$0xff] }
  0x5a   :  { %5715 = vmatpush3.bf16.msra.mxu1 %v7593_v19  ;;  %v7724_v6 = vpack.c.bf16 %v161_v2, %v158_v1  ;;  %v165_v11 = vld [vmem:[#allocation8 + $0x128] sm:$0xff]  ;;  %v164_v25 = vld [vmem:[#allocation8 + $0x120] sm:$0xff]  ;;  %v167_v28 = vld [vmem:[#allocation8 + $0x138] sm:$0xff] }
  0x5b   :  { %4346 = vmatmul.mubr.msk.f32.gmra.mrb[14].mxu0 %vm225_vm0, %v208_v20  ;;  %5716 = vmatprep.subr.bf16.mxu1 %v8749_v48  ;;  %v7701_v20 = vpack.c.bf16 %v150_v18, %v147_v17  ;;  %v168_v17 = vld [vmem:[#allocation8 + $0x140] sm:$0xff]  ;;  %v7727_v18 = vpack.c.bf16 %v163_v7, %v160_v5  ;;  %v166_v32 = vld [vmem:[#allocation8 + $0x130] sm:$0xff]  ;;  %v169_v36 = vld [vmem:[#allocation8 + $0x148] sm:$0xff]  ;;  %v7733_v43 = vpack.c.bf16 %v167_v28, %v164_v25 }
  0x5c   :  { %5700 = vmatpush1.bf16.msra.mxu0 %v7600_v21  ;;  %559 = vmatprep.mubr.f32.mxu0 %v8747_v0  ;;  %8849 = vst [vmem:[#allocation27_spill] sm:$0xff] %v7724_v6  ;;  %v7729_v24 = vpack.c.bf16 %v168_v17, %v165_v11  ;;  %v171_v37 = vld [vmem:[#allocation8 + $0x158] sm:$0xff]  ;;  %v174_v41 = vld [vmem:[#allocation8 + $0x170] sm:$0xff]  ;;  %v7735_v46 = vpack.c.bf16 %v169_v36, %v166_v32  ;;  %v173_v58 = vld [vmem:[#allocation8 + $0x168] sm:$0xff]  ;;  %v179_v11 = vlaneseq }
  0x5d   :  { %5726 = vmatprep.subr.bf16.mxu0 %v7493_v12  ;;  %8850 = vst [vmem:[#allocation28_spill] sm:$0xff] %v7727_v18  ;;  %8852 = vst [vmem:[#allocation30_spill] sm:$0xff] %v7733_v43  ;;  %v170_v52 = vld [vmem:[#allocation8 + $0x150] sm:$0xff]  ;;  %v7739_v57 = vpack.c.bf16 %v174_v41, %v171_v37  ;;  %v172_v1 = vld [vmem:[#allocation8 + $0x160] sm:$0xff] }
  0x5e   :  { %5718 = vmatpush3.bf16.msra.mxu1 %v7607_v26  ;;  %8851 = vst [vmem:[#allocation29_spill] sm:$0xff] %v7729_v24  ;;  %8853 = vst [vmem:[#allocation31_spill] sm:$0xff] %v7735_v46  ;;  %v175_v2 = vld [vmem:[#allocation8 + $0x178] sm:$0xff]  ;;  %v7743_v5 = vpack.c.bf16 %v173_v58, %v170_v52  ;;  %v7753_v17 = vshrl.u32 %v179_v11, 7  ;;  %v176_v28 = vld [vmem:[%s8742_s5] sm:$0x7] }
  0x5f   :  { %560 = vmatmul.mubr.f32.vlgmr.msra.gmra.mrb[0].mxu0 %v7611_v27  ;;  %5719 = vmatprep.subr.bf16.mxu1 %v8749_v48  ;;  %8854 = vst [vmem:[#allocation32_spill] sm:$0xff] %v7739_v57  ;;  %v7745_v7 = vpack.c.bf16 %v175_v2, %v172_v1 }
  0x60   :  { %5728 = vmatpush1.bf16.msra.mxu0 %v7495_v15  ;;  %700 = vmatprep.mubr.f32.mxu0 %v8747_v0  ;;  %8855 = vst [vmem:[#allocation33_spill] sm:$0xff] %v7743_v5  ;;  %v8755_v25 = vsub.s32 2, %v7753_v17  ;;  %v8762_v11 = vsub.s32 0, %v7753_v17 }
  0x61   :  { %5730 = vmatprep.subr.bf16.mxu0 %v7498_v16  ;;  %8856 = vst [vmem:[#allocation34_spill] sm:$0xff] %v7745_v7 }
  0x62   :  { %5721 = vmatpush3.bf16.msra.mxu1 %v7619_v30  ;;  %v221_v32 = vrot.slane %v176_v28, %v8755_v25  ;;  %v7773_v25 = vrot.slane %v176_v28, %v8762_v11 }
  0x63   :  { %5722 = vmatprep.subr.bf16.mxu1 %v8749_v48 }
  0x64   :  { %5732 = vmatpush1.bf16.msra.mxu0 %v7506_v22 }
  0x65   :  { %5734 = vmatprep.subr.bf16.mxu0 %v7509_v23 }
  0x66   :  { %5724 = vmatpush3.bf16.msra.mxu1 %v7628_v35 }
  0x67   :  { %5757 = vmatprep.subr.bf16.mxu1 %v8749_v48 }
  0x68   :  { %5736 = vmatpush1.bf16.msra.mxu0 %v7523_v31 }
  0x69   :  { %4854 = vmatmul.mubr.f32.vlgmr.msra.gmra.mrb[8].mxu1 %v7611_v27  ;;  %5738 = vmatprep.subr.bf16.mxu0 %v7526_v33 }
  0x6a   :  { %5759 = vmatpush3.bf16.msra.mxu1 %v7529_v40  ;;  %4888 = vmatprep.mubr.msk.f32.mxu1 %vm7378_vm1, %v8747_v0 }
  0x6b   :  { %5760 = vmatprep.subr.bf16.mxu1 %v8749_v48 }
  0x6c   :  { %5740 = vmatpush1.bf16.msra.mxu0 %v7536_v42 }
  0x6d   :  { %5742 = vmatprep.subr.bf16.mxu0 %v7539_v45 }
  0x6e   :  { %5762 = vmatpush3.bf16.msra.mxu1 %v7545_v51 }
  0x6f   :  { %5763 = vmatprep.subr.bf16.mxu1 %v8749_v48 }
  0x70   :  { %5744 = vmatpush1.bf16.msra.mxu0 %v7552_v53 }
  0x71   :  { %5746 = vmatprep.subr.bf16.mxu0 %v7555_v56 }
  0x72   :  { %5765 = vmatpush3.bf16.msra.mxu1 %v7561_v61 }
  0x73   :  { %5766 = vmatprep.subr.bf16.mxu1 %v8749_v48 }
  0x74   :  { %5748 = vmatpush1.bf16.msra.mxu0 %v7568_v63 }
  0x75   :  { %5750 = vmatprep.subr.bf16.mxu0 %v7571_v3 }
  0x76   :  { %5768 = vmatpush3.bf16.msra.mxu1 %v7577_v8 }
  0x77   :  { %5769 = vmatprep.subr.bf16.mxu1 %v8749_v48 }
  0x78   :  { %5752 = vmatpush1.bf16.msra.mxu0 %v7584_v10 }
  0x79   :  { %5754 = vmatprep.subr.bf16.mxu0 %v7587_v14 }
  0x7a   :  { %5771 = vmatpush3.bf16.msra.mxu1 %v7593_v19 }
  0x7b   :  { %5772 = vmatprep.subr.bf16.mxu1 %v8749_v48 }
  0x7c   :  { %5756 = vmatpush1.bf16.msra.mxu0 %v7600_v21 }
  0x7d   :  { %5782 = vmatprep.subr.bf16.mxu0 %v7665_v38 }
  0x7e   :  { %5774 = vmatpush3.bf16.msra.mxu1 %v7607_v26 }
  0x7f   :  { %5775 = vmatprep.subr.bf16.mxu1 %v8749_v48  ;;  %701 = vmatmul.mubr.f32.vlgmr.msra.gmra.mrb[16].mxu0 %v7670_v47 }
  0x80   :  { %5784 = vmatpush1.bf16.msra.mxu0 %v7667_v44  ;;  %869 = vmatprep.mubr.f32.mxu0 %v8747_v0 }
  0x81   :  { %5786 = vmatprep.subr.bf16.mxu0 %v7678_v54 }
  0x82   :  { %5777 = vmatpush3.bf16.msra.mxu1 %v7619_v30 }
  0x83   :  { %5778 = vmatprep.subr.bf16.mxu1 %v8749_v48 }
  0x84   :  { %5788 = vmatpush1.bf16.msra.mxu0 %v7681_v59 }
  0x85   :  { %5790 = vmatprep.subr.bf16.mxu0 %v7691_v4 }
  0x86   :  { %5780 = vmatpush3.bf16.msra.mxu1 %v7628_v35 }
  0x87   :  { %5813 = vmatprep.subr.bf16.mxu1 %v8749_v48 }
  0x88   :  { %5792 = vmatpush1.bf16.msra.mxu0 %v7694_v9 }
  0x89   :  { %4889 = vmatmul.mubr.f32.vlgmr.msra.gmra.mrb[10].mxu1 %v7670_v47  ;;  %5794 = vmatprep.subr.bf16.mxu0 %v7701_v20 }
  0x8a   :  { %5815 = vmatpush3.bf16.msra.mxu1 %v7672_v49  ;;  %4923 = vmatprep.mubr.msk.f32.mxu1 %vm7378_vm1, %v8747_v0 }
  0x8b   :  { %5816 = vmatprep.subr.bf16.mxu1 %v8749_v48 }
  0x8c   :  { %5796 = vmatpush1.bf16.msra.mxu0 %v7704_v29 }
  0x8d   :  { %5798 = vmatprep.subr.bf16.mxu0 %v7711_v39 }
  0x8e   :  { %5818 = vmatpush3.bf16.msra.mxu1 %v7685_v62 }
  0x8f   :  { %5819 = vmatprep.subr.bf16.mxu1 %v8749_v48 }
  0x90   :  { %5800 = vmatpush1.bf16.msra.mxu0 %v7714_v50 }
  0x91   :  { %5802 = vmatprep.subr.bf16.mxu0 %v7721_v60 }
  0x92   :  { %5821 = vmatpush3.bf16.msra.mxu1 %v7697_v13 }
  0x93   :  { %5822 = vmatprep.subr.bf16.mxu1 %v8749_v48 }
  0x94   :  { %5804 = vmatpush1.bf16.msra.mxu0 %v7724_v6 }
  0x95   :  { %5806 = vmatprep.subr.bf16.mxu0 %v7729_v24 }
  0x96   :  { %5824 = vmatpush3.bf16.msra.mxu1 %v7707_v34 }
  0x97   :  { %5825 = vmatprep.subr.bf16.mxu1 %v8749_v48 }
  0x98   :  { %5808 = vmatpush1.bf16.msra.mxu0 %v7733_v43 }
  0x99   :  { %5810 = vmatprep.subr.bf16.mxu0 %v7739_v57 }
  0x9a   :  { %5827 = vmatpush3.bf16.msra.mxu1 %v7717_v55 }
  0x9b   :  { %5828 = vmatprep.subr.bf16.mxu1 %v8749_v48 }
  0x9c   :  { %5812 = vmatpush1.bf16.msra.mxu0 %v7743_v5 }
  0x9d   :  { %5838 = vmatprep.subr.bf16.mxu0 %v7493_v12 }
  0x9e   :  { %5830 = vmatpush3.bf16.msra.mxu1 %v7727_v18 }
  0x9f   :  { %5831 = vmatprep.subr.bf16.mxu1 %v8749_v48 }
  0xa2   :  { %5833 = vmatpush3.bf16.msra.mxu1 %v7735_v46 }
  0xa3   :  { %5834 = vmatprep.subr.bf16.mxu1 %v8749_v48 }
  0xa6   :  { %5836 = vmatpush3.bf16.msra.mxu1 %v7745_v7 }
  0xa7   :  { %5869 = vmatprep.subr.bf16.mxu1 %v8749_v48  ;;  %v8769_v48 = vsub.s32 1, %v7753_v17 }
 0x11c   :  { %v4811_v36 = vpop.f32.mrb[0].mxu1 }
 0x11d   :  { %v7761_v37 = vadd.f32 %v4811_v36, %v221_v32  ;;  %v429_v41 = vpop.f32.mrb[1].mxu1 }
 0x120   :  { %v4814_v52 = vpop.f32.mrb[2].mxu1 }
 0x121   :  { %v7763_v58 = vadd.f32 %v4814_v52, %v221_v32  ;;  %v439_v1 = vpop.f32.mrb[3].mxu1 }
 0x122   :  { %v7765_v2 = vadd.f32 %v439_v1, %v221_v32  ;;  %v7779_v1 = vrot.slane %v176_v28, %v8769_v48  ;;  %v430_v48 = vadd.f32 %v429_v41, %v221_v32 }
 0x123   :  { %8857 = vst [vmem:[#allocation35_spill] sm:$0xff] %v7763_v58 }
 0x124   :  { %8858 = vst [vmem:[#allocation36_spill] sm:$0xff] %v7765_v2  ;;  %v4817_v0 = vpop.f32.mrb[4].mxu1 }
 0x125   :  { %v7769_v7 = vadd.f32 %v4817_v0, %v221_v32  ;;  %v449_v5 = vpop.f32.mrb[5].mxu1 }
 0x126   :  { %v7775_v36 = vadd.f32 %v449_v5, %v221_v32 }
 0x127   :  { %8859 = vst [vmem:[#allocation37_spill] sm:$0xff] %v7769_v7 }
 0x128   :  { %8860 = vst [vmem:[#allocation38_spill] sm:$0xff] %v7775_v36  ;;  %v4820_v57 = vpop.f32.mrb[6].mxu1 }
 0x129   :  { %v7781_v58 = vadd.f32 %v4820_v57, %v221_v32  ;;  %v459_v2 = vpop.f32.mrb[7].mxu1  ;;  %v7790_v57 = vld [vmem:[%s8744_s7] ss:$0 sm:$0xff] }
 0x12a   :  { %v7784_v7 = vadd.f32 %v459_v2, %v221_v32  ;;  %v8864_v32 = vmov 0.0  }
 0x12b   :  { %8861 = vst [vmem:[#allocation39_spill] sm:$0xff] %v7781_v58 }
 0x12c   :  { %8862 = vst [vmem:[#allocation40_spill] sm:$0xff] %v7784_v7 }
 0x132   :  { %v561_v52 = vpop.f32.mrb[0].mxu0 }
 0x133   :  { %v7013_v46 = vadd.f32 %v561_v52, %v7773_v25  ;;  %v563_v0 = vpop.f32.mrb[1].mxu0 }
 0x134   :  { %v7014_v11 = vadd.f32 %v563_v0, %v7779_v1 }
 0x135   :  { %v4355_v43 = vmul.f32 -1.442695, %v7013_v46 }
 0x136   :  { %v4356_v5 = vmul.f32 -1.442695, %v7014_v11 }
 0x137   :  { %7089 = vpow2.f32 %v4355_v43 }
 0x138   :  { %7091 = vpow2.f32 %v4356_v5 }
 0x13c   :  { %v632_v36 = vpop.f32.mrb[8].mxu1 }
 0x13d   :  { %v4855_v24 = vpop.f32.mrb[9].mxu1  ;;  %v797_v2 = vadd.f32 %v7790_v57, %v632_v36  ;;  %v177_v36 = vld [vmem:[%s8743_s6] sm:$0x7] }
 0x141   :  { %v7090_v18 = vpop.eup %7089 }
 0x142   :  { %v787_v6 = vadd.f32 1.0, %v7090_v18  ;;  %v7092_v28 = vpop.eup %7091 }
 0x143   :  { %v794_v52 = vadd.f32 1.0, %v7092_v28  ;;  %v8865_v28 = vsub.s32 0, %v7753_v17 }
 0x144   :  { %7093 = vrcp.f32 %v787_v6 }
 0x145   :  { %7095 = vrcp.f32 %v794_v52  ;;  %v7875_v52 = vrot.slane %v177_v36, %v8865_v28 }
 0x147   :  { %8866 = vst [vmem:[#allocation41_spill] sm:$0xff] %v7875_v52 }
 0x14e   :  { %v7094_v46 = vpop.eup %7093 }
 0x14f   :  { %v798_v43 = vmul.f32 %v7094_v46, %v797_v2  ;;  %v7096_v0 = vpop.eup %7095 }
 0x150   :  { %v801_v24 = vsub.f32 1.0, %v7096_v0  ;;  %v803_v6 = vmul.f32 %v7096_v0, %v7611_v27 }
 0x151   :  { %v799_v11 = vadd.f32 %v798_v43, %v430_v48  ;;  %v8863_v48 = vmov 0.0|0.0   ;;  %v8867_v43 = vsub.s32 1, %v7753_v17 }
 0x153   :  { %7097 = vtanh.f32 %v799_v11  ;;  %v7879_v11 = vrot.slane %v177_v36, %v8867_v43 }
 0x155   :  { %8868 = vst [vmem:[#allocation42_spill] sm:$0xff] %v7879_v11 }
 0x15c   :  { %v773_v27 = vpop.f32.mrb[10].mxu1 }
 0x15d   :  { %v7098_v5 = vpop.eup %7097  ;;  %v4890_v41 = vpop.f32.mrb[11].mxu1 }
 0x15e   :  { %v802_v18 = vmul.f32 %v7098_v5, %v801_v24 }
 0x160   :  { %v7794_v58 = vadd.f32 %v803_v6, %v802_v18 }
 0x162   :  { %870 = vmatmul.mubr.f32.vlgmr.msra.gmra.mrb[16].mxu0 %v7794_v58  ;;  %4924 = vmatmul.mubr.f32.vlgmr.msra.gmra.mrb[12].mxu1 %v7794_v58 }
 0x163   :  { %5840 = vmatpush1.bf16.msra.mxu0 %v7495_v15  ;;  %5871 = vmatpush3.bf16.msra.mxu1 %v7529_v40 }
 0x164   :  { %5842 = vmatprep.subr.bf16.mxu0 %v7498_v16  ;;  %5872 = vmatprep.subr.bf16.mxu1 %v8863_v48 }
 0x165   :  { %1033 = vmatprep.mubr.f32.mxu0 %v8864_v32  ;;  %4958 = vmatprep.mubr.msk.f32.mxu1 %vm7378_vm1, %v8864_v32 }
 0x167   :  { %5844 = vmatpush1.bf16.msra.mxu0 %v7506_v22  ;;  %5874 = vmatpush3.bf16.msra.mxu1 %v7545_v51 }
 0x168   :  { %5846 = vmatprep.subr.bf16.mxu0 %v7509_v23  ;;  %5875 = vmatprep.subr.bf16.mxu1 %v8863_v48 }
 0x16b   :  { %5848 = vmatpush1.bf16.msra.mxu0 %v7523_v31  ;;  %5877 = vmatpush3.bf16.msra.mxu1 %v7561_v61 }
 0x16c   :  { %5850 = vmatprep.subr.bf16.mxu0 %v7526_v33  ;;  %5878 = vmatprep.subr.bf16.mxu1 %v8863_v48 }
 0x16f   :  { %5852 = vmatpush1.bf16.msra.mxu0 %v7536_v42  ;;  %5880 = vmatpush3.bf16.msra.mxu1 %v7577_v8 }
 0x170   :  { %5854 = vmatprep.subr.bf16.mxu0 %v7539_v45  ;;  %5881 = vmatprep.subr.bf16.mxu1 %v8863_v48 }
 0x173   :  { %5856 = vmatpush1.bf16.msra.mxu0 %v7552_v53  ;;  %5883 = vmatpush3.bf16.msra.mxu1 %v7593_v19 }
 0x174   :  { %5858 = vmatprep.subr.bf16.mxu0 %v7555_v56  ;;  %5884 = vmatprep.subr.bf16.mxu1 %v8863_v48 }
 0x177   :  { %5860 = vmatpush1.bf16.msra.mxu0 %v7568_v63  ;;  %5886 = vmatpush3.bf16.msra.mxu1 %v7607_v26 }
 0x178   :  { %5862 = vmatprep.subr.bf16.mxu0 %v7571_v3  ;;  %5887 = vmatprep.subr.bf16.mxu1 %v8863_v48 }
 0x17b   :  { %5864 = vmatpush1.bf16.msra.mxu0 %v7584_v10  ;;  %5889 = vmatpush3.bf16.msra.mxu1 %v7619_v30 }
 0x17c   :  { %5866 = vmatprep.subr.bf16.mxu0 %v7587_v14  ;;  %5890 = vmatprep.subr.bf16.mxu1 %v8863_v48 }
 0x17f   :  { %5868 = vmatpush1.bf16.msra.mxu0 %v7600_v21  ;;  %5892 = vmatpush3.bf16.msra.mxu1 %v7628_v35 }
 0x180   :  { %5894 = vmatprep.subr.bf16.mxu0 %v7493_v12  ;;  %5925 = vmatprep.subr.bf16.mxu1 %v8863_v48 }
 0x182   :  { %1034 = vmatmul.mubr.f32.vlgmr.msra.gmra.mrb[2].mxu0 %v7794_v58  ;;  %4959 = vmatmul.mubr.f32.vlgmr.msra.gmra.mrb[14].mxu1 %v7794_v58 }
 0x183   :  { %5896 = vmatpush1.bf16.msra.mxu0 %v7495_v15  ;;  %5927 = vmatpush3.bf16.msra.mxu1 %v7529_v40 }
 0x184   :  { %5898 = vmatprep.subr.bf16.mxu0 %v7498_v16  ;;  %5928 = vmatprep.subr.bf16.mxu1 %v8863_v48 }
 0x185   :  { %1174 = vmatprep.mubr.f32.mxu0 %v8864_v32  ;;  %4993 = vmatprep.mubr.msk.f32.mxu1 %vm7378_vm1, %v8864_v32 }
 0x187   :  { %5900 = vmatpush1.bf16.msra.mxu0 %v7506_v22  ;;  %5930 = vmatpush3.bf16.msra.mxu1 %v7545_v51 }
 0x188   :  { %5902 = vmatprep.subr.bf16.mxu0 %v7509_v23  ;;  %5931 = vmatprep.subr.bf16.mxu1 %v8863_v48 }
 0x18b   :  { %5904 = vmatpush1.bf16.msra.mxu0 %v7523_v31  ;;  %5933 = vmatpush3.bf16.msra.mxu1 %v7561_v61 }
 0x18c   :  { %5906 = vmatprep.subr.bf16.mxu0 %v7526_v33  ;;  %5934 = vmatprep.subr.bf16.mxu1 %v8863_v48 }
 0x18f   :  { %5908 = vmatpush1.bf16.msra.mxu0 %v7536_v42  ;;  %5936 = vmatpush3.bf16.msra.mxu1 %v7577_v8 }
 0x190   :  { %5910 = vmatprep.subr.bf16.mxu0 %v7539_v45  ;;  %5937 = vmatprep.subr.bf16.mxu1 %v8863_v48 }
 0x193   :  { %5912 = vmatpush1.bf16.msra.mxu0 %v7552_v53  ;;  %5939 = vmatpush3.bf16.msra.mxu1 %v7593_v19 }
 0x194   :  { %5914 = vmatprep.subr.bf16.mxu0 %v7555_v56  ;;  %5940 = vmatprep.subr.bf16.mxu1 %v8863_v48 }
 0x197   :  { %5916 = vmatpush1.bf16.msra.mxu0 %v7568_v63  ;;  %5942 = vmatpush3.bf16.msra.mxu1 %v7607_v26 }
 0x198   :  { %5918 = vmatprep.subr.bf16.mxu0 %v7571_v3  ;;  %5943 = vmatprep.subr.bf16.mxu1 %v8863_v48 }
 0x19b   :  { %5920 = vmatpush1.bf16.msra.mxu0 %v7584_v10  ;;  %5945 = vmatpush3.bf16.msra.mxu1 %v7619_v30 }
 0x19c   :  { %5922 = vmatprep.subr.bf16.mxu0 %v7587_v14  ;;  %5946 = vmatprep.subr.bf16.mxu1 %v8863_v48  ;;  %v960_v14 = vadd.f32 %v7790_v57, %v773_v27 }
 0x19f   :  { %5924 = vmatpush1.bf16.msra.mxu0 %v7600_v21  ;;  %5948 = vmatpush3.bf16.msra.mxu1 %v7628_v35  ;;  %v8869_v35 = vsub.s32 2, %v7753_v17 }
 0x1a0   :  { %5950 = vmatprep.subr.bf16.mxu0 %v7665_v38  ;;  %5981 = vmatprep.subr.bf16.mxu1 %v8863_v48 }
 0x1a1   :  { %v7885_v21 = vrot.slane %v177_v36, %v8869_v35 }
 0x235   :  { %v871_v2 = vpop.f32.mrb[16].mxu0  ;;  %v942_v46 = vpop.f32.mrb[12].mxu1 }
 0x236   :  { %v872_v0 = vadd.f32 %v871_v2, %v7875_v52  ;;  %v873_v24 = vpop.f32.mrb[17].mxu0  ;;  %v4925_v5 = vpop.f32.mrb[13].mxu1 }
 0x237   :  { %v874_v6 = vadd.f32 %v873_v24, %v7879_v11  ;;  %v943_v5 = vadd.f32 %v942_v46, %v7885_v21 }
 0x238   :  { %v4357_v18 = vmul.f32 -1.442695, %v872_v0 }
 0x239   :  { %v4358_v41 = vmul.f32 -1.442695, %v874_v6 }
 0x23a   :  { %7099 = vpow2.f32 %v4357_v18 }
 0x23b   :  { %7101 = vpow2.f32 %v4358_v41 }
 0x244   :  { %v7100_v7 = vpop.eup %7099 }
 0x245   :  { %v950_v38 = vadd.f32 1.0, %v7100_v7  ;;  %v7102_v28 = vpop.eup %7101 }
 0x246   :  { %v957_v43 = vadd.f32 1.0, %v7102_v28 }
 0x247   :  { %7103 = vrcp.f32 %v950_v38 }
 0x248   :  { %7105 = vrcp.f32 %v957_v43 }
 0x251   :  { %v7104_v2 = vpop.eup %7103 }
 0x252   :  { %v961_v0 = vmul.f32 %v7104_v2, %v960_v14  ;;  %v7106_v17 = vpop.eup %7105 }
 0x253   :  { %v964_v27 = vsub.f32 1.0, %v7106_v17  ;;  %v966_v14 = vmul.f32 %v7106_v17, %v7670_v47  ;;  %v8873_v17 = vld [vmem:[#allocation30_spill] sm:$0xff] }
 0x254   :  { %v962_v24 = vadd.f32 %v961_v0, %v943_v5 }
 0x255   :  { %v1035_v18 = vpop.f32.mrb[2].mxu0  ;;  %v1106_v6 = vpop.f32.mrb[14].mxu1 }
 0x256   :  { %7107 = vtanh.f32 %v962_v24  ;;  %v7015_v7 = vadd.f32 %v1035_v18, %v7773_v25  ;;  %v1037_v38 = vpop.f32.mrb[3].mxu0  ;;  %v4960_v41 = vpop.f32.mrb[15].mxu1  ;;  %v1271_v0 = vadd.f32 %v7790_v57, %v1106_v6  ;;  %v8870_v6 = vld [vmem:[#allocation27_spill] sm:$0xff] }
 0x257   :  { %v7016_v35 = vadd.f32 %v1037_v38, %v7779_v1  ;;  %v8871_v38 = vld [vmem:[#allocation28_spill] sm:$0xff]  ;;  %v8872_v41 = vld [vmem:[#allocation29_spill] sm:$0xff] }
 0x258   :  { %v4359_v11 = vmul.f32 -1.442695, %v7015_v7 }
 0x259   :  { %v4360_v36 = vmul.f32 -1.442695, %v7016_v35 }
 0x25a   :  { %7109 = vpow2.f32 %v4359_v11 }
 0x25b   :  { %7111 = vpow2.f32 %v4360_v36 }
 0x260   :  { %v7108_v28 = vpop.eup %7107 }
 0x261   :  { %v965_v46 = vmul.f32 %v7108_v28, %v964_v27  ;;  %v8875_v27 = vld [vmem:[#allocation32_spill] sm:$0xff] }
 0x263   :  { %v7892_v43 = vadd.f32 %v966_v14, %v965_v46 }
 0x264   :  { %v7110_v2 = vpop.eup %7109 }
 0x265   :  { %v1261_v5 = vadd.f32 1.0, %v7110_v2  ;;  %968 = vst [vmem:[#allocation9] sm:$0xff] %v7892_v43  ;;  %1175 = vmatmul.mubr.f32.vlgmr.msra.gmra.mrb[18].mxu0 %v7892_v43  ;;  %4994 = vmatmul.mubr.f32.vlgmr.msra.gmra.mrb[16].mxu1 %v7892_v43  ;;  %v7112_v47 = vpop.eup %7111  ;;  %v8876_v2 = vld [vmem:[#allocation33_spill] sm:$0xff] }
 0x266   :  { %5952 = vmatpush1.bf16.msra.mxu0 %v7667_v44  ;;  %5983 = vmatpush3.bf16.msra.mxu1 %v7672_v49  ;;  %v1268_v11 = vadd.f32 1.0, %v7112_v47 }
 0x267   :  { %7113 = vrcp.f32 %v1261_v5  ;;  %5954 = vmatprep.subr.bf16.mxu0 %v7678_v54  ;;  %5984 = vmatprep.subr.bf16.mxu1 %v8863_v48  ;;  %v8877_v5 = vld [vmem:[#allocation34_spill] sm:$0xff] }
 0x268   :  { %1343 = vmatprep.mubr.f32.mxu0 %v8864_v32  ;;  %5028 = vmatprep.mubr.msk.f32.mxu1 %vm7378_vm1, %v8864_v32  ;;  %7115 = vrcp.f32 %v1268_v11  ;;  %v8879_v11 = vld [vmem:[#allocation22_spill] sm:$0xff] }
 0x26a   :  { %5956 = vmatpush1.bf16.msra.mxu0 %v7681_v59  ;;  %5986 = vmatpush3.bf16.msra.mxu1 %v7685_v62 }
 0x26b   :  { %5958 = vmatprep.subr.bf16.mxu0 %v7691_v4  ;;  %5987 = vmatprep.subr.bf16.mxu1 %v8863_v48 }
 0x26e   :  { %5960 = vmatpush1.bf16.msra.mxu0 %v7694_v9  ;;  %5989 = vmatpush3.bf16.msra.mxu1 %v7697_v13 }
 0x26f   :  { %5962 = vmatprep.subr.bf16.mxu0 %v7701_v20  ;;  %5990 = vmatprep.subr.bf16.mxu1 %v8863_v48 }
 0x271   :  { %v7114_v24 = vpop.eup %7113 }
 0x272   :  { %v1272_v18 = vmul.f32 %v7114_v24, %v1271_v0  ;;  %5964 = vmatpush1.bf16.msra.mxu0 %v7704_v29  ;;  %5992 = vmatpush3.bf16.msra.mxu1 %v7707_v34  ;;  %v7116_v35 = vpop.eup %7115  ;;  %v8880_v0 = vld [vmem:[#allocation25_spill] sm:$0xff]  ;;  %v8881_v24 = vld [vmem:[#allocation26_spill] sm:$0xff] }
 0x273   :  { %5966 = vmatprep.subr.bf16.mxu0 %v7711_v39  ;;  %5993 = vmatprep.subr.bf16.mxu1 %v8863_v48  ;;  %v1275_v36 = vsub.f32 1.0, %v7116_v35  ;;  %v1277_v14 = vmul.f32 %v7116_v35, %v7794_v58  ;;  %v8878_v58 = vld [vmem:[#allocation20_spill] sm:$0xff] }
 0x274   :  { %v1273_v7 = vadd.f32 %v1272_v18, %v7761_v37  ;;  %v8874_v37 = vld [vmem:[#allocation31_spill] sm:$0xff] }
 0x276   :  { %7117 = vtanh.f32 %v1273_v7  ;;  %5968 = vmatpush1.bf16.msra.mxu0 %v7714_v50  ;;  %5995 = vmatpush3.bf16.msra.mxu1 %v7717_v55 }
 0x277   :  { %5970 = vmatprep.subr.bf16.mxu0 %v7721_v60  ;;  %5996 = vmatprep.subr.bf16.mxu1 %v8863_v48 }
 0x27a   :  { %5972 = vmatpush1.bf16.msra.mxu0 %v8870_v6  ;;  %5998 = vmatpush3.bf16.msra.mxu1 %v8871_v38 }
 0x27b   :  { %5974 = vmatprep.subr.bf16.mxu0 %v8872_v41  ;;  %5999 = vmatprep.subr.bf16.mxu1 %v8863_v48 }
 0x27e   :  { %5976 = vmatpush1.bf16.msra.mxu0 %v8873_v17  ;;  %6001 = vmatpush3.bf16.msra.mxu1 %v8874_v37 }
 0x27f   :  { %5978 = vmatprep.subr.bf16.mxu0 %v8875_v27  ;;  %6002 = vmatprep.subr.bf16.mxu1 %v8863_v48 }
 0x280   :  { %v7118_v28 = vpop.eup %7117 }
 0x281   :  { %v1276_v46 = vmul.f32 %v7118_v28, %v1275_v36 }
 0x282   :  { %5980 = vmatpush1.bf16.msra.mxu0 %v8876_v2  ;;  %6004 = vmatpush3.bf16.msra.mxu1 %v8877_v5 }
 0x283   :  { %v7933_v47 = vadd.f32 %v1277_v14, %v1276_v46  ;;  %6006 = vmatprep.subr.bf16.mxu0 %v7493_v12  ;;  %6037 = vmatprep.subr.bf16.mxu1 %v8863_v48 }
 0x285   :  { %1344 = vmatmul.mubr.f32.vlgmr.msra.gmra.mrb[18].mxu0 %v7933_v47  ;;  %5029 = vmatmul.mubr.f32.vlgmr.msra.gmra.mrb[18].mxu1 %v7933_v47 }
 0x286   :  { %6008 = vmatpush1.bf16.msra.mxu0 %v7495_v15  ;;  %6039 = vmatpush3.bf16.msra.mxu1 %v7529_v40 }
 0x287   :  { %6010 = vmatprep.subr.bf16.mxu0 %v7498_v16  ;;  %6040 = vmatprep.subr.bf16.mxu1 %v8863_v48 }
 0x288   :  { %1508 = vmatprep.mubr.f32.mxu0 %v8864_v32  ;;  %5063 = vmatprep.mubr.msk.f32.mxu1 %vm7378_vm1, %v8864_v32 }
 0x28a   :  { %6012 = vmatpush1.bf16.msra.mxu0 %v7506_v22  ;;  %6042 = vmatpush3.bf16.msra.mxu1 %v7545_v51 }
 0x28b   :  { %6014 = vmatprep.subr.bf16.mxu0 %v7509_v23  ;;  %6043 = vmatprep.subr.bf16.mxu1 %v8863_v48 }
 0x28e   :  { %6016 = vmatpush1.bf16.msra.mxu0 %v7523_v31  ;;  %6045 = vmatpush3.bf16.msra.mxu1 %v7561_v61 }
 0x28f   :  { %6018 = vmatprep.subr.bf16.mxu0 %v7526_v33  ;;  %6046 = vmatprep.subr.bf16.mxu1 %v8863_v48 }
 0x292   :  { %6020 = vmatpush1.bf16.msra.mxu0 %v7536_v42  ;;  %6048 = vmatpush3.bf16.msra.mxu1 %v7577_v8 }
 0x293   :  { %6022 = vmatprep.subr.bf16.mxu0 %v7539_v45  ;;  %6049 = vmatprep.subr.bf16.mxu1 %v8863_v48 }
 0x296   :  { %6024 = vmatpush1.bf16.msra.mxu0 %v7552_v53  ;;  %6051 = vmatpush3.bf16.msra.mxu1 %v7593_v19 }
 0x297   :  { %6026 = vmatprep.subr.bf16.mxu0 %v7555_v56  ;;  %6052 = vmatprep.subr.bf16.mxu1 %v8863_v48 }
 0x29a   :  { %6028 = vmatpush1.bf16.msra.mxu0 %v7568_v63  ;;  %6054 = vmatpush3.bf16.msra.mxu1 %v7607_v26 }
 0x29b   :  { %6030 = vmatprep.subr.bf16.mxu0 %v7571_v3  ;;  %6055 = vmatprep.subr.bf16.mxu1 %v8863_v48 }
 0x29e   :  { %6032 = vmatpush1.bf16.msra.mxu0 %v7584_v10  ;;  %6057 = vmatpush3.bf16.msra.mxu1 %v7619_v30 }
 0x29f   :  { %6034 = vmatprep.subr.bf16.mxu0 %v8878_v58  ;;  %6058 = vmatprep.subr.bf16.mxu1 %v8863_v48 }
 0x2a2   :  { %6036 = vmatpush1.bf16.msra.mxu0 %v8879_v11  ;;  %6060 = vmatpush3.bf16.msra.mxu1 %v8880_v0 }
 0x2a3   :  { %6062 = vmatprep.subr.bf16.mxu0 %v7493_v12  ;;  %6093 = vmatprep.subr.bf16.mxu1 %v8863_v48 }
 0x2a5   :  { %1509 = vmatmul.mubr.f32.vlgmr.msra.gmra.mrb[4].mxu0 %v7933_v47  ;;  %5064 = vmatmul.mubr.f32.vlgmr.msra.gmra.mrb[20].mxu1 %v7933_v47 }
 0x2a6   :  { %6064 = vmatpush1.bf16.msra.mxu0 %v7495_v15  ;;  %6095 = vmatpush3.bf16.msra.mxu1 %v7529_v40 }
 0x2a7   :  { %6066 = vmatprep.subr.bf16.mxu0 %v7498_v16  ;;  %6096 = vmatprep.subr.bf16.mxu1 %v8863_v48 }
 0x2a8   :  { %1649 = vmatprep.mubr.f32.mxu0 %v8864_v32  ;;  %5098 = vmatprep.mubr.msk.f32.mxu1 %vm7378_vm1, %v8864_v32 }
 0x2aa   :  { %6068 = vmatpush1.bf16.msra.mxu0 %v7506_v22  ;;  %6098 = vmatpush3.bf16.msra.mxu1 %v7545_v51 }
 0x2ab   :  { %6070 = vmatprep.subr.bf16.mxu0 %v7509_v23  ;;  %6099 = vmatprep.subr.bf16.mxu1 %v8863_v48 }
 0x2ae   :  { %6072 = vmatpush1.bf16.msra.mxu0 %v7523_v31  ;;  %6101 = vmatpush3.bf16.msra.mxu1 %v7561_v61 }
 0x2af   :  { %6074 = vmatprep.subr.bf16.mxu0 %v7526_v33  ;;  %6102 = vmatprep.subr.bf16.mxu1 %v8863_v48 }
 0x2b2   :  { %6076 = vmatpush1.bf16.msra.mxu0 %v7536_v42  ;;  %6104 = vmatpush3.bf16.msra.mxu1 %v7577_v8 }
 0x2b3   :  { %6078 = vmatprep.subr.bf16.mxu0 %v7539_v45  ;;  %6105 = vmatprep.subr.bf16.mxu1 %v8863_v48 }
 0x2b6   :  { %6080 = vmatpush1.bf16.msra.mxu0 %v7552_v53  ;;  %6107 = vmatpush3.bf16.msra.mxu1 %v7593_v19 }
 0x2b7   :  { %6082 = vmatprep.subr.bf16.mxu0 %v7555_v56  ;;  %6108 = vmatprep.subr.bf16.mxu1 %v8863_v48 }
 0x2ba   :  { %6084 = vmatpush1.bf16.msra.mxu0 %v7568_v63  ;;  %6110 = vmatpush3.bf16.msra.mxu1 %v7607_v26 }
 0x2bb   :  { %6086 = vmatprep.subr.bf16.mxu0 %v7571_v3  ;;  %6111 = vmatprep.subr.bf16.mxu1 %v8863_v48 }
 0x2be   :  { %6088 = vmatpush1.bf16.msra.mxu0 %v7584_v10  ;;  %6113 = vmatpush3.bf16.msra.mxu1 %v7619_v30 }
 0x2bf   :  { %6090 = vmatprep.subr.bf16.mxu0 %v8878_v58  ;;  %6114 = vmatprep.subr.bf16.mxu1 %v8863_v48  ;;  %v8882_v58 = vld [vmem:[#allocation42_spill] sm:$0xff] }
 0x2c2   :  { %6092 = vmatpush1.bf16.msra.mxu0 %v8879_v11  ;;  %6116 = vmatpush3.bf16.msra.mxu1 %v8880_v0 }
 0x2c3   :  { %6118 = vmatprep.subr.bf16.mxu0 %v8881_v24  ;;  %6149 = vmatprep.subr.bf16.mxu1 %v8863_v48 }
 0x338   :  { %v1247_v18 = vpop.f32.mrb[16].mxu1 }
 0x339   :  { %v4995_v7 = vpop.f32.mrb[17].mxu1  ;;  %v1434_v63 = vadd.f32 %v7790_v57, %v1247_v18 }
 0x358   :  { %v1345_v35 = vpop.f32.mrb[18].mxu0  ;;  %v1416_v36 = vpop.f32.mrb[18].mxu1 }
 0x359   :  { %v1346_v28 = vadd.f32 %v1345_v35, %v7875_v52  ;;  %v1347_v46 = vpop.f32.mrb[19].mxu0  ;;  %v5030_v14 = vpop.f32.mrb[19].mxu1  ;;  %v1417_v56 = vadd.f32 %v1416_v36, %v7885_v21 }
 0x35a   :  { %v1348_v10 = vadd.f32 %v1347_v46, %v8882_v58 }
 0x35b   :  { %v4361_v30 = vmul.f32 -1.442695, %v1346_v28 }
 0x35c   :  { %v4362_v3 = vmul.f32 -1.442695, %v1348_v10 }
 0x35d   :  { %7119 = vpow2.f32 %v4361_v30 }
 0x35e   :  { %7121 = vpow2.f32 %v4362_v3 }
 0x367   :  { %v7120_v11 = vpop.eup %7119 }
 0x368   :  { %v1424_v0 = vadd.f32 1.0, %v7120_v11  ;;  %v7122_v24 = vpop.eup %7121 }
 0x369   :  { %v1431_v26 = vadd.f32 1.0, %v7122_v24 }
 0x36a   :  { %7123 = vrcp.f32 %v1424_v0 }
 0x36b   :  { %7125 = vrcp.f32 %v1431_v26 }
 0x374   :  { %v7124_v7 = vpop.eup %7123 }
 0x375   :  { %v1435_v19 = vmul.f32 %v7124_v7, %v1434_v63  ;;  %v7126_v0 = vpop.eup %7125 }
 0x376   :  { %v1438_v18 = vsub.f32 1.0, %v7126_v0  ;;  %v1440_v63 = vmul.f32 %v7126_v0, %v7892_v43 }
 0x377   :  { %v1436_v35 = vadd.f32 %v1435_v19, %v1417_v56 }
 0x378   :  { %v1510_v14 = vpop.f32.mrb[4].mxu0  ;;  %v1581_v28 = vpop.f32.mrb[20].mxu1 }
 0x379   :  { %7127 = vtanh.f32 %v1436_v35  ;;  %v7017_v30 = vadd.f32 %v1510_v14, %v7773_v25  ;;  %v1512_v10 = vpop.f32.mrb[5].mxu0  ;;  %v5065_v3 = vpop.f32.mrb[21].mxu1  ;;  %v1746_v7 = vadd.f32 %v7790_v57, %v1581_v28 }
 0x37a   :  { %v7018_v11 = vadd.f32 %v1512_v10, %v7779_v1 }
 0x37b   :  { %v4363_v46 = vmul.f32 -1.442695, %v7017_v30  ;;  %v8883_v30 = vld [vmem:[#allocation36_spill] sm:$0xff] }
 0x37c   :  { %v4364_v24 = vmul.f32 -1.442695, %v7018_v11 }
 0x37d   :  { %7129 = vpow2.f32 %v4363_v46 }
 0x37e   :  { %7131 = vpow2.f32 %v4364_v24 }
 0x383   :  { %v7128_v58 = vpop.eup %7127 }
 0x384   :  { %v1439_v36 = vmul.f32 %v7128_v58, %v1438_v18  ;;  %v8885_v18 = vld [vmem:[#allocation16_spill] sm:$0xff] }
 0x386   :  { %v8018_v56 = vadd.f32 %v1440_v63, %v1439_v36  ;;  %v8886_v36 = vld [vmem:[#allocation17_spill] sm:$0xff]  ;;  %v8887_v63 = vld [vmem:[#allocation23_spill] sm:$0xff] }
 0x387   :  { %v7130_v19 = vpop.eup %7129 }
 0x388   :  { %v1736_v26 = vadd.f32 1.0, %v7130_v19  ;;  %1443 = vst [vmem:[#allocation9 + $0x8] sm:$0xff] %v8018_v56  ;;  %1650 = vmatmul.mubr.f32.vlgmr.msra.gmra.mrb[20].mxu0 %v8018_v56  ;;  %5099 = vmatmul.mubr.f32.vlgmr.msra.gmra.mrb[22].mxu1 %v8018_v56  ;;  %v7132_v43 = vpop.eup %7131  ;;  %v8888_v19 = vld [vmem:[#allocation18_spill] sm:$0xff] }
 0x389   :  { %6120 = vmatpush1.bf16.msra.mxu0 %v7667_v44  ;;  %6151 = vmatpush3.bf16.msra.mxu1 %v7672_v49  ;;  %v1743_v58 = vadd.f32 1.0, %v7132_v43  ;;  %v8890_v43 = vld [vmem:[#allocation24_spill] sm:$0xff] }
 0x38a   :  { %7133 = vrcp.f32 %v1736_v26  ;;  %6122 = vmatprep.subr.bf16.mxu0 %v7678_v54  ;;  %6152 = vmatprep.subr.bf16.mxu1 %v8863_v48  ;;  %v8889_v26 = vld [vmem:[#allocation19_spill] sm:$0xff] }
 0x38b   :  { %1818 = vmatprep.mubr.f32.mxu0 %v8864_v32  ;;  %5133 = vmatprep.mubr.msk.f32.mxu1 %vm7378_vm1, %v8864_v32  ;;  %7135 = vrcp.f32 %v1743_v58  ;;  %v8891_v58 = vld [vmem:[#allocation20_spill] sm:$0xff] }
 0x38d   :  { %6124 = vmatpush1.bf16.msra.mxu0 %v7681_v59  ;;  %6154 = vmatpush3.bf16.msra.mxu1 %v7685_v62 }
 0x38e   :  { %6126 = vmatprep.subr.bf16.mxu0 %v7691_v4  ;;  %6155 = vmatprep.subr.bf16.mxu1 %v8863_v48 }
 0x391   :  { %6128 = vmatpush1.bf16.msra.mxu0 %v7694_v9  ;;  %6157 = vmatpush3.bf16.msra.mxu1 %v7697_v13 }
 0x392   :  { %6130 = vmatprep.subr.bf16.mxu0 %v7701_v20  ;;  %6158 = vmatprep.subr.bf16.mxu1 %v8863_v48 }
 0x394   :  { %v7134_v35 = vpop.eup %7133 }
 0x395   :  { %v1747_v14 = vmul.f32 %v7134_v35, %v1746_v7  ;;  %6132 = vmatpush1.bf16.msra.mxu0 %v7704_v29  ;;  %6160 = vmatpush3.bf16.msra.mxu1 %v7707_v34  ;;  %v7136_v28 = vpop.eup %7135  ;;  %v8892_v7 = vld [vmem:[#allocation22_spill] sm:$0xff]  ;;  %v8893_v35 = vld [vmem:[#allocation25_spill] sm:$0xff] }
 0x396   :  { %6134 = vmatprep.subr.bf16.mxu0 %v7711_v39  ;;  %6161 = vmatprep.subr.bf16.mxu1 %v8863_v48  ;;  %v1750_v3 = vsub.f32 1.0, %v7136_v28  ;;  %v1752_v0 = vmul.f32 %v7136_v28, %v7933_v47  ;;  %v8884_v47 = vld [vmem:[#allocation21_spill] sm:$0xff] }
 0x397   :  { %v1748_v10 = vadd.f32 %v1747_v14, %v8883_v30  ;;  %v8894_v14 = vld [vmem:[#allocation26_spill] sm:$0xff] }
 0x399   :  { %7137 = vtanh.f32 %v1748_v10  ;;  %6136 = vmatpush1.bf16.msra.mxu0 %v7714_v50  ;;  %6163 = vmatpush3.bf16.msra.mxu1 %v7717_v55 }
 0x39a   :  { %6138 = vmatprep.subr.bf16.mxu0 %v7721_v60  ;;  %6164 = vmatprep.subr.bf16.mxu1 %v8863_v48 }
 0x39d   :  { %6140 = vmatpush1.bf16.msra.mxu0 %v8870_v6  ;;  %6166 = vmatpush3.bf16.msra.mxu1 %v8871_v38 }
 0x39e   :  { %6142 = vmatprep.subr.bf16.mxu0 %v8872_v41  ;;  %6167 = vmatprep.subr.bf16.mxu1 %v8863_v48 }
 0x3a1   :  { %6144 = vmatpush1.bf16.msra.mxu0 %v8873_v17  ;;  %6169 = vmatpush3.bf16.msra.mxu1 %v8874_v37 }
 0x3a2   :  { %6146 = vmatprep.subr.bf16.mxu0 %v8875_v27  ;;  %6170 = vmatprep.subr.bf16.mxu1 %v8863_v48 }
 0x3a3   :  { %v7138_v46 = vpop.eup %7137 }
 0x3a4   :  { %v1751_v11 = vmul.f32 %v7138_v46, %v1750_v3 }
 0x3a5   :  { %6148 = vmatpush1.bf16.msra.mxu0 %v8876_v2  ;;  %6172 = vmatpush3.bf16.msra.mxu1 %v8877_v5 }
 0x3a6   :  { %6174 = vmatprep.subr.bf16.mxu0 %v7493_v12  ;;  %6205 = vmatprep.subr.bf16.mxu1 %v8863_v48  ;;  %v8061_v24 = vadd.f32 %v1752_v0, %v1751_v11 }
 0x3a8   :  { %1819 = vmatmul.mubr.f32.vlgmr.msra.gmra.mrb[20].mxu0 %v8061_v24  ;;  %5134 = vmatmul.mubr.f32.vlgmr.msra.gmra.mrb[24].mxu1 %v8061_v24 }
 0x3a9   :  { %6176 = vmatpush1.bf16.msra.mxu0 %v7495_v15  ;;  %6207 = vmatpush3.bf16.msra.mxu1 %v7529_v40 }
 0x3aa   :  { %6178 = vmatprep.subr.bf16.mxu0 %v7498_v16  ;;  %6208 = vmatprep.subr.bf16.mxu1 %v8863_v48 }
 0x3ab   :  { %1983 = vmatprep.mubr.f32.mxu0 %v8864_v32  ;;  %5168 = vmatprep.mubr.msk.f32.mxu1 %vm7378_vm1, %v8864_v32 }
 0x3ad   :  { %6180 = vmatpush1.bf16.msra.mxu0 %v7506_v22  ;;  %6210 = vmatpush3.bf16.msra.mxu1 %v7545_v51 }
 0x3ae   :  { %6182 = vmatprep.subr.bf16.mxu0 %v7509_v23  ;;  %6211 = vmatprep.subr.bf16.mxu1 %v8863_v48 }
 0x3b1   :  { %6184 = vmatpush1.bf16.msra.mxu0 %v7523_v31  ;;  %6213 = vmatpush3.bf16.msra.mxu1 %v7561_v61 }
 0x3b2   :  { %6186 = vmatprep.subr.bf16.mxu0 %v7526_v33  ;;  %6214 = vmatprep.subr.bf16.mxu1 %v8863_v48 }
 0x3b5   :  { %6188 = vmatpush1.bf16.msra.mxu0 %v7536_v42  ;;  %6216 = vmatpush3.bf16.msra.mxu1 %v7577_v8 }
 0x3b6   :  { %6190 = vmatprep.subr.bf16.mxu0 %v7539_v45  ;;  %6217 = vmatprep.subr.bf16.mxu1 %v8863_v48 }
 0x3b9   :  { %6192 = vmatpush1.bf16.msra.mxu0 %v7552_v53  ;;  %6219 = vmatpush3.bf16.msra.mxu1 %v8884_v47 }
 0x3ba   :  { %6194 = vmatprep.subr.bf16.mxu0 %v8885_v18  ;;  %6220 = vmatprep.subr.bf16.mxu1 %v8863_v48 }
 0x3bd   :  { %6196 = vmatpush1.bf16.msra.mxu0 %v8886_v36  ;;  %6222 = vmatpush3.bf16.msra.mxu1 %v8887_v63 }
 0x3be   :  { %6198 = vmatprep.subr.bf16.mxu0 %v8888_v19  ;;  %6223 = vmatprep.subr.bf16.mxu1 %v8863_v48 }
 0x3c1   :  { %6200 = vmatpush1.bf16.msra.mxu0 %v8889_v26  ;;  %6225 = vmatpush3.bf16.msra.mxu1 %v8890_v43 }
 0x3c2   :  { %6202 = vmatprep.subr.bf16.mxu0 %v8891_v58  ;;  %6226 = vmatprep.subr.bf16.mxu1 %v8863_v48 }
 0x3c5   :  { %6204 = vmatpush1.bf16.msra.mxu0 %v8892_v7  ;;  %6228 = vmatpush3.bf16.msra.mxu1 %v8893_v35 }
 0x3c6   :  { %6230 = vmatprep.subr.bf16.mxu0 %v7493_v12  ;;  %6261 = vmatprep.subr.bf16.mxu1 %v8863_v48 }
 0x3c8   :  { %1984 = vmatmul.mubr.f32.vlgmr.msra.gmra.mrb[6].mxu0 %v8061_v24  ;;  %5169 = vmatmul.mubr.f32.vlgmr.msra.gmra.mrb[26].mxu1 %v8061_v24 }
 0x3c9   :  { %6232 = vmatpush1.bf16.msra.mxu0 %v7495_v15  ;;  %6263 = vmatpush3.bf16.msra.mxu1 %v7529_v40 }
 0x3ca   :  { %6234 = vmatprep.subr.bf16.mxu0 %v7498_v16  ;;  %6264 = vmatprep.subr.bf16.mxu1 %v8863_v48 }
 0x3cb   :  { %2124 = vmatprep.mubr.f32.mxu0 %v8864_v32  ;;  %5203 = vmatprep.mubr.msk.f32.mxu1 %vm7378_vm1, %v8864_v32 }
 0x3cd   :  { %6236 = vmatpush1.bf16.msra.mxu0 %v7506_v22  ;;  %6266 = vmatpush3.bf16.msra.mxu1 %v7545_v51 }
 0x3ce   :  { %6238 = vmatprep.subr.bf16.mxu0 %v7509_v23  ;;  %6267 = vmatprep.subr.bf16.mxu1 %v8863_v48 }
 0x3d1   :  { %6240 = vmatpush1.bf16.msra.mxu0 %v7523_v31  ;;  %6269 = vmatpush3.bf16.msra.mxu1 %v7561_v61 }
 0x3d2   :  { %6242 = vmatprep.subr.bf16.mxu0 %v7526_v33  ;;  %6270 = vmatprep.subr.bf16.mxu1 %v8863_v48 }
 0x3d5   :  { %6244 = vmatpush1.bf16.msra.mxu0 %v7536_v42  ;;  %6272 = vmatpush3.bf16.msra.mxu1 %v7577_v8 }
 0x3d6   :  { %6246 = vmatprep.subr.bf16.mxu0 %v7539_v45  ;;  %6273 = vmatprep.subr.bf16.mxu1 %v8863_v48 }
 0x3d9   :  { %6248 = vmatpush1.bf16.msra.mxu0 %v7552_v53  ;;  %6275 = vmatpush3.bf16.msra.mxu1 %v8884_v47 }
 0x3da   :  { %6250 = vmatprep.subr.bf16.mxu0 %v8885_v18  ;;  %6276 = vmatprep.subr.bf16.mxu1 %v8863_v48 }
 0x3dd   :  { %6252 = vmatpush1.bf16.msra.mxu0 %v8886_v36  ;;  %6278 = vmatpush3.bf16.msra.mxu1 %v8887_v63 }
 0x3de   :  { %6254 = vmatprep.subr.bf16.mxu0 %v8888_v19  ;;  %6279 = vmatprep.subr.bf16.mxu1 %v8863_v48 }
 0x3e1   :  { %6256 = vmatpush1.bf16.msra.mxu0 %v8889_v26  ;;  %6281 = vmatpush3.bf16.msra.mxu1 %v8890_v43 }
 0x3e2   :  { %6258 = vmatprep.subr.bf16.mxu0 %v8891_v58  ;;  %6282 = vmatprep.subr.bf16.mxu1 %v8863_v48  ;;  %v8895_v58 = vld [vmem:[#allocation42_spill] sm:$0xff] }
 0x3e5   :  { %6260 = vmatpush1.bf16.msra.mxu0 %v8892_v7  ;;  %6284 = vmatpush3.bf16.msra.mxu1 %v8893_v35 }
 0x3e6   :  { %6286 = vmatprep.subr.bf16.mxu0 %v8894_v14  ;;  %6317 = vmatprep.subr.bf16.mxu1 %v8863_v48 }
 0x45b   :  { %v1722_v30 = vpop.f32.mrb[22].mxu1 }
 0x45c   :  { %v5100_v10 = vpop.f32.mrb[23].mxu1  ;;  %v1909_v36 = vadd.f32 %v7790_v57, %v1722_v30 }
 0x47b   :  { %v1820_v28 = vpop.f32.mrb[20].mxu0  ;;  %v1891_v3 = vpop.f32.mrb[24].mxu1 }
 0x47c   :  { %v1821_v46 = vadd.f32 %v1820_v28, %v7875_v52  ;;  %v1822_v11 = vpop.f32.mrb[21].mxu0  ;;  %v5135_v0 = vpop.f32.mrb[25].mxu1  ;;  %v1892_v18 = vadd.f32 %v1891_v3, %v7885_v21 }
 0x47d   :  { %v1823_v26 = vadd.f32 %v1822_v11, %v8895_v58 }
 0x47e   :  { %v4365_v43 = vmul.f32 -1.442695, %v1821_v46 }
 0x47f   :  { %v4366_v19 = vmul.f32 -1.442695, %v1823_v26 }
 0x480   :  { %7139 = vpow2.f32 %v4365_v43 }
 0x481   :  { %7141 = vpow2.f32 %v4366_v19 }
 0x48a   :  { %v7140_v7 = vpop.eup %7139 }
 0x48b   :  { %v1899_v35 = vadd.f32 1.0, %v7140_v7  ;;  %v7142_v14 = vpop.eup %7141 }
 0x48c   :  { %v1906_v63 = vadd.f32 1.0, %v7142_v14 }
 0x48d   :  { %7143 = vrcp.f32 %v1899_v35 }
 0x48e   :  { %7145 = vrcp.f32 %v1906_v63 }
 0x497   :  { %v7144_v10 = vpop.eup %7143 }
 0x498   :  { %v1910_v47 = vmul.f32 %v7144_v10, %v1909_v36  ;;  %v7146_v35 = vpop.eup %7145 }
 0x499   :  { %v1913_v30 = vsub.f32 1.0, %v7146_v35  ;;  %v1915_v36 = vmul.f32 %v7146_v35, %v8018_v56 }
 0x49a   :  { %v1911_v28 = vadd.f32 %v1910_v47, %v1892_v18 }
 0x49b   :  { %v1985_v0 = vpop.f32.mrb[6].mxu0  ;;  %v2056_v46 = vpop.f32.mrb[26].mxu1 }
 0x49c   :  { %7147 = vtanh.f32 %v1911_v28  ;;  %v7019_v43 = vadd.f32 %v1985_v0, %v7773_v25  ;;  %v1987_v26 = vpop.f32.mrb[7].mxu0  ;;  %v5170_v19 = vpop.f32.mrb[27].mxu1  ;;  %v2221_v10 = vadd.f32 %v7790_v57, %v2056_v46 }
 0x49d   :  { %v7020_v7 = vadd.f32 %v1987_v26, %v7779_v1 }
 0x49e   :  { %v4367_v11 = vmul.f32 -1.442695, %v7019_v43  ;;  %v8896_v43 = vld [vmem:[#allocation35_spill] sm:$0xff] }
 0x49f   :  { %v4368_v14 = vmul.f32 -1.442695, %v7020_v7 }
 0x4a0   :  { %7149 = vpow2.f32 %v4367_v11 }
 0x4a1   :  { %7151 = vpow2.f32 %v4368_v14  ;;  %v8898_v14 = vld [vmem:[#allocation16_spill] sm:$0xff] }
 0x4a6   :  { %v7148_v58 = vpop.eup %7147 }
 0x4a7   :  { %v1914_v3 = vmul.f32 %v7148_v58, %v1913_v30  ;;  %v8899_v30 = vld [vmem:[#allocation17_spill] sm:$0xff] }
 0x4a9   :  { %v8144_v47 = vadd.f32 %v1915_v36, %v1914_v3  ;;  %v8900_v3 = vld [vmem:[#allocation23_spill] sm:$0xff]  ;;  %v8901_v36 = vld [vmem:[#allocation18_spill] sm:$0xff] }
 0x4aa   :  { %v7150_v18 = vpop.eup %7149 }
 0x4ab   :  { %v2211_v63 = vadd.f32 1.0, %v7150_v18  ;;  %1918 = vst [vmem:[#allocation9 + $0x10] sm:$0xff] %v8144_v47  ;;  %2125 = vmatmul.mubr.f32.vlgmr.msra.gmra.mrb[22].mxu0 %v8144_v47  ;;  %5204 = vmatmul.mubr.f32.vlgmr.msra.gmra.mrb[28].mxu1 %v8144_v47  ;;  %v7152_v56 = vpop.eup %7151  ;;  %v8902_v18 = vld [vmem:[#allocation19_spill] sm:$0xff] }
 0x4ac   :  { %6288 = vmatpush1.bf16.msra.mxu0 %v7667_v44  ;;  %6319 = vmatpush3.bf16.msra.mxu1 %v7672_v49  ;;  %v2218_v58 = vadd.f32 1.0, %v7152_v56  ;;  %v8904_v56 = vld [vmem:[#allocation20_spill] sm:$0xff] }
 0x4ad   :  { %7153 = vrcp.f32 %v2211_v63  ;;  %6290 = vmatprep.subr.bf16.mxu0 %v7678_v54  ;;  %6320 = vmatprep.subr.bf16.mxu1 %v8863_v48  ;;  %v8903_v63 = vld [vmem:[#allocation24_spill] sm:$0xff] }
 0x4ae   :  { %2293 = vmatprep.mubr.f32.mxu0 %v8864_v32  ;;  %5238 = vmatprep.mubr.msk.f32.mxu1 %vm7378_vm1, %v8864_v32  ;;  %7155 = vrcp.f32 %v2218_v58  ;;  %v8905_v58 = vld [vmem:[#allocation22_spill] sm:$0xff] }
 0x4b0   :  { %6292 = vmatpush1.bf16.msra.mxu0 %v7681_v59  ;;  %6322 = vmatpush3.bf16.msra.mxu1 %v7685_v62 }
 0x4b1   :  { %6294 = vmatprep.subr.bf16.mxu0 %v7691_v4  ;;  %6323 = vmatprep.subr.bf16.mxu1 %v8863_v48 }
 0x4b4   :  { %6296 = vmatpush1.bf16.msra.mxu0 %v7694_v9  ;;  %6325 = vmatpush3.bf16.msra.mxu1 %v7697_v13 }
 0x4b5   :  { %6298 = vmatprep.subr.bf16.mxu0 %v7701_v20  ;;  %6326 = vmatprep.subr.bf16.mxu1 %v8863_v48 }
 0x4b7   :  { %v7154_v28 = vpop.eup %7153 }
 0x4b8   :  { %v2222_v0 = vmul.f32 %v7154_v28, %v2221_v10  ;;  %6300 = vmatpush1.bf16.msra.mxu0 %v7704_v29  ;;  %6328 = vmatpush3.bf16.msra.mxu1 %v7707_v34  ;;  %v7156_v57 = vpop.eup %7155  ;;  %v8906_v10 = vld [vmem:[#allocation25_spill] sm:$0xff]  ;;  %v8907_v28 = vld [vmem:[#allocation26_spill] sm:$0xff] }
 0x4b9   :  { %6302 = vmatprep.subr.bf16.mxu0 %v7711_v39  ;;  %6329 = vmatprep.subr.bf16.mxu1 %v8863_v48  ;;  %v2225_v46 = vsub.f32 1.0, %v7156_v57  ;;  %v2227_v7 = vmul.f32 %v7156_v57, %v8061_v24  ;;  %v8897_v24 = vld [vmem:[#allocation21_spill] sm:$0xff] }
 0x4ba   :  { %v2223_v26 = vadd.f32 %v2222_v0, %v8896_v43 }
 0x4bc   :  { %7157 = vtanh.f32 %v2223_v26  ;;  %6304 = vmatpush1.bf16.msra.mxu0 %v7714_v50  ;;  %6331 = vmatpush3.bf16.msra.mxu1 %v7717_v55 }
 0x4bd   :  { %6306 = vmatprep.subr.bf16.mxu0 %v7721_v60  ;;  %6332 = vmatprep.subr.bf16.mxu1 %v8863_v48 }
 0x4c0   :  { %6308 = vmatpush1.bf16.msra.mxu0 %v8870_v6  ;;  %6334 = vmatpush3.bf16.msra.mxu1 %v8871_v38 }
 0x4c1   :  { %6310 = vmatprep.subr.bf16.mxu0 %v8872_v41  ;;  %6335 = vmatprep.subr.bf16.mxu1 %v8863_v48 }
 0x4c4   :  { %6312 = vmatpush1.bf16.msra.mxu0 %v8873_v17  ;;  %6337 = vmatpush3.bf16.msra.mxu1 %v8874_v37 }
 0x4c5   :  { %6314 = vmatprep.subr.bf16.mxu0 %v8875_v27  ;;  %6338 = vmatprep.subr.bf16.mxu1 %v8863_v48 }
 0x4c6   :  { %v7158_v19 = vpop.eup %7157 }
 0x4c7   :  { %v2226_v11 = vmul.f32 %v7158_v19, %v2225_v46 }
 0x4c8   :  { %6316 = vmatpush1.bf16.msra.mxu0 %v8876_v2  ;;  %6340 = vmatpush3.bf16.msra.mxu1 %v8877_v5 }
 0x4c9   :  { %v8185_v35 = vadd.f32 %v2227_v7, %v2226_v11  ;;  %6342 = vmatprep.subr.bf16.mxu0 %v7493_v12  ;;  %6373 = vmatprep.subr.bf16.mxu1 %v8863_v48 }
 0x4cb   :  { %2294 = vmatmul.mubr.f32.vlgmr.msra.gmra.mrb[22].mxu0 %v8185_v35  ;;  %5239 = vmatmul.mubr.f32.vlgmr.msra.gmra.mrb[30].mxu1 %v8185_v35 }
 0x4cc   :  { %6344 = vmatpush1.bf16.msra.mxu0 %v7495_v15  ;;  %6375 = vmatpush3.bf16.msra.mxu1 %v7529_v40 }
 0x4cd   :  { %6346 = vmatprep.subr.bf16.mxu0 %v7498_v16  ;;  %6376 = vmatprep.subr.bf16.mxu1 %v8863_v48 }
 0x4ce   :  { %2458 = vmatprep.mubr.f32.mxu0 %v8864_v32  ;;  %5273 = vmatprep.mubr.msk.f32.mxu1 %vm7378_vm1, %v8864_v32 }
 0x4d0   :  { %6348 = vmatpush1.bf16.msra.mxu0 %v7506_v22  ;;  %6378 = vmatpush3.bf16.msra.mxu1 %v7545_v51 }
 0x4d1   :  { %6350 = vmatprep.subr.bf16.mxu0 %v7509_v23  ;;  %6379 = vmatprep.subr.bf16.mxu1 %v8863_v48 }
 0x4d4   :  { %6352 = vmatpush1.bf16.msra.mxu0 %v7523_v31  ;;  %6381 = vmatpush3.bf16.msra.mxu1 %v7561_v61 }
 0x4d5   :  { %6354 = vmatprep.subr.bf16.mxu0 %v7526_v33  ;;  %6382 = vmatprep.subr.bf16.mxu1 %v8863_v48 }
 0x4d8   :  { %6356 = vmatpush1.bf16.msra.mxu0 %v7536_v42  ;;  %6384 = vmatpush3.bf16.msra.mxu1 %v7577_v8 }
 0x4d9   :  { %6358 = vmatprep.subr.bf16.mxu0 %v7539_v45  ;;  %6385 = vmatprep.subr.bf16.mxu1 %v8863_v48 }
 0x4dc   :  { %6360 = vmatpush1.bf16.msra.mxu0 %v7552_v53  ;;  %6387 = vmatpush3.bf16.msra.mxu1 %v8897_v24 }
 0x4dd   :  { %6362 = vmatprep.subr.bf16.mxu0 %v8898_v14  ;;  %6388 = vmatprep.subr.bf16.mxu1 %v8863_v48 }
 0x4e0   :  { %6364 = vmatpush1.bf16.msra.mxu0 %v8899_v30  ;;  %6390 = vmatpush3.bf16.msra.mxu1 %v8900_v3 }
 0x4e1   :  { %6366 = vmatprep.subr.bf16.mxu0 %v8901_v36  ;;  %6391 = vmatprep.subr.bf16.mxu1 %v8863_v48 }
 0x4e4   :  { %6368 = vmatpush1.bf16.msra.mxu0 %v8902_v18  ;;  %6393 = vmatpush3.bf16.msra.mxu1 %v8903_v63 }
 0x4e5   :  { %6370 = vmatprep.subr.bf16.mxu0 %v8904_v56  ;;  %6394 = vmatprep.subr.bf16.mxu1 %v8863_v48 }
 0x4e8   :  { %6372 = vmatpush1.bf16.msra.mxu0 %v8905_v58  ;;  %6396 = vmatpush3.bf16.msra.mxu1 %v8906_v10 }
 0x4e9   :  { %6398 = vmatprep.subr.bf16.mxu0 %v7493_v12  ;;  %6429 = vmatprep.subr.bf16.mxu1 %v8863_v48 }
 0x4eb   :  { %2459 = vmatmul.mubr.f32.vlgmr.msra.gmra.mrb[8].mxu0 %v8185_v35  ;;  %5274 = vmatmul.mubr.f32.vlgmr.msra.gmra.mrb[32].mxu1 %v8185_v35 }
 0x4ec   :  { %6400 = vmatpush1.bf16.msra.mxu0 %v7495_v15  ;;  %6431 = vmatpush3.bf16.msra.mxu1 %v7529_v40 }
 0x4ed   :  { %6402 = vmatprep.subr.bf16.mxu0 %v7498_v16  ;;  %6432 = vmatprep.subr.bf16.mxu1 %v8863_v48 }
 0x4ee   :  { %2599 = vmatprep.mubr.f32.mxu0 %v8864_v32  ;;  %5308 = vmatprep.mubr.msk.f32.mxu1 %vm7378_vm1, %v8864_v32 }
 0x4f0   :  { %6404 = vmatpush1.bf16.msra.mxu0 %v7506_v22  ;;  %6434 = vmatpush3.bf16.msra.mxu1 %v7545_v51 }
 0x4f1   :  { %6406 = vmatprep.subr.bf16.mxu0 %v7509_v23  ;;  %6435 = vmatprep.subr.bf16.mxu1 %v8863_v48 }
 0x4f4   :  { %6408 = vmatpush1.bf16.msra.mxu0 %v7523_v31  ;;  %6437 = vmatpush3.bf16.msra.mxu1 %v7561_v61 }
 0x4f5   :  { %6410 = vmatprep.subr.bf16.mxu0 %v7526_v33  ;;  %6438 = vmatprep.subr.bf16.mxu1 %v8863_v48 }
 0x4f8   :  { %6412 = vmatpush1.bf16.msra.mxu0 %v7536_v42  ;;  %6440 = vmatpush3.bf16.msra.mxu1 %v7577_v8 }
 0x4f9   :  { %6414 = vmatprep.subr.bf16.mxu0 %v7539_v45  ;;  %6441 = vmatprep.subr.bf16.mxu1 %v8863_v48 }
 0x4fc   :  { %6416 = vmatpush1.bf16.msra.mxu0 %v7552_v53  ;;  %6443 = vmatpush3.bf16.msra.mxu1 %v8897_v24 }
 0x4fd   :  { %6418 = vmatprep.subr.bf16.mxu0 %v8898_v14  ;;  %6444 = vmatprep.subr.bf16.mxu1 %v8863_v48 }
 0x500   :  { %6420 = vmatpush1.bf16.msra.mxu0 %v8899_v30  ;;  %6446 = vmatpush3.bf16.msra.mxu1 %v8900_v3 }
 0x501   :  { %6422 = vmatprep.subr.bf16.mxu0 %v8901_v36  ;;  %6447 = vmatprep.subr.bf16.mxu1 %v8863_v48 }
 0x504   :  { %6424 = vmatpush1.bf16.msra.mxu0 %v8902_v18  ;;  %6449 = vmatpush3.bf16.msra.mxu1 %v8903_v63 }
 0x505   :  { %6426 = vmatprep.subr.bf16.mxu0 %v8904_v56  ;;  %6450 = vmatprep.subr.bf16.mxu1 %v8863_v48  ;;  %v8908_v56 = vld [vmem:[#allocation42_spill] sm:$0xff] }
 0x508   :  { %6428 = vmatpush1.bf16.msra.mxu0 %v8905_v58  ;;  %6452 = vmatpush3.bf16.msra.mxu1 %v8906_v10 }
 0x509   :  { %6454 = vmatprep.subr.bf16.mxu0 %v8907_v28  ;;  %6485 = vmatprep.subr.bf16.mxu1 %v8863_v48 }
 0x57e   :  { %v2197_v0 = vpop.f32.mrb[28].mxu1 }
 0x57f   :  { %v5205_v43 = vpop.f32.mrb[29].mxu1 }
 0x580   :  { %v8268_v43 = vld [vmem:[%s8744_s7] ss:$0 sm:$0xff] }
 0x59e   :  { %v2295_v26 = vpop.f32.mrb[22].mxu0  ;;  %v2366_v57 = vpop.f32.mrb[30].mxu1 }
 0x59f   :  { %v2296_v46 = vadd.f32 %v2295_v26, %v7875_v52  ;;  %v2297_v19 = vpop.f32.mrb[23].mxu0  ;;  %v5240_v11 = vpop.f32.mrb[31].mxu1  ;;  %v2384_v26 = vadd.f32 %v8268_v43, %v2197_v0 }
 0x5a0   :  { %v2298_v63 = vadd.f32 %v2297_v19, %v8908_v56 }
 0x5a1   :  { %v4369_v7 = vmul.f32 -1.442695, %v2296_v46  ;;  %v2367_v46 = vadd.f32 %v2366_v57, %v7885_v21 }
 0x5a2   :  { %v4370_v18 = vmul.f32 -1.442695, %v2298_v63 }
 0x5a3   :  { %7159 = vpow2.f32 %v4369_v7 }
 0x5a4   :  { %7161 = vpow2.f32 %v4370_v18 }
 0x5ad   :  { %v7160_v58 = vpop.eup %7159 }
 0x5ae   :  { %v2374_v10 = vadd.f32 1.0, %v7160_v58  ;;  %v7162_v28 = vpop.eup %7161 }
 0x5af   :  { %v2381_v36 = vadd.f32 1.0, %v7162_v28 }
 0x5b0   :  { %7163 = vrcp.f32 %v2374_v10 }
 0x5b1   :  { %7165 = vrcp.f32 %v2381_v36 }
 0x5ba   :  { %v7164_v52 = vpop.eup %7163 }
 0x5bb   :  { %v2385_v11 = vmul.f32 %v7164_v52, %v2384_v26  ;;  %v7166_v3 = vpop.eup %7165 }
 0x5bc   :  { %v2388_v0 = vsub.f32 1.0, %v7166_v3  ;;  %v2390_v52 = vmul.f32 %v7166_v3, %v8144_v47 }
 0x5bd   :  { %v2386_v19 = vadd.f32 %v2385_v11, %v2367_v46  ;;  %v8909_v11 = vld [vmem:[#allocation38_spill] sm:$0xff] }
 0x5be   :  { %v2460_v63 = vpop.f32.mrb[8].mxu0  ;;  %v2531_v18 = vpop.f32.mrb[32].mxu1 }
 0x5bf   :  { %7167 = vtanh.f32 %v2386_v19  ;;  %v7021_v58 = vadd.f32 %v2460_v63, %v7773_v25  ;;  %v2462_v10 = vpop.f32.mrb[9].mxu0  ;;  %v5275_v28 = vpop.f32.mrb[33].mxu1 }
 0x5c0   :  { %v7022_v56 = vadd.f32 %v2462_v10, %v7779_v1 }
 0x5c1   :  { %v4371_v7 = vmul.f32 -1.442695, %v7021_v58 }
 0x5c2   :  { %v4372_v30 = vmul.f32 -1.442695, %v7022_v56 }
 0x5c3   :  { %7169 = vpow2.f32 %v4371_v7 }
 0x5c4   :  { %7171 = vpow2.f32 %v4372_v30  ;;  %v2696_v30 = vadd.f32 %v8268_v43, %v2531_v18 }
 0x5c9   :  { %v7168_v14 = vpop.eup %7167 }
 0x5ca   :  { %v2389_v57 = vmul.f32 %v7168_v14, %v2388_v0  ;;  %v8911_v0 = vld [vmem:[#allocation17_spill] sm:$0xff] }
 0x5cc   :  { %v8275_v36 = vadd.f32 %v2390_v52, %v2389_v57  ;;  %v8912_v57 = vld [vmem:[#allocation23_spill] sm:$0xff]  ;;  %v8913_v52 = vld [vmem:[#allocation18_spill] sm:$0xff] }
 0x5cd   :  { %v7170_v26 = vpop.eup %7169 }
 0x5ce   :  { %v2686_v46 = vadd.f32 1.0, %v7170_v26  ;;  %2393 = vst [vmem:[#allocation9 + $0x18] sm:$0xff] %v8275_v36  ;;  %2600 = vmatmul.mubr.f32.vlgmr.msra.gmra.mrb[24].mxu0 %v8275_v36  ;;  %5309 = vmatmul.mubr.f32.vlgmr.msra.gmra.mrb[34].mxu1 %v8275_v36  ;;  %v7172_v47 = vpop.eup %7171  ;;  %v8914_v26 = vld [vmem:[#allocation19_spill] sm:$0xff] }
 0x5cf   :  { %6456 = vmatpush1.bf16.msra.mxu0 %v7667_v44  ;;  %6487 = vmatpush3.bf16.msra.mxu1 %v7672_v49  ;;  %v2693_v14 = vadd.f32 1.0, %v7172_v47  ;;  %v8916_v47 = vld [vmem:[#allocation20_spill] sm:$0xff] }
 0x5d0   :  { %7173 = vrcp.f32 %v2686_v46  ;;  %6458 = vmatprep.subr.bf16.mxu0 %v7678_v54  ;;  %6488 = vmatprep.subr.bf16.mxu1 %v8863_v48  ;;  %v8915_v46 = vld [vmem:[#allocation24_spill] sm:$0xff] }
 0x5d1   :  { %2768 = vmatprep.mubr.f32.mxu0 %v8864_v32  ;;  %5343 = vmatprep.mubr.msk.f32.mxu1 %vm7378_vm1, %v8864_v32  ;;  %7175 = vrcp.f32 %v2693_v14  ;;  %v8917_v14 = vld [vmem:[#allocation22_spill] sm:$0xff] }
 0x5d3   :  { %6460 = vmatpush1.bf16.msra.mxu0 %v7681_v59  ;;  %6490 = vmatpush3.bf16.msra.mxu1 %v7685_v62 }
 0x5d4   :  { %6462 = vmatprep.subr.bf16.mxu0 %v7691_v4  ;;  %6491 = vmatprep.subr.bf16.mxu1 %v8863_v48 }
 0x5d7   :  { %6464 = vmatpush1.bf16.msra.mxu0 %v7694_v9  ;;  %6493 = vmatpush3.bf16.msra.mxu1 %v7697_v13 }
 0x5d8   :  { %6466 = vmatprep.subr.bf16.mxu0 %v7701_v20  ;;  %6494 = vmatprep.subr.bf16.mxu1 %v8863_v48 }
 0x5da   :  { %v7174_v3 = vpop.eup %7173 }
 0x5db   :  { %v2697_v56 = vmul.f32 %v7174_v3, %v2696_v30  ;;  %6468 = vmatpush1.bf16.msra.mxu0 %v7704_v29  ;;  %6496 = vmatpush3.bf16.msra.mxu1 %v7707_v34  ;;  %v7176_v63 = vpop.eup %7175  ;;  %v8918_v30 = vld [vmem:[#allocation25_spill] sm:$0xff]  ;;  %v8919_v3 = vld [vmem:[#allocation26_spill] sm:$0xff] }
 0x5dc   :  { %6470 = vmatprep.subr.bf16.mxu0 %v7711_v39  ;;  %6497 = vmatprep.subr.bf16.mxu1 %v8863_v48  ;;  %v2700_v18 = vsub.f32 1.0, %v7176_v63  ;;  %v2702_v28 = vmul.f32 %v7176_v63, %v8185_v35  ;;  %v8910_v35 = vld [vmem:[#allocation16_spill] sm:$0xff] }
 0x5dd   :  { %v2698_v19 = vadd.f32 %v2697_v56, %v8909_v11 }
 0x5df   :  { %7177 = vtanh.f32 %v2698_v19  ;;  %6472 = vmatpush1.bf16.msra.mxu0 %v7714_v50  ;;  %6499 = vmatpush3.bf16.msra.mxu1 %v7717_v55 }
 0x5e0   :  { %6474 = vmatprep.subr.bf16.mxu0 %v7721_v60  ;;  %6500 = vmatprep.subr.bf16.mxu1 %v8863_v48 }
 0x5e3   :  { %6476 = vmatpush1.bf16.msra.mxu0 %v8870_v6  ;;  %6502 = vmatpush3.bf16.msra.mxu1 %v8871_v38 }
 0x5e4   :  { %6478 = vmatprep.subr.bf16.mxu0 %v8872_v41  ;;  %6503 = vmatprep.subr.bf16.mxu1 %v8863_v48 }
 0x5e7   :  { %6480 = vmatpush1.bf16.msra.mxu0 %v8873_v17  ;;  %6505 = vmatpush3.bf16.msra.mxu1 %v8874_v37 }
 0x5e8   :  { %6482 = vmatprep.subr.bf16.mxu0 %v8875_v27  ;;  %6506 = vmatprep.subr.bf16.mxu1 %v8863_v48 }
 0x5e9   :  { %v7178_v58 = vpop.eup %7177 }
 0x5ea   :  { %v2701_v10 = vmul.f32 %v7178_v58, %v2700_v18  ;;  %v8920_v18 = vld [vmem:[#allocation41_spill] sm:$0xff] }
 0x5eb   :  { %6484 = vmatpush1.bf16.msra.mxu0 %v8876_v2  ;;  %6508 = vmatpush3.bf16.msra.mxu1 %v8877_v5 }
 0x5ec   :  { %6510 = vmatprep.subr.bf16.mxu0 %v7493_v12  ;;  %6541 = vmatprep.subr.bf16.mxu1 %v8863_v48  ;;  %v8318_v7 = vadd.f32 %v2702_v28, %v2701_v10 }
 0x5ee   :  { %2769 = vmatmul.mubr.f32.vlgmr.msra.gmra.mrb[24].mxu0 %v8318_v7  ;;  %5344 = vmatmul.mubr.f32.vlgmr.msra.gmra.mrb[36].mxu1 %v8318_v7 }
 0x5ef   :  { %6512 = vmatpush1.bf16.msra.mxu0 %v7495_v15  ;;  %6543 = vmatpush3.bf16.msra.mxu1 %v7529_v40 }
 0x5f0   :  { %6514 = vmatprep.subr.bf16.mxu0 %v7498_v16  ;;  %6544 = vmatprep.subr.bf16.mxu1 %v8863_v48 }
 0x5f1   :  { %2933 = vmatprep.mubr.f32.mxu0 %v8864_v32  ;;  %5378 = vmatprep.mubr.msk.f32.mxu1 %vm7378_vm1, %v8864_v32 }
 0x5f3   :  { %6516 = vmatpush1.bf16.msra.mxu0 %v7506_v22  ;;  %6546 = vmatpush3.bf16.msra.mxu1 %v7545_v51 }
 0x5f4   :  { %6518 = vmatprep.subr.bf16.mxu0 %v7509_v23  ;;  %6547 = vmatprep.subr.bf16.mxu1 %v8863_v48 }
 0x5f7   :  { %6520 = vmatpush1.bf16.msra.mxu0 %v7523_v31  ;;  %6549 = vmatpush3.bf16.msra.mxu1 %v7561_v61 }
 0x5f8   :  { %6522 = vmatprep.subr.bf16.mxu0 %v7526_v33  ;;  %6550 = vmatprep.subr.bf16.mxu1 %v8863_v48 }
 0x5fb   :  { %6524 = vmatpush1.bf16.msra.mxu0 %v7536_v42  ;;  %6552 = vmatpush3.bf16.msra.mxu1 %v7577_v8 }
 0x5fc   :  { %6526 = vmatprep.subr.bf16.mxu0 %v7539_v45  ;;  %6553 = vmatprep.subr.bf16.mxu1 %v8863_v48 }
 0x5ff   :  { %6528 = vmatpush1.bf16.msra.mxu0 %v7552_v53  ;;  %6555 = vmatpush3.bf16.msra.mxu1 %v8897_v24 }
 0x600   :  { %6530 = vmatprep.subr.bf16.mxu0 %v8910_v35  ;;  %6556 = vmatprep.subr.bf16.mxu1 %v8863_v48 }
 0x603   :  { %6532 = vmatpush1.bf16.msra.mxu0 %v8911_v0  ;;  %6558 = vmatpush3.bf16.msra.mxu1 %v8912_v57 }
 0x604   :  { %6534 = vmatprep.subr.bf16.mxu0 %v8913_v52  ;;  %6559 = vmatprep.subr.bf16.mxu1 %v8863_v48 }
 0x607   :  { %6536 = vmatpush1.bf16.msra.mxu0 %v8914_v26  ;;  %6561 = vmatpush3.bf16.msra.mxu1 %v8915_v46 }
 0x608   :  { %6538 = vmatprep.subr.bf16.mxu0 %v8916_v47  ;;  %6562 = vmatprep.subr.bf16.mxu1 %v8863_v48 }
 0x60b   :  { %6540 = vmatpush1.bf16.msra.mxu0 %v8917_v14  ;;  %6564 = vmatpush3.bf16.msra.mxu1 %v8918_v30 }
 0x60c   :  { %6566 = vmatprep.subr.bf16.mxu0 %v7493_v12  ;;  %6597 = vmatprep.subr.bf16.mxu1 %v8863_v48 }
 0x60e   :  { %2934 = vmatmul.mubr.f32.vlgmr.msra.gmra.mrb[10].mxu0 %v8318_v7  ;;  %5379 = vmatmul.mubr.f32.vlgmr.msra.gmra.mrb[38].mxu1 %v8318_v7 }
 0x60f   :  { %6568 = vmatpush1.bf16.msra.mxu0 %v7495_v15  ;;  %6599 = vmatpush3.bf16.msra.mxu1 %v7529_v40 }
 0x610   :  { %6570 = vmatprep.subr.bf16.mxu0 %v7498_v16  ;;  %6600 = vmatprep.subr.bf16.mxu1 %v8863_v48 }
 0x611   :  { %3074 = vmatprep.mubr.f32.mxu0 %v8864_v32  ;;  %5413 = vmatprep.mubr.msk.f32.mxu1 %vm7378_vm1, %v8864_v32 }
 0x613   :  { %6572 = vmatpush1.bf16.msra.mxu0 %v7506_v22  ;;  %6602 = vmatpush3.bf16.msra.mxu1 %v7545_v51 }
 0x614   :  { %6574 = vmatprep.subr.bf16.mxu0 %v7509_v23  ;;  %6603 = vmatprep.subr.bf16.mxu1 %v8863_v48 }
 0x617   :  { %6576 = vmatpush1.bf16.msra.mxu0 %v7523_v31  ;;  %6605 = vmatpush3.bf16.msra.mxu1 %v7561_v61 }
 0x618   :  { %6578 = vmatprep.subr.bf16.mxu0 %v7526_v33  ;;  %6606 = vmatprep.subr.bf16.mxu1 %v8863_v48 }
 0x61b   :  { %6580 = vmatpush1.bf16.msra.mxu0 %v7536_v42  ;;  %6608 = vmatpush3.bf16.msra.mxu1 %v7577_v8 }
 0x61c   :  { %6582 = vmatprep.subr.bf16.mxu0 %v7539_v45  ;;  %6609 = vmatprep.subr.bf16.mxu1 %v8863_v48 }
 0x61f   :  { %6584 = vmatpush1.bf16.msra.mxu0 %v7552_v53  ;;  %6611 = vmatpush3.bf16.msra.mxu1 %v8897_v24 }
 0x620   :  { %6586 = vmatprep.subr.bf16.mxu0 %v8910_v35  ;;  %6612 = vmatprep.subr.bf16.mxu1 %v8863_v48 }
 0x623   :  { %6588 = vmatpush1.bf16.msra.mxu0 %v8911_v0  ;;  %6614 = vmatpush3.bf16.msra.mxu1 %v8912_v57 }
 0x624   :  { %6590 = vmatprep.subr.bf16.mxu0 %v8913_v52  ;;  %6615 = vmatprep.subr.bf16.mxu1 %v8863_v48 }
 0x627   :  { %6592 = vmatpush1.bf16.msra.mxu0 %v8914_v26  ;;  %6617 = vmatpush3.bf16.msra.mxu1 %v8915_v46 }
 0x628   :  { %6594 = vmatprep.subr.bf16.mxu0 %v8916_v47  ;;  %6618 = vmatprep.subr.bf16.mxu1 %v8863_v48  ;;  %v8921_v47 = vld [vmem:[#allocation42_spill] sm:$0xff] }
 0x62b   :  { %6596 = vmatpush1.bf16.msra.mxu0 %v8917_v14  ;;  %6620 = vmatpush3.bf16.msra.mxu1 %v8918_v30 }
 0x62c   :  { %6622 = vmatprep.subr.bf16.mxu0 %v8919_v3  ;;  %6653 = vmatprep.subr.bf16.mxu1 %v8863_v48 }
 0x6a1   :  { %v2672_v56 = vpop.f32.mrb[34].mxu1 }
 0x6a2   :  { %v5310_v11 = vpop.f32.mrb[35].mxu1  ;;  %v2859_v0 = vadd.f32 %v8268_v43, %v2672_v56 }
 0x6c1   :  { %v2770_v19 = vpop.f32.mrb[24].mxu0  ;;  %v2841_v63 = vpop.f32.mrb[36].mxu1 }
 0x6c2   :  { %v2771_v58 = vadd.f32 %v2770_v19, %v8920_v18  ;;  %v2772_v10 = vpop.f32.mrb[25].mxu0  ;;  %v5345_v28 = vpop.f32.mrb[37].mxu1  ;;  %v2842_v35 = vadd.f32 %v2841_v63, %v7885_v21 }
 0x6c3   :  { %v2773_v26 = vadd.f32 %v2772_v10, %v8921_v47 }
 0x6c4   :  { %v4373_v46 = vmul.f32 -1.442695, %v2771_v58 }
 0x6c5   :  { %v4374_v52 = vmul.f32 -1.442695, %v2773_v26 }
 0x6c6   :  { %7179 = vpow2.f32 %v4373_v46 }
 0x6c7   :  { %7181 = vpow2.f32 %v4374_v52 }
 0x6d0   :  { %v7180_v14 = vpop.eup %7179 }
 0x6d1   :  { %v2849_v30 = vadd.f32 1.0, %v7180_v14  ;;  %v7182_v3 = vpop.eup %7181 }
 0x6d2   :  { %v2856_v57 = vadd.f32 1.0, %v7182_v3 }
 0x6d3   :  { %7183 = vrcp.f32 %v2849_v30 }
 0x6d4   :  { %7185 = vrcp.f32 %v2856_v57 }
 0x6dd   :  { %v7184_v11 = vpop.eup %7183 }
 0x6de   :  { %v2860_v24 = vmul.f32 %v7184_v11, %v2859_v0  ;;  %v7186_v30 = vpop.eup %7185 }
 0x6df   :  { %v2863_v56 = vsub.f32 1.0, %v7186_v30  ;;  %v2865_v0 = vmul.f32 %v7186_v30, %v8275_v36 }
 0x6e0   :  { %v2861_v19 = vadd.f32 %v2860_v24, %v2842_v35 }
 0x6e1   :  { %v2935_v28 = vpop.f32.mrb[10].mxu0  ;;  %v3006_v58 = vpop.f32.mrb[38].mxu1 }
 0x6e2   :  { %7187 = vtanh.f32 %v2861_v19  ;;  %v7023_v46 = vadd.f32 %v2935_v28, %v7773_v25  ;;  %v2937_v26 = vpop.f32.mrb[11].mxu0  ;;  %v5380_v52 = vpop.f32.mrb[39].mxu1  ;;  %v3171_v11 = vadd.f32 %v8268_v43, %v3006_v58 }
 0x6e3   :  { %v7024_v14 = vadd.f32 %v2937_v26, %v7779_v1 }
 0x6e4   :  { %v4375_v10 = vmul.f32 -1.442695, %v7023_v46  ;;  %v8922_v46 = vld [vmem:[#allocation37_spill] sm:$0xff] }
 0x6e5   :  { %v4376_v3 = vmul.f32 -1.442695, %v7024_v14 }
 0x6e6   :  { %7189 = vpow2.f32 %v4375_v10 }
 0x6e7   :  { %7191 = vpow2.f32 %v4376_v3 }
 0x6ec   :  { %v7188_v47 = vpop.eup %7187 }
 0x6ed   :  { %v2864_v63 = vmul.f32 %v7188_v47, %v2863_v56  ;;  %v8924_v56 = vld [vmem:[#allocation16_spill] sm:$0xff] }
 0x6ef   :  { %v8401_v24 = vadd.f32 %v2865_v0, %v2864_v63  ;;  %v8925_v63 = vld [vmem:[#allocation17_spill] sm:$0xff]  ;;  %v8926_v0 = vld [vmem:[#allocation23_spill] sm:$0xff] }
 0x6f0   :  { %v7190_v35 = vpop.eup %7189 }
 0x6f1   :  { %v3161_v57 = vadd.f32 1.0, %v7190_v35  ;;  %2868 = vst [vmem:[#allocation9 + $0x20] sm:$0xff] %v8401_v24  ;;  %3075 = vmatmul.mubr.f32.vlgmr.msra.gmra.mrb[26].mxu0 %v8401_v24  ;;  %5414 = vmatmul.mubr.f32.vlgmr.msra.gmra.mrb[40].mxu1 %v8401_v24  ;;  %v7192_v36 = vpop.eup %7191  ;;  %v8927_v35 = vld [vmem:[#allocation18_spill] sm:$0xff] }
 0x6f2   :  { %6624 = vmatpush1.bf16.msra.mxu0 %v7667_v44  ;;  %6655 = vmatpush3.bf16.msra.mxu1 %v7672_v49  ;;  %v3168_v47 = vadd.f32 1.0, %v7192_v36  ;;  %v8929_v36 = vld [vmem:[#allocation24_spill] sm:$0xff] }
 0x6f3   :  { %7193 = vrcp.f32 %v3161_v57  ;;  %6626 = vmatprep.subr.bf16.mxu0 %v7678_v54  ;;  %6656 = vmatprep.subr.bf16.mxu1 %v8863_v48  ;;  %v8928_v57 = vld [vmem:[#allocation19_spill] sm:$0xff] }
 0x6f4   :  { %3243 = vmatprep.mubr.f32.mxu0 %v8864_v32  ;;  %5448 = vmatprep.mubr.msk.f32.mxu1 %vm7378_vm1, %v8864_v32  ;;  %7195 = vrcp.f32 %v3168_v47  ;;  %v8930_v47 = vld [vmem:[#allocation20_spill] sm:$0xff] }
 0x6f6   :  { %6628 = vmatpush1.bf16.msra.mxu0 %v7681_v59  ;;  %6658 = vmatpush3.bf16.msra.mxu1 %v7685_v62 }
 0x6f7   :  { %6630 = vmatprep.subr.bf16.mxu0 %v7691_v4  ;;  %6659 = vmatprep.subr.bf16.mxu1 %v8863_v48 }
 0x6fa   :  { %6632 = vmatpush1.bf16.msra.mxu0 %v7694_v9  ;;  %6661 = vmatpush3.bf16.msra.mxu1 %v7697_v13 }
 0x6fb   :  { %6634 = vmatprep.subr.bf16.mxu0 %v7701_v20  ;;  %6662 = vmatprep.subr.bf16.mxu1 %v8863_v48 }
 0x6fd   :  { %v7194_v19 = vpop.eup %7193 }
 0x6fe   :  { %v3172_v28 = vmul.f32 %v7194_v19, %v3171_v11  ;;  %6636 = vmatpush1.bf16.msra.mxu0 %v7704_v29  ;;  %6664 = vmatpush3.bf16.msra.mxu1 %v7707_v34  ;;  %v7196_v58 = vpop.eup %7195  ;;  %v8931_v11 = vld [vmem:[#allocation22_spill] sm:$0xff]  ;;  %v8932_v19 = vld [vmem:[#allocation25_spill] sm:$0xff] }
 0x6ff   :  { %6638 = vmatprep.subr.bf16.mxu0 %v7711_v39  ;;  %6665 = vmatprep.subr.bf16.mxu1 %v8863_v48  ;;  %v3175_v52 = vsub.f32 1.0, %v7196_v58  ;;  %v3177_v30 = vmul.f32 %v7196_v58, %v8318_v7  ;;  %v8923_v7 = vld [vmem:[#allocation21_spill] sm:$0xff] }
 0x700   :  { %v3173_v26 = vadd.f32 %v3172_v28, %v8922_v46  ;;  %v8933_v28 = vld [vmem:[#allocation26_spill] sm:$0xff] }
 0x702   :  { %7197 = vtanh.f32 %v3173_v26  ;;  %6640 = vmatpush1.bf16.msra.mxu0 %v7714_v50  ;;  %6667 = vmatpush3.bf16.msra.mxu1 %v7717_v55 }
 0x703   :  { %6642 = vmatprep.subr.bf16.mxu0 %v7721_v60  ;;  %6668 = vmatprep.subr.bf16.mxu1 %v8863_v48 }
 0x706   :  { %6644 = vmatpush1.bf16.msra.mxu0 %v8870_v6  ;;  %6670 = vmatpush3.bf16.msra.mxu1 %v8871_v38 }
 0x707   :  { %6646 = vmatprep.subr.bf16.mxu0 %v8872_v41  ;;  %6671 = vmatprep.subr.bf16.mxu1 %v8863_v48 }
 0x70a   :  { %6648 = vmatpush1.bf16.msra.mxu0 %v8873_v17  ;;  %6673 = vmatpush3.bf16.msra.mxu1 %v8874_v37 }
 0x70b   :  { %6650 = vmatprep.subr.bf16.mxu0 %v8875_v27  ;;  %6674 = vmatprep.subr.bf16.mxu1 %v8863_v48 }
 0x70c   :  { %v7198_v10 = vpop.eup %7197 }
 0x70d   :  { %v3176_v14 = vmul.f32 %v7198_v10, %v3175_v52 }
 0x70e   :  { %6652 = vmatpush1.bf16.msra.mxu0 %v8876_v2  ;;  %6676 = vmatpush3.bf16.msra.mxu1 %v8877_v5 }
 0x70f   :  { %v8442_v3 = vadd.f32 %v3177_v30, %v3176_v14  ;;  %6678 = vmatprep.subr.bf16.mxu0 %v7493_v12  ;;  %6709 = vmatprep.subr.bf16.mxu1 %v8863_v48 }
 0x711   :  { %3244 = vmatmul.mubr.f32.vlgmr.msra.gmra.mrb[26].mxu0 %v8442_v3  ;;  %5449 = vmatmul.mubr.f32.vlgmr.msra.gmra.mrb[42].mxu1 %v8442_v3 }
 0x712   :  { %6680 = vmatpush1.bf16.msra.mxu0 %v7495_v15  ;;  %6711 = vmatpush3.bf16.msra.mxu1 %v7529_v40 }
 0x713   :  { %6682 = vmatprep.subr.bf16.mxu0 %v7498_v16  ;;  %6712 = vmatprep.subr.bf16.mxu1 %v8863_v48 }
 0x714   :  { %3408 = vmatprep.mubr.f32.mxu0 %v8864_v32  ;;  %5483 = vmatprep.mubr.msk.f32.mxu1 %vm7378_vm1, %v8864_v32 }
 0x716   :  { %6684 = vmatpush1.bf16.msra.mxu0 %v7506_v22  ;;  %6714 = vmatpush3.bf16.msra.mxu1 %v7545_v51 }
 0x717   :  { %6686 = vmatprep.subr.bf16.mxu0 %v7509_v23  ;;  %6715 = vmatprep.subr.bf16.mxu1 %v8863_v48 }
 0x71a   :  { %6688 = vmatpush1.bf16.msra.mxu0 %v7523_v31  ;;  %6717 = vmatpush3.bf16.msra.mxu1 %v7561_v61 }
 0x71b   :  { %6690 = vmatprep.subr.bf16.mxu0 %v7526_v33  ;;  %6718 = vmatprep.subr.bf16.mxu1 %v8863_v48 }
 0x71e   :  { %6692 = vmatpush1.bf16.msra.mxu0 %v7536_v42  ;;  %6720 = vmatpush3.bf16.msra.mxu1 %v7577_v8 }
 0x71f   :  { %6694 = vmatprep.subr.bf16.mxu0 %v7539_v45  ;;  %6721 = vmatprep.subr.bf16.mxu1 %v8863_v48 }
 0x722   :  { %6696 = vmatpush1.bf16.msra.mxu0 %v7552_v53  ;;  %6723 = vmatpush3.bf16.msra.mxu1 %v8923_v7 }
 0x723   :  { %6698 = vmatprep.subr.bf16.mxu0 %v8924_v56  ;;  %6724 = vmatprep.subr.bf16.mxu1 %v8863_v48 }
 0x726   :  { %6700 = vmatpush1.bf16.msra.mxu0 %v8925_v63  ;;  %6726 = vmatpush3.bf16.msra.mxu1 %v8926_v0 }
 0x727   :  { %6702 = vmatprep.subr.bf16.mxu0 %v8927_v35  ;;  %6727 = vmatprep.subr.bf16.mxu1 %v8863_v48 }
 0x72a   :  { %6704 = vmatpush1.bf16.msra.mxu0 %v8928_v57  ;;  %6729 = vmatpush3.bf16.msra.mxu1 %v8929_v36 }
 0x72b   :  { %6706 = vmatprep.subr.bf16.mxu0 %v8930_v47  ;;  %6730 = vmatprep.subr.bf16.mxu1 %v8863_v48 }
 0x72e   :  { %6708 = vmatpush1.bf16.msra.mxu0 %v8931_v11  ;;  %6732 = vmatpush3.bf16.msra.mxu1 %v8932_v19 }
 0x72f   :  { %6734 = vmatprep.subr.bf16.mxu0 %v7493_v12  ;;  %6765 = vmatprep.subr.bf16.mxu1 %v8863_v48 }
 0x731   :  { %3409 = vmatmul.mubr.f32.vlgmr.msra.gmra.mrb[12].mxu0 %v8442_v3  ;;  %5484 = vmatmul.mubr.f32.vlgmr.msra.gmra.mrb[44].mxu1 %v8442_v3 }
 0x732   :  { %6736 = vmatpush1.bf16.msra.mxu0 %v7495_v15  ;;  %6767 = vmatpush3.bf16.msra.mxu1 %v7529_v40 }
 0x733   :  { %6738 = vmatprep.subr.bf16.mxu0 %v7498_v16  ;;  %6768 = vmatprep.subr.bf16.mxu1 %v8863_v48 }
 0x734   :  { %3549 = vmatprep.mubr.f32.mxu0 %v8864_v32  ;;  %5518 = vmatprep.mubr.msk.f32.mxu1 %vm7378_vm1, %v8864_v32 }
 0x736   :  { %6740 = vmatpush1.bf16.msra.mxu0 %v7506_v22  ;;  %6770 = vmatpush3.bf16.msra.mxu1 %v7545_v51 }
 0x737   :  { %6742 = vmatprep.subr.bf16.mxu0 %v7509_v23  ;;  %6771 = vmatprep.subr.bf16.mxu1 %v8863_v48 }
 0x73a   :  { %6744 = vmatpush1.bf16.msra.mxu0 %v7523_v31  ;;  %6773 = vmatpush3.bf16.msra.mxu1 %v7561_v61 }
 0x73b   :  { %6746 = vmatprep.subr.bf16.mxu0 %v7526_v33  ;;  %6774 = vmatprep.subr.bf16.mxu1 %v8863_v48 }
 0x73e   :  { %6748 = vmatpush1.bf16.msra.mxu0 %v7536_v42  ;;  %6776 = vmatpush3.bf16.msra.mxu1 %v7577_v8 }
 0x73f   :  { %6750 = vmatprep.subr.bf16.mxu0 %v7539_v45  ;;  %6777 = vmatprep.subr.bf16.mxu1 %v8863_v48 }
 0x742   :  { %6752 = vmatpush1.bf16.msra.mxu0 %v7552_v53  ;;  %6779 = vmatpush3.bf16.msra.mxu1 %v8923_v7 }
 0x743   :  { %6754 = vmatprep.subr.bf16.mxu0 %v8924_v56  ;;  %6780 = vmatprep.subr.bf16.mxu1 %v8863_v48 }
 0x746   :  { %6756 = vmatpush1.bf16.msra.mxu0 %v8925_v63  ;;  %6782 = vmatpush3.bf16.msra.mxu1 %v8926_v0 }
 0x747   :  { %6758 = vmatprep.subr.bf16.mxu0 %v8927_v35  ;;  %6783 = vmatprep.subr.bf16.mxu1 %v8863_v48 }
 0x74a   :  { %6760 = vmatpush1.bf16.msra.mxu0 %v8928_v57  ;;  %6785 = vmatpush3.bf16.msra.mxu1 %v8929_v36 }
 0x74b   :  { %6762 = vmatprep.subr.bf16.mxu0 %v8930_v47  ;;  %6786 = vmatprep.subr.bf16.mxu1 %v8863_v48  ;;  %v8934_v47 = vld [vmem:[#allocation42_spill] sm:$0xff] }
 0x74e   :  { %6764 = vmatpush1.bf16.msra.mxu0 %v8931_v11  ;;  %6788 = vmatpush3.bf16.msra.mxu1 %v8932_v19 }
 0x74f   :  { %6790 = vmatprep.subr.bf16.mxu0 %v8933_v28  ;;  %6821 = vmatprep.subr.bf16.mxu1 %v8863_v48 }
 0x7c4   :  { %v3147_v46 = vpop.f32.mrb[40].mxu1 }
 0x7c5   :  { %v5415_v26 = vpop.f32.mrb[41].mxu1  ;;  %v3334_v63 = vadd.f32 %v8268_v43, %v3147_v46 }
 0x7e4   :  { %v3245_v58 = vpop.f32.mrb[26].mxu0  ;;  %v3316_v52 = vpop.f32.mrb[42].mxu1 }
 0x7e5   :  { %v3246_v10 = vadd.f32 %v3245_v58, %v8920_v18  ;;  %v3247_v14 = vpop.f32.mrb[27].mxu0  ;;  %v5450_v30 = vpop.f32.mrb[43].mxu1  ;;  %v3317_v56 = vadd.f32 %v3316_v52, %v7885_v21 }
 0x7e6   :  { %v3248_v57 = vadd.f32 %v3247_v14, %v8934_v47 }
 0x7e7   :  { %v4377_v36 = vmul.f32 -1.442695, %v3246_v10 }
 0x7e8   :  { %v4378_v35 = vmul.f32 -1.442695, %v3248_v57 }
 0x7e9   :  { %7199 = vpow2.f32 %v4377_v36 }
 0x7ea   :  { %7201 = vpow2.f32 %v4378_v35 }
 0x7f3   :  { %v7200_v11 = vpop.eup %7199 }
 0x7f4   :  { %v3324_v19 = vadd.f32 1.0, %v7200_v11  ;;  %v7202_v28 = vpop.eup %7201 }
 0x7f5   :  { %v3331_v0 = vadd.f32 1.0, %v7202_v28 }
 0x7f6   :  { %7203 = vrcp.f32 %v3324_v19 }
 0x7f7   :  { %7205 = vrcp.f32 %v3331_v0 }
 0x800   :  { %v7204_v26 = vpop.eup %7203 }
 0x801   :  { %v3335_v7 = vmul.f32 %v7204_v26, %v3334_v63  ;;  %v7206_v19 = vpop.eup %7205 }
 0x802   :  { %v3338_v46 = vsub.f32 1.0, %v7206_v19  ;;  %v3340_v63 = vmul.f32 %v7206_v19, %v8401_v24 }
 0x803   :  { %v3336_v58 = vadd.f32 %v3335_v7, %v3317_v56 }
 0x804   :  { %v3410_v30 = vpop.f32.mrb[12].mxu0  ;;  %v3481_v10 = vpop.f32.mrb[44].mxu1 }
 0x805   :  { %7207 = vtanh.f32 %v3336_v58  ;;  %v7025_v36 = vadd.f32 %v3410_v30, %v7773_v25  ;;  %v3412_v57 = vpop.f32.mrb[13].mxu0  ;;  %v5485_v35 = vpop.f32.mrb[45].mxu1  ;;  %v3646_v26 = vadd.f32 %v8268_v43, %v3481_v10 }
 0x806   :  { %v7026_v11 = vadd.f32 %v3412_v57, %v7779_v1 }
 0x807   :  { %v4379_v14 = vmul.f32 -1.442695, %v7025_v36  ;;  %v8935_v36 = vld [vmem:[#allocation40_spill] sm:$0xff] }
 0x808   :  { %v4380_v28 = vmul.f32 -1.442695, %v7026_v11 }
 0x809   :  { %7209 = vpow2.f32 %v4379_v14 }
 0x80a   :  { %7211 = vpow2.f32 %v4380_v28 }
 0x80f   :  { %v7208_v47 = vpop.eup %7207 }
 0x810   :  { %v3339_v52 = vmul.f32 %v7208_v47, %v3338_v46  ;;  %v8937_v46 = vld [vmem:[#allocation16_spill] sm:$0xff] }
 0x812   :  { %v8527_v7 = vadd.f32 %v3340_v63, %v3339_v52  ;;  %v8938_v52 = vld [vmem:[#allocation17_spill] sm:$0xff]  ;;  %v8939_v63 = vld [vmem:[#allocation23_spill] sm:$0xff] }
 0x813   :  { %v7210_v56 = vpop.eup %7209 }
 0x814   :  { %v3636_v0 = vadd.f32 1.0, %v7210_v56  ;;  %3343 = vst [vmem:[#allocation9 + $0x28] sm:$0xff] %v8527_v7  ;;  %3550 = vmatmul.mubr.f32.vlgmr.msra.gmra.mrb[28].mxu0 %v8527_v7  ;;  %5519 = vmatmul.mubr.f32.vlgmr.msra.gmra.mrb[46].mxu1 %v8527_v7  ;;  %v7212_v24 = vpop.eup %7211  ;;  %v8940_v56 = vld [vmem:[#allocation18_spill] sm:$0xff] }
 0x815   :  { %6792 = vmatpush1.bf16.msra.mxu0 %v7667_v44  ;;  %6823 = vmatpush3.bf16.msra.mxu1 %v7672_v49  ;;  %v3643_v47 = vadd.f32 1.0, %v7212_v24  ;;  %v8942_v24 = vld [vmem:[#allocation24_spill] sm:$0xff] }
 0x816   :  { %7213 = vrcp.f32 %v3636_v0  ;;  %6794 = vmatprep.subr.bf16.mxu0 %v7678_v54  ;;  %6824 = vmatprep.subr.bf16.mxu1 %v8863_v48  ;;  %v8941_v0 = vld [vmem:[#allocation19_spill] sm:$0xff] }
 0x817   :  { %3718 = vmatprep.mubr.f32.mxu0 %v8864_v32  ;;  %5553 = vmatprep.mubr.msk.f32.mxu1 %vm7378_vm1, %v8864_v32  ;;  %7215 = vrcp.f32 %v3643_v47  ;;  %v8943_v47 = vld [vmem:[#allocation20_spill] sm:$0xff] }
 0x819   :  { %6796 = vmatpush1.bf16.msra.mxu0 %v7681_v59  ;;  %6826 = vmatpush3.bf16.msra.mxu1 %v7685_v62 }
 0x81a   :  { %6798 = vmatprep.subr.bf16.mxu0 %v7691_v4  ;;  %6827 = vmatprep.subr.bf16.mxu1 %v8863_v48 }
 0x81d   :  { %6800 = vmatpush1.bf16.msra.mxu0 %v7694_v9  ;;  %6829 = vmatpush3.bf16.msra.mxu1 %v7697_v13 }
 0x81e   :  { %6802 = vmatprep.subr.bf16.mxu0 %v7701_v20  ;;  %6830 = vmatprep.subr.bf16.mxu1 %v8863_v48 }
 0x820   :  { %v7214_v58 = vpop.eup %7213 }
 0x821   :  { %v3647_v30 = vmul.f32 %v7214_v58, %v3646_v26  ;;  %6804 = vmatpush1.bf16.msra.mxu0 %v7704_v29  ;;  %6832 = vmatpush3.bf16.msra.mxu1 %v7707_v34  ;;  %v7216_v10 = vpop.eup %7215  ;;  %v8944_v26 = vld [vmem:[#allocation22_spill] sm:$0xff]  ;;  %v8945_v58 = vld [vmem:[#allocation25_spill] sm:$0xff] }
 0x822   :  { %6806 = vmatprep.subr.bf16.mxu0 %v7711_v39  ;;  %6833 = vmatprep.subr.bf16.mxu1 %v8863_v48  ;;  %v3650_v35 = vsub.f32 1.0, %v7216_v10  ;;  %v3652_v19 = vmul.f32 %v7216_v10, %v8442_v3  ;;  %v8936_v3 = vld [vmem:[#allocation21_spill] sm:$0xff] }
 0x823   :  { %v3648_v57 = vadd.f32 %v3647_v30, %v8935_v36 }
 0x825   :  { %7217 = vtanh.f32 %v3648_v57  ;;  %6808 = vmatpush1.bf16.msra.mxu0 %v7714_v50  ;;  %6835 = vmatpush3.bf16.msra.mxu1 %v7717_v55 }
 0x826   :  { %6810 = vmatprep.subr.bf16.mxu0 %v7721_v60  ;;  %6836 = vmatprep.subr.bf16.mxu1 %v8863_v48 }
 0x829   :  { %6812 = vmatpush1.bf16.msra.mxu0 %v8870_v6  ;;  %6838 = vmatpush3.bf16.msra.mxu1 %v8871_v38 }
 0x82a   :  { %6814 = vmatprep.subr.bf16.mxu0 %v8872_v41  ;;  %6839 = vmatprep.subr.bf16.mxu1 %v8863_v48 }
 0x82d   :  { %6816 = vmatpush1.bf16.msra.mxu0 %v8873_v17  ;;  %6841 = vmatpush3.bf16.msra.mxu1 %v8874_v37 }
 0x82e   :  { %6818 = vmatprep.subr.bf16.mxu0 %v8875_v27  ;;  %6842 = vmatprep.subr.bf16.mxu1 %v8863_v48 }
 0x82f   :  { %v7218_v14 = vpop.eup %7217 }
 0x830   :  { %v3651_v11 = vmul.f32 %v7218_v14, %v3650_v35 }
 0x831   :  { %6820 = vmatpush1.bf16.msra.mxu0 %v8876_v2  ;;  %6844 = vmatpush3.bf16.msra.mxu1 %v8877_v5 }
 0x832   :  { %6846 = vmatprep.subr.bf16.mxu0 %v7493_v12  ;;  %6877 = vmatprep.subr.bf16.mxu1 %v8863_v48  ;;  %v8570_v28 = vadd.f32 %v3652_v19, %v3651_v11 }
 0x834   :  { %3719 = vmatmul.mubr.f32.vlgmr.msra.gmra.mrb[28].mxu0 %v8570_v28  ;;  %5554 = vmatmul.mubr.f32.vlgmr.msra.gmra.mrb[48].mxu1 %v8570_v28 }
 0x835   :  { %6848 = vmatpush1.bf16.msra.mxu0 %v7495_v15  ;;  %6879 = vmatpush3.bf16.msra.mxu1 %v7529_v40 }
 0x836   :  { %6850 = vmatprep.subr.bf16.mxu0 %v7498_v16  ;;  %6880 = vmatprep.subr.bf16.mxu1 %v8863_v48 }
 0x837   :  { %3883 = vmatprep.mubr.f32.mxu0 %v8864_v32  ;;  %5588 = vmatprep.mubr.msk.f32.mxu1 %vm7378_vm1, %v8864_v32 }
 0x839   :  { %6852 = vmatpush1.bf16.msra.mxu0 %v7506_v22  ;;  %6882 = vmatpush3.bf16.msra.mxu1 %v7545_v51 }
 0x83a   :  { %6854 = vmatprep.subr.bf16.mxu0 %v7509_v23  ;;  %6883 = vmatprep.subr.bf16.mxu1 %v8863_v48 }
 0x83d   :  { %6856 = vmatpush1.bf16.msra.mxu0 %v7523_v31  ;;  %6885 = vmatpush3.bf16.msra.mxu1 %v7561_v61 }
 0x83e   :  { %6858 = vmatprep.subr.bf16.mxu0 %v7526_v33  ;;  %6886 = vmatprep.subr.bf16.mxu1 %v8863_v48 }
 0x841   :  { %6860 = vmatpush1.bf16.msra.mxu0 %v7536_v42  ;;  %6888 = vmatpush3.bf16.msra.mxu1 %v7577_v8 }
 0x842   :  { %6862 = vmatprep.subr.bf16.mxu0 %v7539_v45  ;;  %6889 = vmatprep.subr.bf16.mxu1 %v8863_v48 }
 0x845   :  { %6864 = vmatpush1.bf16.msra.mxu0 %v7552_v53  ;;  %6891 = vmatpush3.bf16.msra.mxu1 %v8936_v3 }
 0x846   :  { %6866 = vmatprep.subr.bf16.mxu0 %v8937_v46  ;;  %6892 = vmatprep.subr.bf16.mxu1 %v8863_v48 }
 0x849   :  { %6868 = vmatpush1.bf16.msra.mxu0 %v8938_v52  ;;  %6894 = vmatpush3.bf16.msra.mxu1 %v8939_v63 }
 0x84a   :  { %6870 = vmatprep.subr.bf16.mxu0 %v8940_v56  ;;  %6895 = vmatprep.subr.bf16.mxu1 %v8863_v48 }
 0x84d   :  { %6872 = vmatpush1.bf16.msra.mxu0 %v8941_v0  ;;  %6897 = vmatpush3.bf16.msra.mxu1 %v8942_v24 }
 0x84e   :  { %6874 = vmatprep.subr.bf16.mxu0 %v8943_v47  ;;  %6898 = vmatprep.subr.bf16.mxu1 %v8863_v48 }
 0x851   :  { %6876 = vmatpush1.bf16.msra.mxu0 %v8944_v26  ;;  %6900 = vmatpush3.bf16.msra.mxu1 %v8945_v58 }
 0x852   :  { %6902 = vmatprep.subr.bf16.mxu0 %v7493_v12  ;;  %6933 = vmatprep.subr.bf16.mxu1 %v8863_v48  ;;  %v8946_v12 = vld [vmem:[#allocation26_spill] sm:$0xff] }
 0x854   :  { %3884 = vmatmul.mubr.f32.vlgmr.msra.gmra.mrb[14].mxu0 %v8570_v28  ;;  %5589 = vmatmul.mubr.f32.vlgmr.msra.gmra.mrb[50].mxu1 %v8570_v28 }
 0x855   :  { %6904 = vmatpush1.bf16.msra.mxu0 %v7495_v15  ;;  %6935 = vmatpush3.bf16.msra.mxu1 %v7529_v40 }
 0x856   :  { %6906 = vmatprep.subr.bf16.mxu0 %v7498_v16  ;;  %6936 = vmatprep.subr.bf16.mxu1 %v8863_v48 }
 0x857   :  { %4024 = vmatprep.mubr.f32.mxu0 %v8864_v32  ;;  %5623 = vmatprep.mubr.msk.f32.mxu1 %vm7378_vm1, %v8864_v32 }
 0x859   :  { %6908 = vmatpush1.bf16.msra.mxu0 %v7506_v22  ;;  %6938 = vmatpush3.bf16.msra.mxu1 %v7545_v51 }
 0x85a   :  { %6910 = vmatprep.subr.bf16.mxu0 %v7509_v23  ;;  %6939 = vmatprep.subr.bf16.mxu1 %v8863_v48 }
 0x85d   :  { %6912 = vmatpush1.bf16.msra.mxu0 %v7523_v31  ;;  %6941 = vmatpush3.bf16.msra.mxu1 %v7561_v61 }
 0x85e   :  { %6914 = vmatprep.subr.bf16.mxu0 %v7526_v33  ;;  %6942 = vmatprep.subr.bf16.mxu1 %v8863_v48 }
 0x861   :  { %6916 = vmatpush1.bf16.msra.mxu0 %v7536_v42  ;;  %6944 = vmatpush3.bf16.msra.mxu1 %v7577_v8 }
 0x862   :  { %6918 = vmatprep.subr.bf16.mxu0 %v7539_v45  ;;  %6945 = vmatprep.subr.bf16.mxu1 %v8863_v48  ;;  %v8947_v45 = vld [vmem:[#allocation42_spill] sm:$0xff] }
 0x865   :  { %6920 = vmatpush1.bf16.msra.mxu0 %v7552_v53  ;;  %6947 = vmatpush3.bf16.msra.mxu1 %v8936_v3 }
 0x866   :  { %6922 = vmatprep.subr.bf16.mxu0 %v8937_v46  ;;  %6948 = vmatprep.subr.bf16.mxu1 %v8863_v48 }
 0x869   :  { %6924 = vmatpush1.bf16.msra.mxu0 %v8938_v52  ;;  %6950 = vmatpush3.bf16.msra.mxu1 %v8939_v63 }
 0x86a   :  { %6926 = vmatprep.subr.bf16.mxu0 %v8940_v56  ;;  %6951 = vmatprep.subr.bf16.mxu1 %v8863_v48 }
 0x86d   :  { %6928 = vmatpush1.bf16.msra.mxu0 %v8941_v0  ;;  %6953 = vmatpush3.bf16.msra.mxu1 %v8942_v24 }
 0x86e   :  { %6930 = vmatprep.subr.bf16.mxu0 %v8943_v47  ;;  %6954 = vmatprep.subr.bf16.mxu1 %v8863_v48 }
 0x871   :  { %6932 = vmatpush1.bf16.msra.mxu0 %v8944_v26  ;;  %6956 = vmatpush3.bf16.msra.mxu1 %v8945_v58 }
 0x872   :  { %6958 = vmatprep.subr.bf16.mxu0 %v8946_v12  ;;  %6989 = vmatprep.subr.bf16.mxu1 %v8863_v48 }
 0x8e7   :  { %v3622_v15 = vpop.f32.mrb[46].mxu1 }
 0x8e8   :  { %v5520_v16 = vpop.f32.mrb[47].mxu1  ;;  %v3809_v57 = vadd.f32 %v8268_v43, %v3622_v15 }
 0x907   :  { %v3720_v22 = vpop.f32.mrb[28].mxu0  ;;  %v3791_v23 = vpop.f32.mrb[48].mxu1 }
 0x908   :  { %v3721_v31 = vadd.f32 %v3720_v22, %v8920_v18  ;;  %v3722_v33 = vpop.f32.mrb[29].mxu0  ;;  %v5555_v40 = vpop.f32.mrb[49].mxu1  ;;  %v3792_v35 = vadd.f32 %v3791_v23, %v7885_v21 }
 0x909   :  { %v3723_v51 = vadd.f32 %v3722_v33, %v8947_v45 }
 0x90a   :  { %v4381_v42 = vmul.f32 -1.442695, %v3721_v31 }
 0x90b   :  { %v4382_v53 = vmul.f32 -1.442695, %v3723_v51 }
 0x90c   :  { %7219 = vpow2.f32 %v4381_v42 }
 0x90d   :  { %7221 = vpow2.f32 %v4382_v53 }
 0x916   :  { %v7220_v61 = vpop.eup %7219 }
 0x917   :  { %v3799_v8 = vadd.f32 1.0, %v7220_v61  ;;  %v7222_v30 = vpop.eup %7221 }
 0x918   :  { %v3806_v36 = vadd.f32 1.0, %v7222_v30 }
 0x919   :  { %7223 = vrcp.f32 %v3799_v8 }
 0x91a   :  { %7225 = vrcp.f32 %v3806_v36 }
 0x923   :  { %v7224_v10 = vpop.eup %7223 }
 0x924   :  { %v3810_v14 = vmul.f32 %v7224_v10, %v3809_v57  ;;  %v7226_v24 = vpop.eup %7225 }
 0x925   :  { %v3813_v43 = vsub.f32 1.0, %v7226_v24  ;;  %v3815_v12 = vmul.f32 %v7226_v24, %v8527_v7 }
 0x926   :  { %v3811_v11 = vadd.f32 %v3810_v14, %v3792_v35 }
 0x927   :  { %v3885_v19 = vpop.f32.mrb[14].mxu0  ;;  %v3956_v3 = vpop.f32.mrb[50].mxu1 }
 0x928   :  { %7227 = vtanh.f32 %v3811_v11  ;;  %v7027_v46 = vadd.f32 %v3885_v19, %v7773_v25  ;;  %v3887_v52 = vpop.f32.mrb[15].mxu0  ;;  %v5590_v63 = vpop.f32.mrb[51].mxu1 }
 0x929   :  { %v7028_v0 = vadd.f32 %v3887_v52, %v7779_v1 }
 0x92a   :  { %v4383_v56 = vmul.f32 -1.442695, %v7027_v46 }
 0x92b   :  { %v4384_v47 = vmul.f32 -1.442695, %v7028_v0 }
 0x92c   :  { %7229 = vpow2.f32 %v4383_v56 }
 0x92d   :  { %7231 = vpow2.f32 %v4384_v47 }
 0x932   :  { %v7228_v26 = vpop.eup %7227 }
 0x933   :  { %v3814_v58 = vmul.f32 %v7228_v26, %v3813_v43 }
 0x935   :  { %v8653_v15 = vadd.f32 %v3815_v12, %v3814_v58 }
 0x936   :  { %v7230_v16 = vpop.eup %7229 }
 0x937   :  { %v4111_v22 = vadd.f32 1.0, %v7230_v16  ;;  %3818 = vst [vmem:[#allocation9 + $0x30] sm:$0xff] %v8653_v15  ;;  %4025 = vmatmul.mubr.f32.vlgmr.msra.gmra.mrb[30].mxu0 %v8653_v15  ;;  %5624 = vmatmul.mubr.f32.vlgmr.msra.gmra.mrb[52].mxu1 %v8653_v15  ;;  %v7232_v25 = vpop.eup %7231 }
 0x938   :  { %6960 = vmatpush1.bf16.msra.mxu0 %v7667_v44  ;;  %6991 = vmatpush3.bf16.msra.mxu1 %v7672_v49  ;;  %v4118_v44 = vadd.f32 1.0, %v7232_v25  ;;  %v7250_v49 = vld [vmem:[%s8744_s7] ss:$0 sm:$0xff]  ;;  %s7379_s7 = smov [#allocation9]  }
 0x939   :  { %7233 = vrcp.f32 %v4111_v22  ;;  %6962 = vmatprep.subr.bf16.mxu0 %v7678_v54  ;;  %6992 = vmatprep.subr.bf16.mxu1 %v8863_v48  ;;  %v4121_v54 = vadd.f32 %v7250_v49, %v3956_v3  ;;  %s4302_s17 = sshll.u32 %s7379_s7, 4  ;;  %s4303_s17 = int_to_ptr.vmem [resolvable:$true] %s4302_s17 }
 0x93a   :  { %4193 = vmatprep.mubr.f32.mxu0 %v8864_v32  ;;  %5658 = vmatprep.mubr.msk.f32.mxu1 %vm7378_vm1, %v8864_v32  ;;  %7235 = vrcp.f32 %v4118_v44  ;;  %s7317_s22 = scalar_lea.vmem %s4303_s17, 1024  ;;  %p7322_p11 = scmp.lt.s32.totalorder %s4303_s17, %s4303_s17 }
 0x93b   :  { %p7318_p10 = scmp.ne.s32.totalorder %s4303_s17, %s7317_s22  ;;  %p7323_p12 = scmp.lt.s32.totalorder %s7317_s22, %s7317_s22 }
 0x93c   :  { %6964 = vmatpush1.bf16.msra.mxu0 %v7681_v59  ;;  %6994 = vmatpush3.bf16.msra.mxu1 %v7685_v62 }
 0x93d   :  { %6966 = vmatprep.subr.bf16.mxu0 %v7691_v4  ;;  %6995 = vmatprep.subr.bf16.mxu1 %v8863_v48  ;;  %v8948_v4 = vld [vmem:[#allocation39_spill] sm:$0xff]  ;;  %p7324_p13 = por %p7323_p12, %p7322_p11 }
 0x93f   :  { %p7325_p0 = pnand %p7324_p13, %p7318_p10 }
 0x940   :  { %6968 = vmatpush1.bf16.msra.mxu0 %v7694_v9  ;;  %6997 = vmatpush3.bf16.msra.mxu1 %v7697_v13 }
 0x941   :  { %6970 = vmatprep.subr.bf16.mxu0 %v7701_v20  ;;  %6998 = vmatprep.subr.bf16.mxu1 %v8863_v48 }
 0x943   :  { %v7234_v59 = vpop.eup %7233 }
 0x944   :  { %v4122_v62 = vmul.f32 %v7234_v59, %v4121_v54  ;;  %6972 = vmatpush1.bf16.msra.mxu0 %v7704_v29  ;;  %7000 = vmatpush3.bf16.msra.mxu1 %v7707_v34  ;;  %v7236_v13 = vpop.eup %7235 }
 0x945   :  { %6974 = vmatprep.subr.bf16.mxu0 %v7711_v39  ;;  %7001 = vmatprep.subr.bf16.mxu1 %v8863_v48  ;;  %v4125_v20 = vsub.f32 1.0, %v7236_v13  ;;  %v4127_v39 = vmul.f32 %v7236_v13, %v8570_v28 }
 0x946   :  { %v4123_v9 = vadd.f32 %v4122_v62, %v8948_v4 }
 0x948   :  { %7237 = vtanh.f32 %v4123_v9  ;;  %6976 = vmatpush1.bf16.msra.mxu0 %v7714_v50  ;;  %7003 = vmatpush3.bf16.msra.mxu1 %v7717_v55 }
 0x949   :  { %6978 = vmatprep.subr.bf16.mxu0 %v7721_v60  ;;  %7004 = vmatprep.subr.bf16.mxu1 %v8863_v48 }
 0x94c   :  { %6980 = vmatpush1.bf16.msra.mxu0 %v8870_v6  ;;  %7006 = vmatpush3.bf16.msra.mxu1 %v8871_v38 }
 0x94d   :  { %6982 = vmatprep.subr.bf16.mxu0 %v8872_v41  ;;  %7007 = vmatprep.subr.bf16.mxu1 %v8863_v48 }
 0x950   :  { %6984 = vmatpush1.bf16.msra.mxu0 %v8873_v17  ;;  %7009 = vmatpush3.bf16.msra.mxu1 %v8874_v37 }
 0x951   :  { %6986 = vmatprep.subr.bf16.mxu0 %v8875_v27  ;;  %7010 = vmatprep.subr.bf16.mxu1 %v8863_v48 }
 0x952   :  { %v7238_v29 = vpop.eup %7237 }
 0x953   :  { %v4126_v34 = vmul.f32 %v7238_v29, %v4125_v20 }
 0x954   :  { %6988 = vmatpush1.bf16.msra.mxu0 %v8876_v2  ;;  %7012 = vmatpush3.bf16.msra.mxu1 %v8877_v5 }
 0x955   :  { %v4128_v50 = vadd.f32 %v4127_v39, %v4126_v34 }
 0x957   :  { %4194 = vmatmul.mubr.f32.vlgmr.msra.gmra.mrb[30].mxu0 %v4128_v50  ;;  %4294 = vst [vmem:[#allocation10] sm:$0xff] %v4128_v50  ;;  %5659 = vmatmul.mubr.f32.vlgmr.msra.gmra.mrb[54].mxu1 %v4128_v50 }
 0xa0a   :  { %v4097_v55 = vpop.f32.mrb[52].mxu1 }
 0xa0b   :  { %v5625_v60 = vpop.f32.mrb[53].mxu1  ;;  %v4284_v28 = vadd.f32 %v7250_v49, %v4097_v55 }
 0xa2a   :  { %v4195_v1 = vpop.f32.mrb[30].mxu0  ;;  %v4266_v32 = vpop.f32.mrb[54].mxu1 }
 0xa2b   :  { %v4196_v6 = vadd.f32 %v4195_v1, %v8920_v18  ;;  %v4197_v48 = vpop.f32.mrb[31].mxu0  ;;  %v5660_v38 = vpop.f32.mrb[55].mxu1  ;;  %v4267_v31 = vadd.f32 %v4266_v32, %v7885_v21 }
 0xa2c   :  { %v4198_v17 = vadd.f32 %v4197_v48, %v8947_v45 }
 0xa2d   :  { %v4385_v41 = vmul.f32 -1.442695, %v4196_v6 }
 0xa2e   :  { %v4386_v37 = vmul.f32 -1.442695, %v4198_v17 }
 0xa2f   :  { %7239 = vpow2.f32 %v4385_v41 }
 0xa30   :  { %7241 = vpow2.f32 %v4386_v37 }
 0xa39   :  { %v7240_v27 = vpop.eup %7239 }
 0xa3a   :  { %v4274_v2 = vadd.f32 1.0, %v7240_v27  ;;  %v7242_v5 = vpop.eup %7241 }
 0xa3b   :  { %v4281_v7 = vadd.f32 1.0, %v7242_v5 }
 0xa3c   :  { %7243 = vrcp.f32 %v4274_v2 }
 0xa3d   :  { %7245 = vrcp.f32 %v4281_v7 }
 0xa46   :  { %v7244_v23 = vpop.eup %7243 }
 0xa47   :  { %v4285_v33 = vmul.f32 %v7244_v23, %v4284_v28  ;;  %v7246_v40 = vpop.eup %7245 }
 0xa48   :  { %v4288_v42 = vsub.f32 1.0, %v7246_v40  ;;  %v4290_v53 = vmul.f32 %v7246_v40, %v8653_v15 }
 0xa49   :  { %v4286_v18 = vadd.f32 %v4285_v33, %v4267_v31 }
 0xa4b   :  { %7247 = vtanh.f32 %v4286_v18 }
 0xa55   :  { %v7248_v51 = vpop.eup %7247 }
 0xa56   :  { %v4289_v45 = vmul.f32 %v7248_v51, %v4288_v42 }
 0xa58   :  { %v4291_v61 = vadd.f32 %v4290_v53, %v4289_v45 }
 0xa5a   :  { %4293 = vst [vmem:[#allocation9 + $0x38] sm:$0xff] %v4291_v61  ;;  %4296 = vst [vmem:[#allocation10 + $0x8] sm:$0xff] %v4291_v61 }
 0xa5b   :  { %7328 = shalt.err (!%p7325_p0)
}
 0xa5c   :  { %s7329_s2 = scalar_lea.hbm %s8745_s8, 1024 }
 0xa5d   :  { %p7330_p1 = scmp.ne.s32.totalorder %s8745_s8, %s7329_s2  ;;  %p7333_p2 = scmp.lt.u32.totalorder %s7329_s2, %s8745_s8 }
 0xa5f   :  { %p7335_p3 = pnand %p7333_p2, %p7330_p1 }
 0xa61   :  { %7338 = shalt.err (!%p7335_p3)
}
 0xa62   :  { %4308 = dma.vmem_to_hbm [thread:$0]  %s4303_s17, 1024, %s8745_s8, [#allocation5], %s7373_s3, %s7373_s3, %s7374_s10  }
 0xa63   :  { %s7339_s30 = scalar_lea.vmem %s8700_s21, 256  ;;  %p7344_p5 = scmp.lt.s32.totalorder %s8700_s21, %s8700_s21 }
 0xa64   :  { %p7340_p4 = scmp.ne.s32.totalorder %s8700_s21, %s7339_s30  ;;  %p7345_p6 = scmp.lt.s32.totalorder %s7339_s30, %s7339_s30 }
 0xa66   :  { %p7346_p7 = por %p7345_p6, %p7344_p5 }
 0xa68   :  { %p7347_p8 = pnand %p7346_p7, %p7340_p4 }
 0xa6a   :  { %7350 = shalt.err (!%p7347_p8)
}
 0xa6b   :  { %s7351_s0 = scalar_lea.hbm %s8746_s9, 256 }
 0xa6c   :  { %p7352_p9 = scmp.ne.s32.totalorder %s8746_s9, %s7351_s0  ;;  %p7355_p10 = scmp.lt.u32.totalorder %s7351_s0, %s8746_s9 }
 0xa6e   :  { %p7357_p11 = pnand %p7355_p10, %p7352_p9 }
 0xa70   :  { %7360 = shalt.err (!%p7357_p11)
}
 0xa71   :  { %4320 = dma.vmem_to_hbm [thread:$0]  %s8700_s21, 256, %s8746_s9, [#allocation11], %s7373_s3, %s7373_s3, %s7374_s10  }
 0xa72   :  { %7365 = dma.done.wait [#allocation5], 1024  }
 0xa73   :  { %7366 = vsyncadd [#allocation5], 4294966272 }
 0xa74   :  { %7367 = dma.done.wait [#allocation11], 256  }
 0xa75   :  { %7368 = vsyncadd [#allocation11], 4294967040 }
 0xa76   :  { %4327 = vsyncpa [#allocation4], 1 }
 0xa77   :  { %4328 = vsyncpa [#allocation7], 1 }
 0xa78   :  { %4329 = vsyncpa [#allocation5], 1 }
 0xa79   :  { %4330 = vsyncpa [#allocation11], 1 }

</bundles_post_ra>
